<compile_context>
chip_gen: v6e
topology: v6e:2x2x1
jax: 0.10.0
libtpu: 0.0.40
codegen_flags: <defaults>
</compile_context>

<pallas_src>
from math import pi as PI

import jax
import jax.numpy as jnp
from jax.experimental import pallas as pl
from jax.experimental.pallas import tpu as pltpu

# ----------------- config (small, consistent with SGMP.forward) -----------------
N = 16                 # number of nodes
C = 8                  # input_channels_node
H = 32                 # hidden_channels
E = 64                 # number of 3rd-order edges (quadruples i,j,k,p)
B = 2                  # graphs in the batch
O = 1                  # output_channels
NG = (16, 8, 8)        # num_gaussians (dist, theta, phi)
CUTOFF = 10.0
NUM_INTERACTIONS = 3
GTOT = 2 * NG[0] + NG[1] + (NG[0] + NG[1] + NG[2])   # 72 packed expansion columns
RAW_COLS = 8           # d1, d2, t1, d3, t2, p1, pad, pad

# Gaussian smearing coefficients:  coeff = -0.5 / (offset[1]-offset[0])^2
COEFF_D = -0.5 / ((CUTOFF - 0.0) / (NG[0] - 1)) ** 2
COEFF_T = -0.5 / ((PI - 0.0) / (NG[1] - 1)) ** 2
COEFF_P = -0.5 / ((2.0 * PI - 0.0) / (NG[2] - 1)) ** 2


# =========================== fused Pallas kernel ===========================

def _sgmp_fused_kernel(
        x_ref, we1_ref, be1_ref, we2_ref, be2_ref,              # embedding MLP
        raw_ref, sel_ref, offv_ref, cfv_ref,                    # compact geometry + smearing consts
        gcat_ref, sT_ref, deg_ref,                              # fused gather / scatter one-hots
        wg0_ref, bg0_ref, wg1_ref, bg1_ref,                     # geo MLPs (block-diag packed, stacked [3,...])
        wc0_ref, bc0_ref, wc1_ref, bc1_ref, wc2_ref, bc2_ref,   # combine MLP (stacked [3,...])
        bT_ref, lw1_ref, lb1_ref, lw2_ref, lb2_ref,             # readout
        out_ref):                                               # [B, O]
    relu = lambda v: jnp.maximum(v, 0.0)
    dot = lambda a, b: jnp.dot(a, b, preferred_element_type=jnp.float32)

    # ---- embedding MLP (once) ----
    e0 = relu(dot(x_ref[...], we1_ref[...]) + be1_ref[...])
    h = dot(e0, we2_ref[...]) + be2_ref[...]                    # [N, H] node state

    # ---- Gaussian smearing (once): spread compact raw geometry [E,8] into the packed
    #      [E,72] expansion-input slab with a 0/1 selection matmul (identical math to the
    #      old per-column broadcast), then exp on the EUP. ----
    vals = dot(raw_ref[...], sel_ref[...])                      # [E, 72]
    diff = vals - offv_ref[...]
    geo = jnp.exp(cfv_ref[...] * diff * diff)                   # [E, 72] all six expansions

    gcat = gcat_ref[...]                                        # [E, 4N] = [G_i|G_j|G_k|G_p]
    sT = sT_ref[...]                                            # [N, E]  scatter one-hot (dest i)
    deg = deg_ref[...]                                          # [N, 1]  in-degree of each node

    # ---- interactions: statically unrolled; stacked weights resident in VMEM ----
    for t in range(NUM_INTERACTIONS):
        wc0 = wc0_ref[t]                                        # [7H, 4H]

        # geo MLPs (block-diagonal packed) -> g123 = [g1 | g2 | g3]  [E, 3H]
        gh = relu(dot(geo, wg0_ref[t]) + bg0_ref[t])
        g123 = dot(gh, wg1_ref[t]) + bg1_ref[t]

        # fused gather + node-part of combine layer 0:
        #   sum_q G_q @ (h @ wc0[qH:(q+1)H]) == Gcat @ rows[h @ wc0_q]  (one lane-dense matmul)
        hw = jnp.concatenate([dot(h, wc0[q * H:(q + 1) * H]) for q in range(4)],
                             axis=0)                            # [4N, 4H]
        node_part = dot(gcat, hw)                               # [E, 4H]

        hc = relu(node_part + dot(g123, wc0[4 * H:7 * H]) + bc0_ref[t])
        hc = relu(dot(hc, wc1_ref[t]) + bc1_ref[t])             # [E, 2H]

        # reassociated scatter-add + residual:
        #   sT @ (hc @ wc2 + bc2) == (sT @ hc) @ wc2 + deg * bc2
        h = h + dot(dot(sT, hc), wc2_ref[t]) + deg * bc2_ref[t]

    # ---- readout: graph pooling (one-hot matmul, readout='add') + lin1/ReLU/lin2 ----
    pooled = dot(bT_ref[...], h)                                # [B, H]
    r = relu(dot(pooled, lw1_ref[...]) + lb1_ref[...])
    out_ref[...] = dot(r, lw2_ref[...]) + lb2_ref[...]


def sgmp_fused(x, we1, be1, we2, be2,
               raw, sel, offv, cfv, gcat, sT, deg,
               wg0, bg0, wg1, bg1, wc0, bc0, wc1, bc1, wc2, bc2,
               bT, lw1, lb1, lw2, lb2):
    b, o = bT.shape[0], lw2.shape[1]
    # No grid: every input is a single whole-array VMEM block (total footprint ~2 MiB,
    # safe on v5e/v6e/v7x default scoped-VMEM limits); the 3 interactions are unrolled
    # inside the kernel body.
    return pl.pallas_call(
        _sgmp_fused_kernel,
        out_shape=jax.ShapeDtypeStruct((b, o), jnp.float32),
    )(x, we1, be1, we2, be2,
      raw, sel, offv, cfv, gcat, sT, deg,
      wg0, bg0, wg1, bg1, wc0, bc0, wc1, bc1, wc2, bc2,
      bT, lw1, lb1, lw2, lb2)


# =========================== parameters ===========================

def _linear(key, din, dout):
    lim = (6.0 / (din + dout)) ** 0.5            # xavier_uniform
    w = jax.random.uniform(key, (din, dout), jnp.float32, -lim, lim)
    b = jnp.zeros((1, dout), jnp.float32)
    return w, b


def init_params(key):
    keys = iter(jax.random.split(key, 64))
    params = {
        "emb1": _linear(next(keys), C, H),
        "emb2": _linear(next(keys), H, H),
        "inter": [],
        "lin1": _linear(next(keys), H, H // 2),
        "lin2": _linear(next(keys), H // 2, O),
    }
    for _ in range(NUM_INTERACTIONS):
        blk = {
            "m1_0": _linear(next(keys), NG[0], H),
            "m1_1": _linear(next(keys), H, H),
            "m2_0": _linear(next(keys), NG[0] + NG[1], H),
            "m2_1": _linear(next(keys), H, H),
            "m3_0": _linear(next(keys), NG[0] + NG[1] + NG[2], H),
            "m3_1": _linear(next(keys), H, H),
            "c0": _linear(next(keys), 7 * H, 4 * H),
            "c1": _linear(next(keys), 4 * H, 2 * H),
            "c2": _linear(next(keys), 2 * H, H),
        }
        params["inter"].append(blk)
    return params


# =========================== forward (glue + fused kernel) ===========================

def get_angle(v1, v2):
    cr = jnp.cross(v1, v2)
    return jnp.arctan2(jnp.linalg.norm(cr, axis=1), jnp.sum(v1 * v2, axis=1))


def _block_diag(mats):
    rows = sum(m.shape[0] for m in mats)
    cols = sum(m.shape[1] for m in mats)
    out = jnp.zeros((rows, cols), jnp.float32)
    r = c = 0
    for m in mats:
        out = out.at[r:r + m.shape[0], c:c + m.shape[1]].set(m)
        r += m.shape[0]
        c += m.shape[1]
    return out


def sgmp_forward(params, x, pos, batch, edge_index_3rd):
    i, j, k, p = edge_index_3rd

    # --- geometry (plain-JAX glue over [E,3] vectors, computed once) ---
    rij = pos[j] - pos[i]
    rkj = pos[k] - pos[j]
    rpj = pos[p] - pos[j]
    d1 = jnp.linalg.norm(rij, axis=1)
    d2 = jnp.linalg.norm(rkj, axis=1)
    d3 = jnp.linalg.norm(rpj, axis=1)
    t1 = get_angle(rij, rkj)
    t2 = get_angle(rij, rpj)
    v1 = jnp.cross(rij, rkj)
    v2 = jnp.cross(rij, rpj)
    phi = get_angle(v1, v2)
    vn = jnp.cross(v1, v2)
    flag = jnp.sign(jnp.sum(vn * rij, axis=1))
    p1 = phi * flag

    e = d1.shape[0]

    # --- compact raw-geometry slab [E, 8]; spread to [E,72] happens in-kernel.
    #     Column order (d1,d2,t1,d3,t2,p1) matches the geo-MLP packing:
    #     geo1 uses cols [0:16]=d1, geo2 [16:40]=d2|t1, geo3 [40:72]=d3|t2|p1 ---
    raw = jnp.zeros((e, RAW_COLS), jnp.float32)
    for c_idx, v in enumerate((d1, d2, t1, d3, t2, p1)):
        raw = raw.at[:, c_idx].set(v.astype(jnp.float32))

    counts = (NG[0], NG[0], NG[1], NG[0], NG[1], NG[2])
    sel = jnp.zeros((RAW_COLS, GTOT), jnp.float32)          # 0/1 column-spread matrix
    c = 0
    for r_idx, cnt in enumerate(counts):
        sel = sel.at[r_idx, c:c + cnt].set(1.0)
        c += cnt

    offd = jnp.linspace(0.0, CUTOFF, NG[0], dtype=jnp.float32)[None, :]
    offt = jnp.linspace(0.0, PI, NG[1], dtype=jnp.float32)[None, :]
    offp = jnp.linspace(0.0, 2.0 * PI, NG[2], dtype=jnp.float32)[None, :]
    offv = jnp.concatenate([offd, offd, offt, offd, offt, offp], axis=1)     # [1, 72]
    cfv = jnp.concatenate([
        jnp.full((1, NG[0]), COEFF_D), jnp.full((1, NG[0]), COEFF_D),
        jnp.full((1, NG[1]), COEFF_T), jnp.full((1, NG[0]), COEFF_D),
        jnp.full((1, NG[1]), COEFF_T), jnp.full((1, NG[2]), COEFF_P),
    ], axis=1).astype(jnp.float32)                                           # [1, 72]

    # --- fused gather one-hot [E,4N], scatter one-hot [N,E] (+ degree), pooling [B,N] ---
    n = x.shape[0]
    node_ids = jnp.arange(n)
    gcat = jnp.concatenate(
        [(idx[:, None] == node_ids[None, :]).astype(jnp.float32)
         for idx in (i, j, k, p)], axis=1)                                   # [E, 4N]
    sT = (i[None, :] == node_ids[:, None]).astype(jnp.float32)               # [N, E]
    deg = jnp.sum(sT, axis=1, keepdims=True)                                 # [N, 1]
    bT = (batch[None, :] == jnp.arange(B)[:, None]).astype(jnp.float32)      # [B, N]

    # --- stack per-interaction weights along a leading [num_interactions] axis ---
    blks = params["inter"]
    wg0 = jnp.stack([_block_diag([b_["m1_0"][0], b_["m2_0"][0], b_["m3_0"][0]]) for b_ in blks])
    bg0 = jnp.stack([jnp.concatenate([b_["m1_0"][1], b_["m2_0"][1], b_["m3_0"][1]], axis=1)
                     for b_ in blks])
    wg1 = jnp.stack([_block_diag([b_["m1_1"][0], b_["m2_1"][0], b_["m3_1"][0]]) for b_ in blks])
    bg1 = jnp.stack([jnp.concatenate([b_["m1_1"][1], b_["m2_1"][1], b_["m3_1"][1]], axis=1)
                     for b_ in blks])
    wc0 = jnp.stack([b_["c0"][0] for b_ in blks]); bc0 = jnp.stack([b_["c0"][1] for b_ in blks])
    wc1 = jnp.stack([b_["c1"][0] for b_ in blks]); bc1 = jnp.stack([b_["c1"][1] for b_ in blks])
    wc2 = jnp.stack([b_["c2"][0] for b_ in blks]); bc2 = jnp.stack([b_["c2"][1] for b_ in blks])

    we1, be1 = params["emb1"]
    we2, be2 = params["emb2"]
    lw1, lb1 = params["lin1"]
    lw2, lb2 = params["lin2"]

    return sgmp_fused(x, we1, be1, we2, be2,
                      raw, sel, offv, cfv, gcat, sT, deg,
                      wg0, bg0, wg1, bg1, wc0, bc0, wc1, bc1, wc2, bc2,
                      bT, lw1, lb1, lw2, lb2)


# =========================== main ===========================

if __name__ == "__main__":
    key = jax.random.PRNGKey(0)
    kx, kpos, kedge, kparam = jax.random.split(key, 4)

    x = jax.random.normal(kx, (N, C), jnp.float32)
    pos = 2.0 * jax.random.normal(kpos, (N, 3), jnp.float32)
    edge_index_3rd = jax.random.randint(kedge, (4, E), 0, N, dtype=jnp.int32)
    batch = jnp.concatenate([jnp.zeros(N // 2, jnp.int32),
                             jnp.ones(N - N // 2, jnp.int32)])

    params = init_params(kparam)

    fwd = jax.jit(sgmp_forward)
    out = fwd(params, x, pos, batch, edge_index_3rd)
    out = jax.block_until_ready(out)
    assert out.shape == (B, O), out.shape
    assert bool(jnp.all(jnp.isfinite(out)))
    print("KERNEL_OK")
</pallas_src>

<mosaic_0001>
module attributes {stable_mosaic.version = 11 : i64} {
  func.func @_sgmp_fused_kernel(%arg0: memref<16x8xf32, #tpu.memory_space<vmem>>, %arg1: memref<8x32xf32, #tpu.memory_space<vmem>>, %arg2: memref<1x32xf32, #tpu.memory_space<vmem>>, %arg3: memref<32x32xf32, #tpu.memory_space<vmem>>, %arg4: memref<1x32xf32, #tpu.memory_space<vmem>>, %arg5: memref<64x8xf32, #tpu.memory_space<vmem>>, %arg6: memref<8x72xf32, #tpu.memory_space<vmem>>, %arg7: memref<1x72xf32, #tpu.memory_space<vmem>>, %arg8: memref<1x72xf32, #tpu.memory_space<vmem>>, %arg9: memref<64x64xf32, #tpu.memory_space<vmem>>, %arg10: memref<16x64xf32, #tpu.memory_space<vmem>>, %arg11: memref<16x1xf32, #tpu.memory_space<vmem>>, %arg12: memref<3x72x96xf32, #tpu.memory_space<vmem>>, %arg13: memref<3x1x96xf32, #tpu.memory_space<vmem>>, %arg14: memref<3x96x96xf32, #tpu.memory_space<vmem>>, %arg15: memref<3x1x96xf32, #tpu.memory_space<vmem>>, %arg16: memref<3x224x128xf32, #tpu.memory_space<vmem>>, %arg17: memref<3x1x128xf32, #tpu.memory_space<vmem>>, %arg18: memref<3x128x64xf32, #tpu.memory_space<vmem>>, %arg19: memref<3x1x64xf32, #tpu.memory_space<vmem>>, %arg20: memref<3x64x32xf32, #tpu.memory_space<vmem>>, %arg21: memref<3x1x32xf32, #tpu.memory_space<vmem>>, %arg22: memref<2x16xf32, #tpu.memory_space<vmem>>, %arg23: memref<32x16xf32, #tpu.memory_space<vmem>>, %arg24: memref<1x16xf32, #tpu.memory_space<vmem>>, %arg25: memref<16x1xf32, #tpu.memory_space<vmem>>, %arg26: memref<1x1xf32, #tpu.memory_space<vmem>>, %arg27: memref<2x1xf32, #tpu.memory_space<vmem>>) attributes {dimension_semantics = [], scalar_prefetch = 0 : i64, scratch_operands = 0 : i64, tpu.core_type = #tpu.core_type<tc>} {
    %c0 = arith.constant 0 : index
    %c0_0 = arith.constant 0 : index
    %0 = vector.load %arg0[%c0, %c0_0] : memref<16x8xf32, #tpu.memory_space<vmem>>, vector<16x8xf32>
    %c0_1 = arith.constant 0 : index
    %c0_2 = arith.constant 0 : index
    %1 = vector.load %arg1[%c0_1, %c0_2] : memref<8x32xf32, #tpu.memory_space<vmem>>, vector<8x32xf32>
    %cst = arith.constant dense<0.000000e+00> : vector<16x32xf32>
    %2 = tpu.matmul %0, %1, %cst {dimension_numbers = #tpu.dot_dimension_numbers<[1], [0], [0], [1], [0, 0, 1, 1], [], []>} : vector<16x8xf32>, vector<8x32xf32>, vector<16x32xf32> -> vector<16x32xf32>
    %c0_3 = arith.constant 0 : index
    %c0_4 = arith.constant 0 : index
    %3 = vector.load %arg2[%c0_3, %c0_4] : memref<1x32xf32, #tpu.memory_space<vmem>>, vector<1x32xf32>
    %4 = vector.broadcast %3 : vector<1x32xf32> to vector<16x32xf32>
    %5 = arith.addf %2, %4 : vector<16x32xf32>
    %cst_5 = arith.constant 0.000000e+00 : f32
    %6 = vector.broadcast %cst_5 : f32 to vector<16x32xf32>
    %7 = arith.maximumf %5, %6 : vector<16x32xf32>
    %c0_6 = arith.constant 0 : index
    %c0_7 = arith.constant 0 : index
    %8 = vector.load %arg3[%c0_6, %c0_7] : memref<32x32xf32, #tpu.memory_space<vmem>>, vector<32x32xf32>
    %cst_8 = arith.constant dense<0.000000e+00> : vector<16x32xf32>
    %9 = tpu.matmul %7, %8, %cst_8 {dimension_numbers = #tpu.dot_dimension_numbers<[1], [0], [0], [1], [0, 0, 1, 1], [], []>} : vector<16x32xf32>, vector<32x32xf32>, vector<16x32xf32> -> vector<16x32xf32>
    %c0_9 = arith.constant 0 : index
    %c0_10 = arith.constant 0 : index
    %10 = vector.load %arg4[%c0_9, %c0_10] : memref<1x32xf32, #tpu.memory_space<vmem>>, vector<1x32xf32>
    %11 = vector.broadcast %10 : vector<1x32xf32> to vector<16x32xf32>
    %12 = arith.addf %9, %11 : vector<16x32xf32>
    %c0_11 = arith.constant 0 : index
    %c0_12 = arith.constant 0 : index
    %13 = vector.load %arg5[%c0_11, %c0_12] : memref<64x8xf32, #tpu.memory_space<vmem>>, vector<64x8xf32>
    %c0_13 = arith.constant 0 : index
    %c0_14 = arith.constant 0 : index
    %14 = vector.load %arg6[%c0_13, %c0_14] : memref<8x72xf32, #tpu.memory_space<vmem>>, vector<8x72xf32>
    %cst_15 = arith.constant dense<0.000000e+00> : vector<64x72xf32>
    %15 = tpu.matmul %13, %14, %cst_15 {dimension_numbers = #tpu.dot_dimension_numbers<[1], [0], [0], [1], [0, 0, 1, 1], [], []>} : vector<64x8xf32>, vector<8x72xf32>, vector<64x72xf32> -> vector<64x72xf32>
    %c0_16 = arith.constant 0 : index
    %c0_17 = arith.constant 0 : index
    %16 = vector.load %arg7[%c0_16, %c0_17] : memref<1x72xf32, #tpu.memory_space<vmem>>, vector<1x72xf32>
    %17 = vector.broadcast %16 : vector<1x72xf32> to vector<64x72xf32>
    %18 = arith.subf %15, %17 : vector<64x72xf32>
    %c0_18 = arith.constant 0 : index
    %c0_19 = arith.constant 0 : index
    %19 = vector.load %arg8[%c0_18, %c0_19] : memref<1x72xf32, #tpu.memory_space<vmem>>, vector<1x72xf32>
    %20 = vector.broadcast %19 : vector<1x72xf32> to vector<64x72xf32>
    %21 = arith.mulf %20, %18 : vector<64x72xf32>
    %22 = arith.mulf %21, %18 : vector<64x72xf32>
    %23 = math.exp %22 : vector<64x72xf32>
    %c0_20 = arith.constant 0 : index
    %c0_21 = arith.constant 0 : index
    %24 = vector.load %arg9[%c0_20, %c0_21] : memref<64x64xf32, #tpu.memory_space<vmem>>, vector<64x64xf32>
    %c0_22 = arith.constant 0 : index
    %c0_23 = arith.constant 0 : index
    %25 = vector.load %arg10[%c0_22, %c0_23] : memref<16x64xf32, #tpu.memory_space<vmem>>, vector<16x64xf32>
    %c0_24 = arith.constant 0 : index
    %c0_25 = arith.constant 0 : index
    %26 = vector.load %arg11[%c0_24, %c0_25] : memref<16x1xf32, #tpu.memory_space<vmem>>, vector<16x1xf32>
    %c0_26 = arith.constant 0 : index
    %c0_27 = arith.constant 0 : index
    %c0_28 = arith.constant 0 : index
    %27 = vector.load %arg16[%c0_26, %c0_27, %c0_28] : memref<3x224x128xf32, #tpu.memory_space<vmem>>, vector<1x224x128xf32>
    %28 = vector.shape_cast %27 : vector<1x224x128xf32> to vector<224x128xf32>
    %c0_29 = arith.constant 0 : index
    %c0_30 = arith.constant 0 : index
    %c0_31 = arith.constant 0 : index
    %29 = vector.load %arg12[%c0_29, %c0_30, %c0_31] : memref<3x72x96xf32, #tpu.memory_space<vmem>>, vector<1x72x96xf32>
    %30 = vector.shape_cast %29 : vector<1x72x96xf32> to vector<72x96xf32>
    %cst_32 = arith.constant dense<0.000000e+00> : vector<64x96xf32>
    %31 = tpu.matmul %23, %30, %cst_32 {dimension_numbers = #tpu.dot_dimension_numbers<[1], [0], [0], [1], [0, 0, 1, 1], [], []>} : vector<64x72xf32>, vector<72x96xf32>, vector<64x96xf32> -> vector<64x96xf32>
    %c0_33 = arith.constant 0 : index
    %c0_34 = arith.constant 0 : index
    %c0_35 = arith.constant 0 : index
    %32 = vector.load %arg13[%c0_33, %c0_34, %c0_35] : memref<3x1x96xf32, #tpu.memory_space<vmem>>, vector<1x1x96xf32>
    %33 = vector.shape_cast %32 : vector<1x1x96xf32> to vector<1x96xf32>
    %34 = vector.broadcast %33 : vector<1x96xf32> to vector<64x96xf32>
    %35 = arith.addf %31, %34 : vector<64x96xf32>
    %cst_36 = arith.constant 0.000000e+00 : f32
    %36 = vector.broadcast %cst_36 : f32 to vector<64x96xf32>
    %37 = arith.maximumf %35, %36 : vector<64x96xf32>
    %c0_37 = arith.constant 0 : index
    %c0_38 = arith.constant 0 : index
    %c0_39 = arith.constant 0 : index
    %38 = vector.load %arg14[%c0_37, %c0_38, %c0_39] : memref<3x96x96xf32, #tpu.memory_space<vmem>>, vector<1x96x96xf32>
    %39 = vector.shape_cast %38 : vector<1x96x96xf32> to vector<96x96xf32>
    %cst_40 = arith.constant dense<0.000000e+00> : vector<64x96xf32>
    %40 = tpu.matmul %37, %39, %cst_40 {dimension_numbers = #tpu.dot_dimension_numbers<[1], [0], [0], [1], [0, 0, 1, 1], [], []>} : vector<64x96xf32>, vector<96x96xf32>, vector<64x96xf32> -> vector<64x96xf32>
    %c0_41 = arith.constant 0 : index
    %c0_42 = arith.constant 0 : index
    %c0_43 = arith.constant 0 : index
    %41 = vector.load %arg15[%c0_41, %c0_42, %c0_43] : memref<3x1x96xf32, #tpu.memory_space<vmem>>, vector<1x1x96xf32>
    %42 = vector.shape_cast %41 : vector<1x1x96xf32> to vector<1x96xf32>
    %43 = vector.broadcast %42 : vector<1x96xf32> to vector<64x96xf32>
    %44 = arith.addf %40, %43 : vector<64x96xf32>
    %45 = vector.extract_strided_slice %28 {offsets = [0, 0], sizes = [32, 128], strides = [1, 1]} : vector<224x128xf32> to vector<32x128xf32>
    %cst_44 = arith.constant dense<0.000000e+00> : vector<16x128xf32>
    %46 = tpu.matmul %12, %45, %cst_44 {dimension_numbers = #tpu.dot_dimension_numbers<[1], [0], [0], [1], [0, 0, 1, 1], [], []>} : vector<16x32xf32>, vector<32x128xf32>, vector<16x128xf32> -> vector<16x128xf32>
    %47 = vector.extract_strided_slice %28 {offsets = [32, 0], sizes = [32, 128], strides = [1, 1]} : vector<224x128xf32> to vector<32x128xf32>
    %cst_45 = arith.constant dense<0.000000e+00> : vector<16x128xf32>
    %48 = tpu.matmul %12, %47, %cst_45 {dimension_numbers = #tpu.dot_dimension_numbers<[1], [0], [0], [1], [0, 0, 1, 1], [], []>} : vector<16x32xf32>, vector<32x128xf32>, vector<16x128xf32> -> vector<16x128xf32>
    %49 = vector.extract_strided_slice %28 {offsets = [64, 0], sizes = [32, 128], strides = [1, 1]} : vector<224x128xf32> to vector<32x128xf32>
    %cst_46 = arith.constant dense<0.000000e+00> : vector<16x128xf32>
    %50 = tpu.matmul %12, %49, %cst_46 {dimension_numbers = #tpu.dot_dimension_numbers<[1], [0], [0], [1], [0, 0, 1, 1], [], []>} : vector<16x32xf32>, vector<32x128xf32>, vector<16x128xf32> -> vector<16x128xf32>
    %51 = vector.extract_strided_slice %28 {offsets = [96, 0], sizes = [32, 128], strides = [1, 1]} : vector<224x128xf32> to vector<32x128xf32>
    %cst_47 = arith.constant dense<0.000000e+00> : vector<16x128xf32>
    %52 = tpu.matmul %12, %51, %cst_47 {dimension_numbers = #tpu.dot_dimension_numbers<[1], [0], [0], [1], [0, 0, 1, 1], [], []>} : vector<16x32xf32>, vector<32x128xf32>, vector<16x128xf32> -> vector<16x128xf32>
    %53 = tpu.concatenate %46, %48, %50, %52 in 0 : vector<16x128xf32>, vector<16x128xf32>, vector<16x128xf32>, vector<16x128xf32> -> vector<64x128xf32>
    %cst_48 = arith.constant dense<0.000000e+00> : vector<64x128xf32>
    %54 = tpu.matmul %24, %53, %cst_48 {dimension_numbers = #tpu.dot_dimension_numbers<[1], [0], [0], [1], [0, 0, 1, 1], [], []>} : vector<64x64xf32>, vector<64x128xf32>, vector<64x128xf32> -> vector<64x128xf32>
    %55 = vector.extract_strided_slice %28 {offsets = [128, 0], sizes = [96, 128], strides = [1, 1]} : vector<224x128xf32> to vector<96x128xf32>
    %cst_49 = arith.constant dense<0.000000e+00> : vector<64x128xf32>
    %56 = tpu.matmul %44, %55, %cst_49 {dimension_numbers = #tpu.dot_dimension_numbers<[1], [0], [0], [1], [0, 0, 1, 1], [], []>} : vector<64x96xf32>, vector<96x128xf32>, vector<64x128xf32> -> vector<64x128xf32>
    %57 = arith.addf %54, %56 : vector<64x128xf32>
    %c0_50 = arith.constant 0 : index
    %c0_51 = arith.constant 0 : index
    %c0_52 = arith.constant 0 : index
    %58 = vector.load %arg17[%c0_50, %c0_51, %c0_52] : memref<3x1x128xf32, #tpu.memory_space<vmem>>, vector<1x1x128xf32>
    %59 = vector.shape_cast %58 : vector<1x1x128xf32> to vector<1x128xf32>
    %60 = vector.broadcast %59 : vector<1x128xf32> to vector<64x128xf32>
    %61 = arith.addf %57, %60 : vector<64x128xf32>
    %cst_53 = arith.constant 0.000000e+00 : f32
    %62 = vector.broadcast %cst_53 : f32 to vector<64x128xf32>
    %63 = arith.maximumf %61, %62 : vector<64x128xf32>
    %c0_54 = arith.constant 0 : index
    %c0_55 = arith.constant 0 : index
    %c0_56 = arith.constant 0 : index
    %64 = vector.load %arg18[%c0_54, %c0_55, %c0_56] : memref<3x128x64xf32, #tpu.memory_space<vmem>>, vector<1x128x64xf32>
    %65 = vector.shape_cast %64 : vector<1x128x64xf32> to vector<128x64xf32>
    %cst_57 = arith.constant dense<0.000000e+00> : vector<64x64xf32>
    %66 = tpu.matmul %63, %65, %cst_57 {dimension_numbers = #tpu.dot_dimension_numbers<[1], [0], [0], [1], [0, 0, 1, 1], [], []>} : vector<64x128xf32>, vector<128x64xf32>, vector<64x64xf32> -> vector<64x64xf32>
    %c0_58 = arith.constant 0 : index
    %c0_59 = arith.constant 0 : index
    %c0_60 = arith.constant 0 : index
    %67 = vector.load %arg19[%c0_58, %c0_59, %c0_60] : memref<3x1x64xf32, #tpu.memory_space<vmem>>, vector<1x1x64xf32>
    %68 = vector.shape_cast %67 : vector<1x1x64xf32> to vector<1x64xf32>
    %69 = vector.broadcast %68 : vector<1x64xf32> to vector<64x64xf32>
    %70 = arith.addf %66, %69 : vector<64x64xf32>
    %cst_61 = arith.constant 0.000000e+00 : f32
    %71 = vector.broadcast %cst_61 : f32 to vector<64x64xf32>
    %72 = arith.maximumf %70, %71 : vector<64x64xf32>
    %cst_62 = arith.constant dense<0.000000e+00> : vector<16x64xf32>
    %73 = tpu.matmul %25, %72, %cst_62 {dimension_numbers = #tpu.dot_dimension_numbers<[1], [0], [0], [1], [0, 0, 1, 1], [], []>} : vector<16x64xf32>, vector<64x64xf32>, vector<16x64xf32> -> vector<16x64xf32>
    %c0_63 = arith.constant 0 : index
    %c0_64 = arith.constant 0 : index
    %c0_65 = arith.constant 0 : index
    %74 = vector.load %arg20[%c0_63, %c0_64, %c0_65] : memref<3x64x32xf32, #tpu.memory_space<vmem>>, vector<1x64x32xf32>
    %75 = vector.shape_cast %74 : vector<1x64x32xf32> to vector<64x32xf32>
    %cst_66 = arith.constant dense<0.000000e+00> : vector<16x32xf32>
    %76 = tpu.matmul %73, %75, %cst_66 {dimension_numbers = #tpu.dot_dimension_numbers<[1], [0], [0], [1], [0, 0, 1, 1], [], []>} : vector<16x64xf32>, vector<64x32xf32>, vector<16x32xf32> -> vector<16x32xf32>
    %77 = arith.addf %12, %76 : vector<16x32xf32>
    %c0_67 = arith.constant 0 : index
    %c0_68 = arith.constant 0 : index
    %c0_69 = arith.constant 0 : index
    %78 = vector.load %arg21[%c0_67, %c0_68, %c0_69] : memref<3x1x32xf32, #tpu.memory_space<vmem>>, vector<1x1x32xf32>
    %79 = vector.shape_cast %78 : vector<1x1x32xf32> to vector<1x32xf32>
    %80 = vector.broadcast %26 : vector<16x1xf32> to vector<16x32xf32>
    %81 = vector.broadcast %79 : vector<1x32xf32> to vector<16x32xf32>
    %82 = arith.mulf %80, %81 : vector<16x32xf32>
    %83 = arith.addf %77, %82 : vector<16x32xf32>
    %c1 = arith.constant 1 : index
    %c0_70 = arith.constant 0 : index
    %c0_71 = arith.constant 0 : index
    %84 = vector.load %arg16[%c1, %c0_70, %c0_71] : memref<3x224x128xf32, #tpu.memory_space<vmem>>, vector<1x224x128xf32>
    %85 = vector.shape_cast %84 : vector<1x224x128xf32> to vector<224x128xf32>
    %c1_72 = arith.constant 1 : index
    %c0_73 = arith.constant 0 : index
    %c0_74 = arith.constant 0 : index
    %86 = vector.load %arg12[%c1_72, %c0_73, %c0_74] : memref<3x72x96xf32, #tpu.memory_space<vmem>>, vector<1x72x96xf32>
    %87 = vector.shape_cast %86 : vector<1x72x96xf32> to vector<72x96xf32>
    %cst_75 = arith.constant dense<0.000000e+00> : vector<64x96xf32>
    %88 = tpu.matmul %23, %87, %cst_75 {dimension_numbers = #tpu.dot_dimension_numbers<[1], [0], [0], [1], [0, 0, 1, 1], [], []>} : vector<64x72xf32>, vector<72x96xf32>, vector<64x96xf32> -> vector<64x96xf32>
    %c1_76 = arith.constant 1 : index
    %c0_77 = arith.constant 0 : index
    %c0_78 = arith.constant 0 : index
    %89 = vector.load %arg13[%c1_76, %c0_77, %c0_78] : memref<3x1x96xf32, #tpu.memory_space<vmem>>, vector<1x1x96xf32>
    %90 = vector.shape_cast %89 : vector<1x1x96xf32> to vector<1x96xf32>
    %91 = vector.broadcast %90 : vector<1x96xf32> to vector<64x96xf32>
    %92 = arith.addf %88, %91 : vector<64x96xf32>
    %cst_79 = arith.constant 0.000000e+00 : f32
    %93 = vector.broadcast %cst_79 : f32 to vector<64x96xf32>
    %94 = arith.maximumf %92, %93 : vector<64x96xf32>
    %c1_80 = arith.constant 1 : index
    %c0_81 = arith.constant 0 : index
    %c0_82 = arith.constant 0 : index
    %95 = vector.load %arg14[%c1_80, %c0_81, %c0_82] : memref<3x96x96xf32, #tpu.memory_space<vmem>>, vector<1x96x96xf32>
    %96 = vector.shape_cast %95 : vector<1x96x96xf32> to vector<96x96xf32>
    %cst_83 = arith.constant dense<0.000000e+00> : vector<64x96xf32>
    %97 = tpu.matmul %94, %96, %cst_83 {dimension_numbers = #tpu.dot_dimension_numbers<[1], [0], [0], [1], [0, 0, 1, 1], [], []>} : vector<64x96xf32>, vector<96x96xf32>, vector<64x96xf32> -> vector<64x96xf32>
    %c1_84 = arith.constant 1 : index
    %c0_85 = arith.constant 0 : index
    %c0_86 = arith.constant 0 : index
    %98 = vector.load %arg15[%c1_84, %c0_85, %c0_86] : memref<3x1x96xf32, #tpu.memory_space<vmem>>, vector<1x1x96xf32>
    %99 = vector.shape_cast %98 : vector<1x1x96xf32> to vector<1x96xf32>
    %100 = vector.broadcast %99 : vector<1x96xf32> to vector<64x96xf32>
    %101 = arith.addf %97, %100 : vector<64x96xf32>
    %102 = vector.extract_strided_slice %85 {offsets = [0, 0], sizes = [32, 128], strides = [1, 1]} : vector<224x128xf32> to vector<32x128xf32>
    %cst_87 = arith.constant dense<0.000000e+00> : vector<16x128xf32>
    %103 = tpu.matmul %83, %102, %cst_87 {dimension_numbers = #tpu.dot_dimension_numbers<[1], [0], [0], [1], [0, 0, 1, 1], [], []>} : vector<16x32xf32>, vector<32x128xf32>, vector<16x128xf32> -> vector<16x128xf32>
    %104 = vector.extract_strided_slice %85 {offsets = [32, 0], sizes = [32, 128], strides = [1, 1]} : vector<224x128xf32> to vector<32x128xf32>
    %cst_88 = arith.constant dense<0.000000e+00> : vector<16x128xf32>
    %105 = tpu.matmul %83, %104, %cst_88 {dimension_numbers = #tpu.dot_dimension_numbers<[1], [0], [0], [1], [0, 0, 1, 1], [], []>} : vector<16x32xf32>, vector<32x128xf32>, vector<16x128xf32> -> vector<16x128xf32>
    %106 = vector.extract_strided_slice %85 {offsets = [64, 0], sizes = [32, 128], strides = [1, 1]} : vector<224x128xf32> to vector<32x128xf32>
    %cst_89 = arith.constant dense<0.000000e+00> : vector<16x128xf32>
    %107 = tpu.matmul %83, %106, %cst_89 {dimension_numbers = #tpu.dot_dimension_numbers<[1], [0], [0], [1], [0, 0, 1, 1], [], []>} : vector<16x32xf32>, vector<32x128xf32>, vector<16x128xf32> -> vector<16x128xf32>
    %108 = vector.extract_strided_slice %85 {offsets = [96, 0], sizes = [32, 128], strides = [1, 1]} : vector<224x128xf32> to vector<32x128xf32>
    %cst_90 = arith.constant dense<0.000000e+00> : vector<16x128xf32>
    %109 = tpu.matmul %83, %108, %cst_90 {dimension_numbers = #tpu.dot_dimension_numbers<[1], [0], [0], [1], [0, 0, 1, 1], [], []>} : vector<16x32xf32>, vector<32x128xf32>, vector<16x128xf32> -> vector<16x128xf32>
    %110 = tpu.concatenate %103, %105, %107, %109 in 0 : vector<16x128xf32>, vector<16x128xf32>, vector<16x128xf32>, vector<16x128xf32> -> vector<64x128xf32>
    %cst_91 = arith.constant dense<0.000000e+00> : vector<64x128xf32>
    %111 = tpu.matmul %24, %110, %cst_91 {dimension_numbers = #tpu.dot_dimension_numbers<[1], [0], [0], [1], [0, 0, 1, 1], [], []>} : vector<64x64xf32>, vector<64x128xf32>, vector<64x128xf32> -> vector<64x128xf32>
    %112 = vector.extract_strided_slice %85 {offsets = [128, 0], sizes = [96, 128], strides = [1, 1]} : vector<224x128xf32> to vector<96x128xf32>
    %cst_92 = arith.constant dense<0.000000e+00> : vector<64x128xf32>
    %113 = tpu.matmul %101, %112, %cst_92 {dimension_numbers = #tpu.dot_dimension_numbers<[1], [0], [0], [1], [0, 0, 1, 1], [], []>} : vector<64x96xf32>, vector<96x128xf32>, vector<64x128xf32> -> vector<64x128xf32>
    %114 = arith.addf %111, %113 : vector<64x128xf32>
    %c1_93 = arith.constant 1 : index
    %c0_94 = arith.constant 0 : index
    %c0_95 = arith.constant 0 : index
    %115 = vector.load %arg17[%c1_93, %c0_94, %c0_95] : memref<3x1x128xf32, #tpu.memory_space<vmem>>, vector<1x1x128xf32>
    %116 = vector.shape_cast %115 : vector<1x1x128xf32> to vector<1x128xf32>
    %117 = vector.broadcast %116 : vector<1x128xf32> to vector<64x128xf32>
    %118 = arith.addf %114, %117 : vector<64x128xf32>
    %cst_96 = arith.constant 0.000000e+00 : f32
    %119 = vector.broadcast %cst_96 : f32 to vector<64x128xf32>
    %120 = arith.maximumf %118, %119 : vector<64x128xf32>
    %c1_97 = arith.constant 1 : index
    %c0_98 = arith.constant 0 : index
    %c0_99 = arith.constant 0 : index
    %121 = vector.load %arg18[%c1_97, %c0_98, %c0_99] : memref<3x128x64xf32, #tpu.memory_space<vmem>>, vector<1x128x64xf32>
    %122 = vector.shape_cast %121 : vector<1x128x64xf32> to vector<128x64xf32>
    %cst_100 = arith.constant dense<0.000000e+00> : vector<64x64xf32>
    %123 = tpu.matmul %120, %122, %cst_100 {dimension_numbers = #tpu.dot_dimension_numbers<[1], [0], [0], [1], [0, 0, 1, 1], [], []>} : vector<64x128xf32>, vector<128x64xf32>, vector<64x64xf32> -> vector<64x64xf32>
    %c1_101 = arith.constant 1 : index
    %c0_102 = arith.constant 0 : index
    %c0_103 = arith.constant 0 : index
    %124 = vector.load %arg19[%c1_101, %c0_102, %c0_103] : memref<3x1x64xf32, #tpu.memory_space<vmem>>, vector<1x1x64xf32>
    %125 = vector.shape_cast %124 : vector<1x1x64xf32> to vector<1x64xf32>
    %126 = vector.broadcast %125 : vector<1x64xf32> to vector<64x64xf32>
    %127 = arith.addf %123, %126 : vector<64x64xf32>
    %cst_104 = arith.constant 0.000000e+00 : f32
    %128 = vector.broadcast %cst_104 : f32 to vector<64x64xf32>
    %129 = arith.maximumf %127, %128 : vector<64x64xf32>
    %cst_105 = arith.constant dense<0.000000e+00> : vector<16x64xf32>
    %130 = tpu.matmul %25, %129, %cst_105 {dimension_numbers = #tpu.dot_dimension_numbers<[1], [0], [0], [1], [0, 0, 1, 1], [], []>} : vector<16x64xf32>, vector<64x64xf32>, vector<16x64xf32> -> vector<16x64xf32>
    %c1_106 = arith.constant 1 : index
    %c0_107 = arith.constant 0 : index
    %c0_108 = arith.constant 0 : index
    %131 = vector.load %arg20[%c1_106, %c0_107, %c0_108] : memref<3x64x32xf32, #tpu.memory_space<vmem>>, vector<1x64x32xf32>
    %132 = vector.shape_cast %131 : vector<1x64x32xf32> to vector<64x32xf32>
    %cst_109 = arith.constant dense<0.000000e+00> : vector<16x32xf32>
    %133 = tpu.matmul %130, %132, %cst_109 {dimension_numbers = #tpu.dot_dimension_numbers<[1], [0], [0], [1], [0, 0, 1, 1], [], []>} : vector<16x64xf32>, vector<64x32xf32>, vector<16x32xf32> -> vector<16x32xf32>
    %134 = arith.addf %83, %133 : vector<16x32xf32>
    %c1_110 = arith.constant 1 : index
    %c0_111 = arith.constant 0 : index
    %c0_112 = arith.constant 0 : index
    %135 = vector.load %arg21[%c1_110, %c0_111, %c0_112] : memref<3x1x32xf32, #tpu.memory_space<vmem>>, vector<1x1x32xf32>
    %136 = vector.shape_cast %135 : vector<1x1x32xf32> to vector<1x32xf32>
    %137 = vector.broadcast %26 : vector<16x1xf32> to vector<16x32xf32>
    %138 = vector.broadcast %136 : vector<1x32xf32> to vector<16x32xf32>
    %139 = arith.mulf %137, %138 : vector<16x32xf32>
    %140 = arith.addf %134, %139 : vector<16x32xf32>
    %c2 = arith.constant 2 : index
    %c0_113 = arith.constant 0 : index
    %c0_114 = arith.constant 0 : index
    %141 = vector.load %arg16[%c2, %c0_113, %c0_114] : memref<3x224x128xf32, #tpu.memory_space<vmem>>, vector<1x224x128xf32>
    %142 = vector.shape_cast %141 : vector<1x224x128xf32> to vector<224x128xf32>
    %c2_115 = arith.constant 2 : index
    %c0_116 = arith.constant 0 : index
    %c0_117 = arith.constant 0 : index
    %143 = vector.load %arg12[%c2_115, %c0_116, %c0_117] : memref<3x72x96xf32, #tpu.memory_space<vmem>>, vector<1x72x96xf32>
    %144 = vector.shape_cast %143 : vector<1x72x96xf32> to vector<72x96xf32>
    %cst_118 = arith.constant dense<0.000000e+00> : vector<64x96xf32>
    %145 = tpu.matmul %23, %144, %cst_118 {dimension_numbers = #tpu.dot_dimension_numbers<[1], [0], [0], [1], [0, 0, 1, 1], [], []>} : vector<64x72xf32>, vector<72x96xf32>, vector<64x96xf32> -> vector<64x96xf32>
    %c2_119 = arith.constant 2 : index
    %c0_120 = arith.constant 0 : index
    %c0_121 = arith.constant 0 : index
    %146 = vector.load %arg13[%c2_119, %c0_120, %c0_121] : memref<3x1x96xf32, #tpu.memory_space<vmem>>, vector<1x1x96xf32>
    %147 = vector.shape_cast %146 : vector<1x1x96xf32> to vector<1x96xf32>
    %148 = vector.broadcast %147 : vector<1x96xf32> to vector<64x96xf32>
    %149 = arith.addf %145, %148 : vector<64x96xf32>
    %cst_122 = arith.constant 0.000000e+00 : f32
    %150 = vector.broadcast %cst_122 : f32 to vector<64x96xf32>
    %151 = arith.maximumf %149, %150 : vector<64x96xf32>
    %c2_123 = arith.constant 2 : index
    %c0_124 = arith.constant 0 : index
    %c0_125 = arith.constant 0 : index
    %152 = vector.load %arg14[%c2_123, %c0_124, %c0_125] : memref<3x96x96xf32, #tpu.memory_space<vmem>>, vector<1x96x96xf32>
    %153 = vector.shape_cast %152 : vector<1x96x96xf32> to vector<96x96xf32>
    %cst_126 = arith.constant dense<0.000000e+00> : vector<64x96xf32>
    %154 = tpu.matmul %151, %153, %cst_126 {dimension_numbers = #tpu.dot_dimension_numbers<[1], [0], [0], [1], [0, 0, 1, 1], [], []>} : vector<64x96xf32>, vector<96x96xf32>, vector<64x96xf32> -> vector<64x96xf32>
    %c2_127 = arith.constant 2 : index
    %c0_128 = arith.constant 0 : index
    %c0_129 = arith.constant 0 : index
    %155 = vector.load %arg15[%c2_127, %c0_128, %c0_129] : memref<3x1x96xf32, #tpu.memory_space<vmem>>, vector<1x1x96xf32>
    %156 = vector.shape_cast %155 : vector<1x1x96xf32> to vector<1x96xf32>
    %157 = vector.broadcast %156 : vector<1x96xf32> to vector<64x96xf32>
    %158 = arith.addf %154, %157 : vector<64x96xf32>
    %159 = vector.extract_strided_slice %142 {offsets = [0, 0], sizes = [32, 128], strides = [1, 1]} : vector<224x128xf32> to vector<32x128xf32>
    %cst_130 = arith.constant dense<0.000000e+00> : vector<16x128xf32>
    %160 = tpu.matmul %140, %159, %cst_130 {dimension_numbers = #tpu.dot_dimension_numbers<[1], [0], [0], [1], [0, 0, 1, 1], [], []>} : vector<16x32xf32>, vector<32x128xf32>, vector<16x128xf32> -> vector<16x128xf32>
    %161 = vector.extract_strided_slice %142 {offsets = [32, 0], sizes = [32, 128], strides = [1, 1]} : vector<224x128xf32> to vector<32x128xf32>
    %cst_131 = arith.constant dense<0.000000e+00> : vector<16x128xf32>
    %162 = tpu.matmul %140, %161, %cst_131 {dimension_numbers = #tpu.dot_dimension_numbers<[1], [0], [0], [1], [0, 0, 1, 1], [], []>} : vector<16x32xf32>, vector<32x128xf32>, vector<16x128xf32> -> vector<16x128xf32>
    %163 = vector.extract_strided_slice %142 {offsets = [64, 0], sizes = [32, 128], strides = [1, 1]} : vector<224x128xf32> to vector<32x128xf32>
    %cst_132 = arith.constant dense<0.000000e+00> : vector<16x128xf32>
    %164 = tpu.matmul %140, %163, %cst_132 {dimension_numbers = #tpu.dot_dimension_numbers<[1], [0], [0], [1], [0, 0, 1, 1], [], []>} : vector<16x32xf32>, vector<32x128xf32>, vector<16x128xf32> -> vector<16x128xf32>
    %165 = vector.extract_strided_slice %142 {offsets = [96, 0], sizes = [32, 128], strides = [1, 1]} : vector<224x128xf32> to vector<32x128xf32>
    %cst_133 = arith.constant dense<0.000000e+00> : vector<16x128xf32>
    %166 = tpu.matmul %140, %165, %cst_133 {dimension_numbers = #tpu.dot_dimension_numbers<[1], [0], [0], [1], [0, 0, 1, 1], [], []>} : vector<16x32xf32>, vector<32x128xf32>, vector<16x128xf32> -> vector<16x128xf32>
    %167 = tpu.concatenate %160, %162, %164, %166 in 0 : vector<16x128xf32>, vector<16x128xf32>, vector<16x128xf32>, vector<16x128xf32> -> vector<64x128xf32>
    %cst_134 = arith.constant dense<0.000000e+00> : vector<64x128xf32>
    %168 = tpu.matmul %24, %167, %cst_134 {dimension_numbers = #tpu.dot_dimension_numbers<[1], [0], [0], [1], [0, 0, 1, 1], [], []>} : vector<64x64xf32>, vector<64x128xf32>, vector<64x128xf32> -> vector<64x128xf32>
    %169 = vector.extract_strided_slice %142 {offsets = [128, 0], sizes = [96, 128], strides = [1, 1]} : vector<224x128xf32> to vector<96x128xf32>
    %cst_135 = arith.constant dense<0.000000e+00> : vector<64x128xf32>
    %170 = tpu.matmul %158, %169, %cst_135 {dimension_numbers = #tpu.dot_dimension_numbers<[1], [0], [0], [1], [0, 0, 1, 1], [], []>} : vector<64x96xf32>, vector<96x128xf32>, vector<64x128xf32> -> vector<64x128xf32>
    %171 = arith.addf %168, %170 : vector<64x128xf32>
    %c2_136 = arith.constant 2 : index
    %c0_137 = arith.constant 0 : index
    %c0_138 = arith.constant 0 : index
    %172 = vector.load %arg17[%c2_136, %c0_137, %c0_138] : memref<3x1x128xf32, #tpu.memory_space<vmem>>, vector<1x1x128xf32>
    %173 = vector.shape_cast %172 : vector<1x1x128xf32> to vector<1x128xf32>
    %174 = vector.broadcast %173 : vector<1x128xf32> to vector<64x128xf32>
    %175 = arith.addf %171, %174 : vector<64x128xf32>
    %cst_139 = arith.constant 0.000000e+00 : f32
    %176 = vector.broadcast %cst_139 : f32 to vector<64x128xf32>
    %177 = arith.maximumf %175, %176 : vector<64x128xf32>
    %c2_140 = arith.constant 2 : index
    %c0_141 = arith.constant 0 : index
    %c0_142 = arith.constant 0 : index
    %178 = vector.load %arg18[%c2_140, %c0_141, %c0_142] : memref<3x128x64xf32, #tpu.memory_space<vmem>>, vector<1x128x64xf32>
    %179 = vector.shape_cast %178 : vector<1x128x64xf32> to vector<128x64xf32>
    %cst_143 = arith.constant dense<0.000000e+00> : vector<64x64xf32>
    %180 = tpu.matmul %177, %179, %cst_143 {dimension_numbers = #tpu.dot_dimension_numbers<[1], [0], [0], [1], [0, 0, 1, 1], [], []>} : vector<64x128xf32>, vector<128x64xf32>, vector<64x64xf32> -> vector<64x64xf32>
    %c2_144 = arith.constant 2 : index
    %c0_145 = arith.constant 0 : index
    %c0_146 = arith.constant 0 : index
    %181 = vector.load %arg19[%c2_144, %c0_145, %c0_146] : memref<3x1x64xf32, #tpu.memory_space<vmem>>, vector<1x1x64xf32>
    %182 = vector.shape_cast %181 : vector<1x1x64xf32> to vector<1x64xf32>
    %183 = vector.broadcast %182 : vector<1x64xf32> to vector<64x64xf32>
    %184 = arith.addf %180, %183 : vector<64x64xf32>
    %cst_147 = arith.constant 0.000000e+00 : f32
    %185 = vector.broadcast %cst_147 : f32 to vector<64x64xf32>
    %186 = arith.maximumf %184, %185 : vector<64x64xf32>
    %cst_148 = arith.constant dense<0.000000e+00> : vector<16x64xf32>
    %187 = tpu.matmul %25, %186, %cst_148 {dimension_numbers = #tpu.dot_dimension_numbers<[1], [0], [0], [1], [0, 0, 1, 1], [], []>} : vector<16x64xf32>, vector<64x64xf32>, vector<16x64xf32> -> vector<16x64xf32>
    %c2_149 = arith.constant 2 : index
    %c0_150 = arith.constant 0 : index
    %c0_151 = arith.constant 0 : index
    %188 = vector.load %arg20[%c2_149, %c0_150, %c0_151] : memref<3x64x32xf32, #tpu.memory_space<vmem>>, vector<1x64x32xf32>
    %189 = vector.shape_cast %188 : vector<1x64x32xf32> to vector<64x32xf32>
    %cst_152 = arith.constant dense<0.000000e+00> : vector<16x32xf32>
    %190 = tpu.matmul %187, %189, %cst_152 {dimension_numbers = #tpu.dot_dimension_numbers<[1], [0], [0], [1], [0, 0, 1, 1], [], []>} : vector<16x64xf32>, vector<64x32xf32>, vector<16x32xf32> -> vector<16x32xf32>
    %191 = arith.addf %140, %190 : vector<16x32xf32>
    %c2_153 = arith.constant 2 : index
    %c0_154 = arith.constant 0 : index
    %c0_155 = arith.constant 0 : index
    %192 = vector.load %arg21[%c2_153, %c0_154, %c0_155] : memref<3x1x32xf32, #tpu.memory_space<vmem>>, vector<1x1x32xf32>
    %193 = vector.shape_cast %192 : vector<1x1x32xf32> to vector<1x32xf32>
    %194 = vector.broadcast %26 : vector<16x1xf32> to vector<16x32xf32>
    %195 = vector.broadcast %193 : vector<1x32xf32> to vector<16x32xf32>
    %196 = arith.mulf %194, %195 : vector<16x32xf32>
    %197 = arith.addf %191, %196 : vector<16x32xf32>
    %c0_156 = arith.constant 0 : index
    %c0_157 = arith.constant 0 : index
    %198 = vector.load %arg22[%c0_156, %c0_157] : memref<2x16xf32, #tpu.memory_space<vmem>>, vector<2x16xf32>
    %cst_158 = arith.constant dense<0.000000e+00> : vector<2x32xf32>
    %199 = tpu.matmul %198, %197, %cst_158 {dimension_numbers = #tpu.dot_dimension_numbers<[1], [0], [0], [1], [0, 0, 1, 1], [], []>} : vector<2x16xf32>, vector<16x32xf32>, vector<2x32xf32> -> vector<2x32xf32>
    %c0_159 = arith.constant 0 : index
    %c0_160 = arith.constant 0 : index
    %200 = vector.load %arg23[%c0_159, %c0_160] : memref<32x16xf32, #tpu.memory_space<vmem>>, vector<32x16xf32>
    %cst_161 = arith.constant dense<0.000000e+00> : vector<2x16xf32>
    %201 = tpu.matmul %199, %200, %cst_161 {dimension_numbers = #tpu.dot_dimension_numbers<[1], [0], [0], [1], [0, 0, 1, 1], [], []>} : vector<2x32xf32>, vector<32x16xf32>, vector<2x16xf32> -> vector<2x16xf32>
    %c0_162 = arith.constant 0 : index
    %c0_163 = arith.constant 0 : index
    %202 = vector.load %arg24[%c0_162, %c0_163] : memref<1x16xf32, #tpu.memory_space<vmem>>, vector<1x16xf32>
    %203 = vector.broadcast %202 : vector<1x16xf32> to vector<2x16xf32>
    %204 = arith.addf %201, %203 : vector<2x16xf32>
    %cst_164 = arith.constant 0.000000e+00 : f32
    %205 = vector.broadcast %cst_164 : f32 to vector<2x16xf32>
    %206 = arith.maximumf %204, %205 : vector<2x16xf32>
    %c0_165 = arith.constant 0 : index
    %c0_166 = arith.constant 0 : index
    %207 = vector.load %arg25[%c0_165, %c0_166] : memref<16x1xf32, #tpu.memory_space<vmem>>, vector<16x1xf32>
    %cst_167 = arith.constant dense<0.000000e+00> : vector<2x1xf32>
    %208 = tpu.matmul %206, %207, %cst_167 {dimension_numbers = #tpu.dot_dimension_numbers<[1], [0], [0], [1], [0, 0, 1, 1], [], []>} : vector<2x16xf32>, vector<16x1xf32>, vector<2x1xf32> -> vector<2x1xf32>
    %c0_168 = arith.constant 0 : index
    %c0_169 = arith.constant 0 : index
    %209 = vector.load %arg26[%c0_168, %c0_169] : memref<1x1xf32, #tpu.memory_space<vmem>>, vector<1x1xf32>
    %210 = vector.broadcast %209 : vector<1x1xf32> to vector<2x1xf32>
    %211 = arith.addf %208, %210 : vector<2x1xf32>
    %c0_170 = arith.constant 0 : index
    %c0_171 = arith.constant 0 : index
    %212 = vector.load %arg27[%c0_170, %c0_171] : memref<2x1xf32, #tpu.memory_space<vmem>>, vector<2x1xf32>
    tpu.vector_store %arg27[%c0_170, %c0_171], %211 {strides = array<i32>} : memref<2x1xf32, #tpu.memory_space<vmem>>, vector<2x1xf32>,
    return
  }
}

</mosaic_0001>

<bundles_post_ra>
// kernel: sgmp_forward.1
= control target key start
LH: loop header
LB: loop body
LE: loop exit
PB: predicated region body
PF: predicated region fallthrough
CT: control target
= control target key end

     0   :  { %vm98_vm0 = vcmask 64512   ;;  %vm193_vm1 = vcmask 261120   ;;  %vm523_vm2 = vcmask 588800   ;;  %vm680_vm3 = vcmask 785408   ;;  %s7295_s1 = inlined_call_operand.vmem [shape: f32[8,32], index: 1, kind: input, shape index: {}]   ;;  %s7296_s6 = inlined_call_operand.vmem [shape: f32[8,72], index: 6, kind: input, shape index: {}]   ;;  %s7297_s0 = inlined_call_operand.vmem [shape: f32[16,8], index: 0, kind: input, shape index: {}]   ;;  %s7298_s5 = inlined_call_operand.vmem [shape: f32[64,8], index: 5, kind: input, shape index: {}]   ;;  %s7299_s3 = inlined_call_operand.vmem [shape: f32[32,32], index: 3, kind: input, shape index: {}]   ;;  %s7300_s12 = inlined_call_operand.vmem [shape: f32[3,72,96], index: 12, kind: input, shape index: {}]   ;;  %s7301_s16 = inlined_call_operand.vmem [shape: f32[3,224,128], index: 16, kind: input, shape index: {}]   ;;  %s7302_s2 = inlined_call_operand.vmem [shape: f32[1,32], index: 2, kind: input, shape index: {}]   ;;  %s7303_s7 = inlined_call_operand.vmem [shape: f32[1,72], index: 7, kind: input, shape index: {}]   ;;  %s7304_s8 = inlined_call_operand.vmem [shape: f32[1,72], index: 8, kind: input, shape index: {}]   ;;  %s7305_s14 = inlined_call_operand.vmem [shape: f32[3,96,96], index: 14, kind: input, shape index: {}]   ;;  %s7306_s4 = inlined_call_operand.vmem [shape: f32[1,32], index: 4, kind: input, shape index: {}]   ;;  %s7307_s13 = inlined_call_operand.vmem [shape: f32[3,1,96], index: 13, kind: input, shape index: {}]   ;;  %s7308_s9 = inlined_call_operand.vmem [shape: f32[64,64], index: 9, kind: input, shape index: {}]   ;;  %s7309_s15 = inlined_call_operand.vmem [shape: f32[3,1,96], index: 15, kind: input, shape index: {}]   ;;  %s7310_s18 = inlined_call_operand.vmem [shape: f32[3,128,64], index: 18, kind: input, shape index: {}]   ;;  %s7311_s17 = inlined_call_operand.vmem [shape: f32[3,1,128], index: 17, kind: input, shape index: {}]   ;;  %s7312_s10 = inlined_call_operand.vmem [shape: f32[16,64], index: 10, kind: input, shape index: {}]   ;;  %s7313_s19 = inlined_call_operand.vmem [shape: f32[3,1,64], index: 19, kind: input, shape index: {}]   ;;  %s7314_s20 = inlined_call_operand.vmem [shape: f32[3,64,32], index: 20, kind: input, shape index: {}]   ;;  %s7315_s11 = inlined_call_operand.vmem [shape: f32[16,1], index: 11, kind: input, shape index: {}]   ;;  %s7316_s21 = inlined_call_operand.vmem [shape: f32[3,1,32], index: 21, kind: input, shape index: {}]   ;;  %s7317_s22 = inlined_call_operand.vmem [shape: f32[2,16], index: 22, kind: input, shape index: {}]   ;;  %s7318_s23 = inlined_call_operand.vmem [shape: f32[32,16], index: 23, kind: input, shape index: {}]   ;;  %s7319_s25 = inlined_call_operand.vmem [shape: f32[16,1], index: 25, kind: input, shape index: {}]   ;;  %s7320_s26 = inlined_call_operand.<no memory space> [shape: f32[1,1], index: 26, kind: input, shape index: {}]   ;;  %s7321_s24 = inlined_call_operand.vmem [shape: f32[1,16], index: 24, kind: input, shape index: {}]   ;;  %s7322_s27 = inlined_call_operand.vmem [shape: f32[2,1], index: 27, kind: output, shape index: {}]  }
   0x1   :  { %7329 = sst [smem:[#allocation3_spill]] %s7295_s1  ;;  %vm1245_vm4 = vcmask 523264   ;;  %vm5988_vm5 = vmmov 0   ;;  %vm4110_vm6 = vcmask 130048   ;;  %vm4351_vm7 = vcmask 1024  }
   0x2   :  { %7330 = sst [smem:[#allocation4_spill]] %s7296_s6 }
   0x3   :  { %7331 = sst [smem:[#allocation5_spill]] %s7297_s0 }
   0x4   :  { %7332 = sst [smem:[#allocation6_spill]] %s7298_s5 }
   0x5   :  { %7333 = sst [smem:[#allocation7_spill]] %s7299_s3 }
   0x6   :  { %7334 = sst [smem:[#allocation8_spill]] %s7300_s12 }
   0x7   :  { %7335 = sst [smem:[#allocation9_spill]] %s7301_s16 }
   0x8   :  { %7336 = sst [smem:[#allocation10_spill]] %s7302_s2 }
   0x9   :  { %7337 = sst [smem:[#allocation11_spill]] %s7303_s7 }
   0xa   :  { %7338 = sst [smem:[#allocation12_spill]] %s7304_s8 }
   0xb   :  { %7339 = sst [smem:[#allocation13_spill]] %s7305_s14 }
   0xc   :  { %7340 = sst [smem:[#allocation14_spill]] %s7306_s4 }
   0xd   :  { %s7341_s7 = sld [smem:[#allocation3_spill]] }
   0xe   :  { %s7342_s12 = sld [smem:[#allocation4_spill]] }
   0xf   :  { %s7343_s14 = sld [smem:[#allocation5_spill]] }
  0x10   :  { %s7344_s2 = sld [smem:[#allocation6_spill]] }
  0x11   :  { %s7345_s3 = sld [smem:[#allocation7_spill]] }
  0x12   :  { %s7346_s29 = sld [smem:[#allocation8_spill]] }
  0x13   :  { %v90_v0 = vld [vmem:[%s7341_s7] sm:$0xff]  ;;  %s7347_s6 = sld [smem:[#allocation9_spill]] }
  0x14   :  { %v283_v1 = vld [vmem:[%s7342_s12] sm:$0xff]  ;;  %5133 = vmatprep.subr.mxu1 %v90_v0  ;;  %s7348_s30 = sld [smem:[#allocation10_spill]] }
  0x15   :  { %v88_v2 = vld [vmem:[%s7343_s14] sm:$0xff]  ;;  %5149 = vmatprep.subr.mxu0 %v283_v1  ;;  %v89_v3 = vld [vmem:[%s7343_s14 + $0x8] sm:$0xff]  ;;  %5134 = vmatpush3.msra.mxu1 %v90_v0  ;;  %s7350_s14 = sld [smem:[#allocation12_spill]] }
  0x16   :  { %v275_v4 = vld [vmem:[%s7344_s2] sm:$0xff]  ;;  %v276_v5 = vld [vmem:[%s7344_s2 + $0x8] sm:$0xff]  ;;  %5135 = vmatprep.mubr.msk.f32.mxu1 %vm98_vm0, %v88_v2  ;;  %v277_v6 = vld [vmem:[%s7344_s2 + $0x10] sm:$0xff]  ;;  %5150 = vmatpush3.msra.mxu0 %v283_v1  ;;  %s7352_s4 = sld [smem:[#allocation14_spill]] }
  0x17   :  { %5151 = vmatprep.mubr.msk.f32.mxu0 %vm98_vm0, %v275_v4  ;;  %5136 = vmatmul.mubr.msk.f32.vlgmr.msra.gmra.mxu1 %vm98_vm0, %v89_v3  ;;  %v278_v7 = vld [vmem:[%s7344_s2 + $0x18] sm:$0xff]  ;;  %v279_v8 = vld [vmem:[%s7344_s2 + $0x20] sm:$0xff]  ;;  %v280_v9 = vld [vmem:[%s7344_s2 + $0x28] sm:$0xff] }
  0x18   :  { %5152 = vmatmul.mubr.msk.f32.vlgmr.msra.gmra.mxu0 %vm98_vm0, %v276_v5  ;;  %v281_v10 = vld [vmem:[%s7344_s2 + $0x30] sm:$0xff]  ;;  %v282_v11 = vld [vmem:[%s7344_s2 + $0x38] sm:$0xff]  ;;  %v183_v14 = vld [vmem:[%s7345_s3 + $0x8] sm:$0xff]  ;;  %s7349_s2 = sld [smem:[#allocation11_spill]] }
  0x19   :  { %5154 = vmatprep.mubr.msk.f32.mxu0 %vm98_vm0, %v277_v6  ;;  %v185_v12 = vld [vmem:[%s7345_s3 + $0x18] sm:$0xff]  ;;  %v184_v13 = vld [vmem:[%s7345_s3 + $0x10] sm:$0xff]  ;;  %v182_v15 = vld [vmem:[%s7345_s3] sm:$0xff] }
  0x1a   :  { %5138 = vmatprep.subr.mxu1 %v185_v12  ;;  %v515_v16 = vld [vmem:[%s7346_s29 + $0x40] sm:$0xff]  ;;  %v514_v17 = vld [vmem:[%s7346_s29 + $0x38] sm:$0xff]  ;;  %v513_v18 = vld [vmem:[%s7346_s29 + $0x30] sm:$0xff] }
  0x1b   :  { %5139 = vmatpush3.msra.mxu1 %v185_v12  ;;  %5163 = vmatprep.subr.mxu0 %v515_v16  ;;  %v512_v19 = vld [vmem:[%s7346_s29 + $0x28] sm:$0xff]  ;;  %v511_v20 = vld [vmem:[%s7346_s29 + $0x20] sm:$0xff]  ;;  %v510_v21 = vld [vmem:[%s7346_s29 + $0x18] sm:$0xff] }
  0x1c   :  { %5155 = vmatmul.mubr.msk.f32.gmra.mxu0 %vm98_vm0, %v278_v7  ;;  %5140 = vmatprep.subr.mxu1 %v184_v13  ;;  %v509_v22 = vld [vmem:[%s7346_s29 + $0x10] sm:$0xff]  ;;  %v508_v23 = vld [vmem:[%s7346_s29 + $0x8] sm:$0xff]  ;;  %v507_v24 = vld [vmem:[%s7346_s29] sm:$0xff] }
  0x1d   :  { %5157 = vmatprep.mubr.msk.f32.mxu0 %vm98_vm0, %v279_v8  ;;  %5141 = vmatpush3.msra.mxu1 %v184_v13  ;;  %v6217_v25 = vld [vmem:[%s7347_s6 + $0x18] sm:$0xff]  ;;  %v4357_v26 = vld [vmem:[%s7348_s30] ss:$0 sm:$0xff]  ;;  %v481_v13 = vld [vmem:[%s7347_s6 + $0x10] sm:$0xff]  ;;  %s7351_s30 = sld [smem:[#allocation13_spill]] }
  0x1e   :  { %5142 = vmatprep.subr.mxu1 %v183_v14  ;;  %5164 = vmatpush3.msra.mxu0 %v515_v16  ;;  %v4371_v27 = vld [vmem:[%s7349_s2] ss:$0 sm:$0xff] }
  0x1f   :  { %5143 = vmatpush3.msra.mxu1 %v183_v14  ;;  %5165 = vmatprep.subr.mxu0 %v514_v17  ;;  %v4372_v30 = vld [vmem:[%s7350_s14] ss:$0 sm:$0xff] }
  0x20   :  { %5158 = vmatmul.mubr.msk.f32.gmra.mxu0 %vm98_vm0, %v280_v9  ;;  %5144 = vmatprep.subr.mxu1 %v182_v15 }
  0x21   :  { %5160 = vmatprep.mubr.msk.f32.mxu0 %vm98_vm0, %v281_v10  ;;  %5145 = vmatpush3.msra.mxu1 %v182_v15 }
  0x22   :  { %5166 = vmatpush3.msra.mxu0 %v514_v17 }
  0x23   :  { %5167 = vmatprep.subr.mxu0 %v513_v18 }
  0x24   :  { %5161 = vmatmul.mubr.msk.f32.gmra.mxu0 %vm98_vm0, %v282_v11 }
  0x25   :  { %5168 = vmatpush3.msra.mxu0 %v513_v18 }
  0x26   :  { %5169 = vmatprep.subr.mxu0 %v512_v19 }
  0x27   :  { %5170 = vmatpush3.msra.mxu0 %v512_v19 }
  0x28   :  { %5171 = vmatprep.subr.mxu0 %v511_v20 }
  0x29   :  { %5172 = vmatpush3.msra.mxu0 %v511_v20  ;;  %v480_v20 = vld [vmem:[%s7347_s6 + $0x8] sm:$0xff] }
  0x2a   :  { %5173 = vmatprep.subr.mxu0 %v510_v21 }
  0x2b   :  { %5174 = vmatpush3.msra.mxu0 %v510_v21  ;;  %v672_v21 = vld [vmem:[%s7351_s30 + $0x58] sm:$0xff] }
  0x2c   :  { %5175 = vmatprep.subr.mxu0 %v509_v22  ;;  %5193 = vmatprep.subr.mxu1 %v672_v21 }
  0x2d   :  { %5176 = vmatpush3.msra.mxu0 %v509_v22  ;;  %v479_v22 = vld [vmem:[%s7347_s6] sm:$0xff] }
  0x2e   :  { %5177 = vmatprep.subr.mxu0 %v508_v23 }
  0x2f   :  { %5178 = vmatpush3.msra.mxu0 %v508_v23  ;;  %v671_v23 = vld [vmem:[%s7351_s30 + $0x50] sm:$0xff] }
  0x30   :  { %5179 = vmatprep.subr.mxu0 %v507_v24 }
  0x31   :  { %5180 = vmatpush3.msra.mxu0 %v507_v24  ;;  %v486_v24 = vld [vmem:[%s7347_s6 + $0x38] sm:$0xff] }
  0x32   :  { %5229 = vmatprep.subr.mxu0 %v6217_v25 }
  0xd7   :  { %v5137_v28 = vpop.f32.mrf.mxu1 }
  0xd8   :  { %v5153_v29 = vpop.f32.mrf.mxu0  ;;  %v177_v31 = vadd.f32 %v5137_v28, %v4357_v26  ;;  %v667_v28 = vld [vmem:[%s7351_s30 + $0x30] sm:$0xff] }
  0xd9   :  { %v421_v32 = vsub.f32 %v5153_v29, %v4371_v27  ;;  %v171_v33 = vpop.f32.mrf.mxu1  ;;  %v666_v29 = vld [vmem:[%s7351_s30 + $0x28] sm:$0xff] }
  0xda   :  { %v374_v34 = vpop.f32.mrf.mxu0  ;;  %v172_v36 = vadd.f32 %v4357_v26, %v171_v33  ;;  %v181_v38 = vmax.f32 %v177_v31, 0.0  ;;  %v669_v26 = vld [vmem:[%s7351_s30 + $0x40] sm:$0xff]  ;;  %v664_v31 = vld [vmem:[%s7351_s30 + $0x18] sm:$0xff]  ;;  %v662_v33 = vld [vmem:[%s7351_s30 + $0x8] sm:$0xff] }
  0xdb   :  { %v436_v35 = vmul.f32 %v4372_v30, %v421_v32  ;;  %v420_v37 = vsub.f32 %v374_v34, %v4371_v27  ;;  %v661_v34 = vld [vmem:[%s7351_s30] sm:$0xff] }
  0xdc   :  { %v5156_v39 = vpop.f32.mrf.mxu0  ;;  %v180_v41 = vmax.f32 %v172_v36, 0.0  ;;  %v4360_v36 = vld [vmem:[%s7352_s4] ss:$0 sm:$0xff] }
  0xdd   :  { %v444_v40 = vmul.f32 %v436_v35, %v421_v32  ;;  %v435_v42 = vmul.f32 %v4372_v30, %v420_v37  ;;  %v423_v43 = vsub.f32 %v5156_v39, %v4371_v27  ;;  %v663_v32 = vld [vmem:[%s7351_s30 + $0x10] sm:$0xff]  ;;  %v490_v35 = vld [vmem:[%s7347_s6 + $0x58] sm:$0xff] }
  0xde   :  { %v384_v44 = vpop.f32.mrf.mxu0  ;;  %5146 = vmatprep.mubr.msk.f32.mxu1 %vm193_vm1, %v180_v41  ;;  %v485_v41 = vld [vmem:[%s7347_s6 + $0x30] sm:$0xff] }
  0xdf   :  { %v443_v45 = vmul.f32 %v435_v42, %v420_v37  ;;  %v438_v46 = vmul.f32 %v4372_v30, %v423_v43  ;;  %v422_v47 = vsub.f32 %v384_v44, %v4371_v27  ;;  %v453_v48 = vmul.f32 1.442695, %v444_v40  ;;  %5147 = vmatmul.mubr.msk.f32.vlgmr.msra.gmra.mxu1 %vm193_vm1, %v181_v38  ;;  %v484_v42 = vld [vmem:[%s7347_s6 + $0x28] sm:$0xff]  ;;  %v494_v44 = vld [vmem:[%s7347_s6 + $0x78] sm:$0xff] }
  0xe0   :  { %v5159_v49 = vpop.f32.mrf.mxu0  ;;  %5194 = vmatpush3.msra.mxu1 %v672_v21  ;;  %v505_v21 = vld [vmem:[%s7347_s6 + $0xd0] sm:$0xff] }
  0xe1   :  { %v451_v50 = vmul.f32 1.442695, %v443_v45  ;;  %v446_v51 = vmul.f32 %v438_v46, %v423_v43  ;;  %v437_v52 = vmul.f32 %v4372_v30, %v422_v47  ;;  %v425_v53 = vsub.f32 %v5159_v49, %v4371_v27  ;;  %5195 = vmatprep.subr.mxu1 %v671_v23  ;;  %v483_v43 = vld [vmem:[%s7347_s6 + $0x20] sm:$0xff]  ;;  %v493_v45 = vld [vmem:[%s7347_s6 + $0x70] sm:$0xff]  ;;  %v492_v46 = vld [vmem:[%s7347_s6 + $0x68] sm:$0xff] }
  0xe2   :  { %v394_v54 = vpop.f32.mrf.mxu0  ;;  %5196 = vmatpush3.msra.mxu1 %v671_v23  ;;  %v503_v23 = vld [vmem:[%s7347_s6 + $0xc0] sm:$0xff] }
  0xe3   :  { %5960 = vpow2.f32 %v451_v50  ;;  %v445_v55 = vmul.f32 %v437_v52, %v422_v47  ;;  %v424_v56 = vsub.f32 %v394_v54, %v4371_v27  ;;  %v457_v57 = vmul.f32 1.442695, %v446_v51  ;;  %v4373_v47 = vld [vmem:[%s7307_s13] ss:$0 sm:$0xff] }
  0xe4   :  { %5962 = vpow2.f32 %v453_v48  ;;  %v440_v58 = vmul.f32 %v4372_v30, %v425_v53  ;;  %v5162_v59 = vpop.f32.mrf.mxu0  ;;  %v491_v48 = vld [vmem:[%s7347_s6 + $0x60] sm:$0xff] }
  0xe5   :  { %v455_v60 = vmul.f32 1.442695, %v445_v55  ;;  %v439_v61 = vmul.f32 %v4372_v30, %v424_v56  ;;  %v427_v62 = vsub.f32 %v5162_v59, %v4371_v27  ;;  %v489_v59 = vld [vmem:[%s7347_s6 + $0x50] sm:$0xff] }
  0xe6   :  { %v448_v63 = vmul.f32 %v440_v58, %v425_v53  ;;  %v404_v0 = vpop.f32.mrf.mxu0 }
  0xe7   :  { %5964 = vpow2.f32 %v455_v60  ;;  %v447_v1 = vmul.f32 %v439_v61, %v424_v56  ;;  %v442_v2 = vmul.f32 %v4372_v30, %v427_v62  ;;  %v426_v3 = vsub.f32 %v404_v0, %v4371_v27  ;;  %v668_v27 = vld [vmem:[%s7351_s30 + $0x38] sm:$0xff] }
  0xe8   :  { %5966 = vpow2.f32 %v457_v57  ;;  %v461_v4 = vmul.f32 1.442695, %v448_v63 }
  0xe9   :  { %v459_v5 = vmul.f32 1.442695, %v447_v1  ;;  %v450_v6 = vmul.f32 %v442_v2, %v427_v62  ;;  %v441_v7 = vmul.f32 %v4372_v30, %v426_v3  ;;  %v665_v30 = vld [vmem:[%s7351_s30 + $0x20] sm:$0xff]  ;;  %v488_v62 = vld [vmem:[%s7347_s6 + $0x48] sm:$0xff] }
  0xeb   :  { %5968 = vpow2.f32 %v459_v5  ;;  %v449_v8 = vmul.f32 %v441_v7, %v426_v3  ;;  %v465_v9 = vmul.f32 1.442695, %v450_v6  ;;  %v487_v3 = vld [vmem:[%s7347_s6 + $0x40] sm:$0xff]  ;;  %v506_v6 = vld [vmem:[%s7347_s6 + $0xd8] sm:$0xff] }
  0xec   :  { %5970 = vpow2.f32 %v461_v4 }
  0xed   :  { %v463_v10 = vmul.f32 1.442695, %v449_v8 }
  0xef   :  { %5972 = vpow2.f32 %v463_v10 }
  0xf0   :  { %v6231_v11 = vpop.eup %5960  ;;  %5974 = vpow2.f32 %v465_v9 }
  0xf1   :  { %v6233_v12 = vpop.eup %5962  ;;  %5181 = vmatprep.mubr.msk.f32.mxu0 %vm523_vm2, %v6231_v11 }
  0xf2   :  { %5182 = vmatmul.mubr.msk.f32.vlgmr.msra.gmra.mxu0 %vm523_vm2, %v6233_v12 }
  0xf3   :  { %5230 = vmatpush3.msra.mxu0 %v6217_v25  ;;  %v670_v25 = vld [vmem:[%s7351_s30 + $0x48] sm:$0xff] }
  0xf4   :  { %v6243_v14 = vpop.eup %5964  ;;  %5231 = vmatprep.subr.mxu0 %v481_v13  ;;  %5197 = vmatprep.subr.mxu1 %v670_v25 }
  0xf5   :  { %v6245_v15 = vpop.eup %5966  ;;  %5184 = vmatprep.mubr.msk.f32.mxu0 %vm523_vm2, %v6243_v14  ;;  %5232 = vmatpush3.msra.mxu0 %v481_v13 }
  0xf6   :  { %5185 = vmatmul.mubr.msk.f32.gmra.mxu0 %vm523_vm2, %v6245_v15  ;;  %5233 = vmatprep.subr.mxu0 %v480_v20 }
  0xf7   :  { %5234 = vmatpush3.msra.mxu0 %v480_v20  ;;  %5198 = vmatpush3.msra.mxu1 %v670_v25  ;;  %v501_v25 = vld [vmem:[%s7347_s6 + $0xb0] sm:$0xff] }
  0xf8   :  { %v6251_v16 = vpop.eup %5968  ;;  %5235 = vmatprep.subr.mxu0 %v479_v22  ;;  %5199 = vmatprep.subr.mxu1 %v669_v26 }
  0xf9   :  { %v6253_v17 = vpop.eup %5970  ;;  %5187 = vmatprep.mubr.msk.f32.mxu0 %vm523_vm2, %v6251_v16  ;;  %5236 = vmatpush3.msra.mxu0 %v479_v22  ;;  %v504_v22 = vld [vmem:[%s7347_s6 + $0xc8] sm:$0xff] }
  0xfa   :  { %5188 = vmatmul.mubr.msk.f32.gmra.mxu0 %vm523_vm2, %v6253_v17  ;;  %5240 = vmatprep.subr.mxu0 %v486_v24 }
  0xfb   :  { %5200 = vmatpush3.msra.mxu1 %v669_v26  ;;  %v500_v26 = vld [vmem:[%s7347_s6 + $0xa8] sm:$0xff] }
  0xfc   :  { %v6259_v18 = vpop.eup %5972  ;;  %5201 = vmatprep.subr.mxu1 %v668_v27 }
  0xfd   :  { %v6261_v19 = vpop.eup %5974  ;;  %5190 = vmatprep.mubr.msk.f32.mxu0 %vm523_vm2, %v6259_v18  ;;  %5202 = vmatpush3.msra.mxu1 %v668_v27  ;;  %v499_v27 = vld [vmem:[%s7347_s6 + $0xa0] sm:$0xff] }
  0xfe   :  { %5191 = vmatmul.mubr.msk.f32.gmra.mxu0 %vm523_vm2, %v6261_v19  ;;  %5203 = vmatprep.subr.mxu1 %v667_v28 }
  0xff   :  { %5204 = vmatpush3.msra.mxu1 %v667_v28  ;;  %v498_v28 = vld [vmem:[%s7347_s6 + $0x98] sm:$0xff] }
 0x100   :  { %5205 = vmatprep.subr.mxu1 %v666_v29 }
 0x101   :  { %5206 = vmatpush3.msra.mxu1 %v666_v29  ;;  %v497_v29 = vld [vmem:[%s7347_s6 + $0x90] sm:$0xff] }
 0x102   :  { %5207 = vmatprep.subr.mxu1 %v665_v30 }
 0x103   :  { %5208 = vmatpush3.msra.mxu1 %v665_v30  ;;  %v496_v30 = vld [vmem:[%s7347_s6 + $0x88] sm:$0xff] }
 0x104   :  { %5209 = vmatprep.subr.mxu1 %v664_v31 }
 0x105   :  { %5210 = vmatpush3.msra.mxu1 %v664_v31  ;;  %v495_v31 = vld [vmem:[%s7347_s6 + $0x80] sm:$0xff] }
 0x106   :  { %5211 = vmatprep.subr.mxu1 %v663_v32 }
 0x107   :  { %5212 = vmatpush3.msra.mxu1 %v663_v32  ;;  %v6418_v32 = vld [vmem:[%s7308_s9] sm:$0xff] }
 0x108   :  { %5213 = vmatprep.subr.mxu1 %v662_v33 }
 0x109   :  { %5214 = vmatpush3.msra.mxu1 %v662_v33 }
 0x10a   :  { %5215 = vmatprep.subr.mxu1 %v661_v34 }
 0x10b   :  { %5216 = vmatpush3.msra.mxu1 %v661_v34 }
 0x10c   :  { %5251 = vmatprep.subr.mxu1 %v490_v35 }
 0x19f   :  { %v5148_v37 = vpop.f32.mrf.mxu1 }
 0x1a0   :  { %v6318_v38 = vadd.f32 %v5148_v37, %v4360_v36 }
 0x1a1   :  { %v266_v39 = vpop.f32.mrf.mxu1 }
 0x1a2   :  { %v6320_v40 = vadd.f32 %v4360_v36, %v266_v39 }
 0x1a4   :  { %5237 = vmatprep.mubr.msk.f32.mxu0 %vm193_vm1, %v6320_v40 }
 0x1a5   :  { %5238 = vmatmul.mubr.msk.f32.vlgmr.msra.gmra.mxu0 %vm193_vm1, %v6318_v38 }
 0x1a6   :  { %5241 = vmatpush3.msra.mxu0 %v486_v24  ;;  %5248 = vmatprep.mubr.msk.f32.mxu0 %vm193_vm1, %v6320_v40  ;;  %v502_v24 = vld [vmem:[%s7347_s6 + $0xb8] sm:$0xff] }
 0x1a7   :  { %5242 = vmatprep.subr.mxu0 %v485_v41 }
 0x1a8   :  { %5243 = vmatpush3.msra.mxu0 %v485_v41 }
 0x1a9   :  { %5244 = vmatprep.subr.mxu0 %v484_v42 }
 0x1aa   :  { %5245 = vmatpush3.msra.mxu0 %v484_v42  ;;  %v4382_v42 = vld [vmem:[%s7309_s15] ss:$0 sm:$0xff] }
 0x1ab   :  { %5246 = vmatprep.subr.mxu0 %v483_v43 }
 0x1ac   :  { %5247 = vmatpush3.msra.mxu0 %v483_v43 }
 0x1ad   :  { %5262 = vmatprep.subr.mxu0 %v494_v44  ;;  %5249 = vmatmul.mubr.msk.f32.vlgmr.msra.gmra.mxu0 %vm193_vm1, %v6318_v38 }
 0x1ae   :  { %5263 = vmatpush3.msra.mxu0 %v494_v44  ;;  %5270 = vmatprep.mubr.msk.f32.mxu0 %vm193_vm1, %v6320_v40 }
 0x1af   :  { %5264 = vmatprep.subr.mxu0 %v493_v45 }
 0x1b0   :  { %5265 = vmatpush3.msra.mxu0 %v493_v45 }
 0x1b1   :  { %5266 = vmatprep.subr.mxu0 %v492_v46 }
 0x1b2   :  { %v5183_v49 = vpop.f32.mrf.mxu0  ;;  %5267 = vmatpush3.msra.mxu0 %v492_v46 }
 0x1b3   :  { %v620_v50 = vadd.f32 %v5183_v49, %v4373_v47  ;;  %5268 = vmatprep.subr.mxu0 %v491_v48 }
 0x1b4   :  { %v614_v51 = vpop.f32.mrf.mxu0  ;;  %5269 = vmatpush3.msra.mxu0 %v491_v48 }
 0x1b5   :  { %v615_v52 = vadd.f32 %v4373_v47, %v614_v51  ;;  %5271 = vmatmul.mubr.msk.f32.vlgmr.msra.gmra.mxu0 %vm193_vm1, %v6318_v38  ;;  %v654_v55 = vmax.f32 %v620_v50, 0.0 }
 0x1b6   :  { %v5186_v53 = vpop.f32.mrf.mxu0  ;;  %5325 = vmatprep.mubr.msk.f32.mxu0 %vm1245_vm4, %v6418_v32 }
 0x1b7   :  { %v653_v54 = vmax.f32 %v615_v52, 0.0  ;;  %v630_v56 = vadd.f32 %v5186_v53, %v4373_v47 }
 0x1b8   :  { %v624_v57 = vpop.f32.mrf.mxu0 }
 0x1b9   :  { %v625_v58 = vadd.f32 %v4373_v47, %v624_v57  ;;  %5217 = vmatprep.mubr.msk.f32.mxu1 %vm680_vm3, %v653_v54  ;;  %v656_v63 = vmax.f32 %v630_v56, 0.0 }
 0x1ba   :  { %v5189_v60 = vpop.f32.mrf.mxu0  ;;  %5218 = vmatmul.mubr.msk.f32.vlgmr.msra.gmra.mxu1 %vm680_vm3, %v654_v55 }
 0x1bb   :  { %v655_v61 = vmax.f32 %v625_v58, 0.0  ;;  %5252 = vmatpush3.msra.mxu1 %v490_v35  ;;  %v640_v0 = vadd.f32 %v5189_v60, %v4373_v47  ;;  %v6436_v60 = vld [vmem:[%s7308_s9 + $0x8] sm:$0xff] }
 0x1bc   :  { %v634_v1 = vpop.f32.mrf.mxu0  ;;  %5253 = vmatprep.subr.mxu1 %v489_v59 }
 0x1bd   :  { %v635_v2 = vadd.f32 %v4373_v47, %v634_v1  ;;  %5220 = vmatprep.mubr.msk.f32.mxu1 %vm680_vm3, %v655_v61  ;;  %5254 = vmatpush3.msra.mxu1 %v489_v59  ;;  %v658_v7 = vmax.f32 %v640_v0, 0.0  ;;  %v6441_v61 = vld [vmem:[%s7308_s9 + $0x10] sm:$0xff]  ;;  %v6464_v0 = vld [vmem:[%s7308_s9 + $0x28] sm:$0xff] }
 0x1be   :  { %v5192_v4 = vpop.f32.mrf.mxu0  ;;  %5221 = vmatmul.mubr.msk.f32.gmra.mxu1 %vm680_vm3, %v656_v63  ;;  %5255 = vmatprep.subr.mxu1 %v488_v62  ;;  %v6455_v63 = vld [vmem:[%s7308_s9 + $0x20] sm:$0xff]  ;;  %v6469_v1 = vld [vmem:[%s7308_s9 + $0x30] sm:$0xff] }
 0x1bf   :  { %v657_v5 = vmax.f32 %v635_v2, 0.0  ;;  %5256 = vmatpush3.msra.mxu1 %v488_v62  ;;  %v650_v8 = vadd.f32 %v5192_v4, %v4373_v47  ;;  %v6450_v62 = vld [vmem:[%s7308_s9 + $0x18] sm:$0xff]  ;;  %v1412_v4 = vld [vmem:[%s7310_s18 + $0x70] sm:$0xff] }
 0x1c0   :  { %v644_v9 = vpop.f32.mrf.mxu0  ;;  %5257 = vmatprep.subr.mxu1 %v487_v3  ;;  %v6478_v2 = vld [vmem:[%s7308_s9 + $0x38] sm:$0xff] }
 0x1c1   :  { %v645_v10 = vadd.f32 %v4373_v47, %v644_v9  ;;  %5223 = vmatprep.mubr.msk.f32.mxu1 %vm680_vm3, %v657_v5  ;;  %5258 = vmatpush3.msra.mxu1 %v487_v3  ;;  %v660_v20 = vmax.f32 %v650_v8, 0.0  ;;  %v1413_v3 = vld [vmem:[%s7310_s18 + $0x78] sm:$0xff]  ;;  %v1411_v5 = vld [vmem:[%s7310_s18 + $0x68] sm:$0xff]  ;;  %v1408_v8 = vld [vmem:[%s7310_s18 + $0x50] sm:$0xff] }
 0x1c2   :  { %5224 = vmatmul.mubr.msk.f32.gmra.mxu1 %vm680_vm3, %v658_v7  ;;  %5273 = vmatprep.subr.mxu1 %v506_v6  ;;  %v1409_v7 = vld [vmem:[%s7310_s18 + $0x58] sm:$0xff]  ;;  %v1407_v9 = vld [vmem:[%s7310_s18 + $0x48] sm:$0xff] }
 0x1c3   :  { %v659_v13 = vmax.f32 %v645_v10, 0.0  ;;  %v1406_v10 = vld [vmem:[%s7310_s18 + $0x40] sm:$0xff] }
 0x1c5   :  { %5226 = vmatprep.mubr.msk.f32.mxu1 %vm680_vm3, %v659_v13  ;;  %v1405_v13 = vld [vmem:[%s7310_s18 + $0x38] sm:$0xff] }
 0x1c6   :  { %5227 = vmatmul.mubr.msk.f32.gmra.mxu1 %vm680_vm3, %v660_v20  ;;  %v1404_v20 = vld [vmem:[%s7310_s18 + $0x30] sm:$0xff] }
 0x1c7   :  { %5259 = vmatprep.mubr.msk.f32.mxu1 %vm193_vm1, %v6320_v40 }
 0x1ca   :  { %5260 = vmatmul.mubr.msk.f32.vlgmr.msra.gmra.mxu1 %vm193_vm1, %v6318_v38 }
 0x1cb   :  { %5274 = vmatpush3.msra.mxu1 %v506_v6  ;;  %v1410_v6 = vld [vmem:[%s7310_s18 + $0x60] sm:$0xff] }
 0x1cc   :  { %5275 = vmatprep.subr.mxu1 %v505_v21 }
 0x1cd   :  { %5276 = vmatpush3.msra.mxu1 %v505_v21  ;;  %v1403_v21 = vld [vmem:[%s7310_s18 + $0x28] sm:$0xff] }
 0x1ce   :  { %5277 = vmatprep.subr.mxu1 %v504_v22 }
 0x1cf   :  { %5278 = vmatpush3.msra.mxu1 %v504_v22  ;;  %v1402_v22 = vld [vmem:[%s7310_s18 + $0x20] sm:$0xff] }
 0x1d0   :  { %5279 = vmatprep.subr.mxu1 %v503_v23 }
 0x1d1   :  { %5280 = vmatpush3.msra.mxu1 %v503_v23  ;;  %v1401_v23 = vld [vmem:[%s7310_s18 + $0x18] sm:$0xff] }
 0x1d2   :  { %5281 = vmatprep.subr.mxu1 %v502_v24 }
 0x1d3   :  { %5282 = vmatpush3.msra.mxu1 %v502_v24  ;;  %v1400_v24 = vld [vmem:[%s7310_s18 + $0x10] sm:$0xff] }
 0x1d4   :  { %5283 = vmatprep.subr.mxu1 %v501_v25 }
 0x1d5   :  { %5284 = vmatpush3.msra.mxu1 %v501_v25  ;;  %v1399_v25 = vld [vmem:[%s7310_s18 + $0x8] sm:$0xff] }
 0x1d6   :  { %5285 = vmatprep.subr.mxu1 %v500_v26 }
 0x1d7   :  { %5286 = vmatpush3.msra.mxu1 %v500_v26  ;;  %v1398_v26 = vld [vmem:[%s7310_s18] sm:$0xff] }
 0x1d8   :  { %5287 = vmatprep.subr.mxu1 %v499_v27 }
 0x1d9   :  { %5288 = vmatpush3.msra.mxu1 %v499_v27  ;;  %v4458_v27 = vld [vmem:[%s7346_s29 + $0x88] sm:$0xff] }
 0x1da   :  { %5289 = vmatprep.subr.mxu1 %v498_v28 }
 0x1db   :  { %5290 = vmatpush3.msra.mxu1 %v498_v28 }
 0x1dc   :  { %5291 = vmatprep.subr.mxu1 %v497_v29 }
 0x1dd   :  { %5292 = vmatpush3.msra.mxu1 %v497_v29 }
 0x1de   :  { %5293 = vmatprep.subr.mxu1 %v496_v30 }
 0x1df   :  { %5294 = vmatpush3.msra.mxu1 %v496_v30 }
 0x1e0   :  { %5295 = vmatprep.subr.mxu1 %v495_v31 }
 0x1e1   :  { %5296 = vmatpush3.msra.mxu1 %v495_v31 }
 0x265   :  { %v5239_v33 = vpop.f32.mrf.mxu0 }
 0x267   :  { %v882_v34 = vpop.f32.mrf.mxu0 }
 0x26d   :  { %v5250_v35 = vpop.f32.mrf.mxu0 }
 0x26f   :  { %v957_v36 = vpop.f32.mrf.mxu0 }
 0x275   :  { %v5272_v37 = vpop.f32.mrf.mxu0 }
 0x276   :  { %5309 = vmatprep.subr.mxu0 %v5272_v37 }
 0x277   :  { %v1107_v39 = vpop.f32.mrf.mxu0  ;;  %5310 = vmatpush3.msra.mxu0 %v5272_v37 }
 0x278   :  { %5311 = vmatprep.subr.mxu0 %v1107_v39 }
 0x279   :  { %5312 = vmatpush3.msra.mxu0 %v1107_v39 }
 0x27a   :  { %v5219_v41 = vpop.f32.mrf.mxu1 }
 0x27b   :  { %v777_v45 = vadd.f32 %v5219_v41, %v4382_v42 }
 0x27c   :  { %v771_v43 = vpop.f32.mrf.mxu1 }
 0x27d   :  { %v772_v44 = vadd.f32 %v4382_v42, %v771_v43 }
 0x27e   :  { %v5222_v46 = vpop.f32.mrf.mxu1 }
 0x27f   :  { %5297 = vmatprep.mubr.msk.f32.mxu1 %vm680_vm3, %v772_v44  ;;  %v787_v49 = vadd.f32 %v5222_v46, %v4382_v42 }
 0x280   :  { %v781_v47 = vpop.f32.mrf.mxu1  ;;  %5298 = vmatmul.mubr.msk.f32.vlgmr.msra.gmra.mxu1 %vm680_vm3, %v777_v45 }
 0x281   :  { %v782_v48 = vadd.f32 %v4382_v42, %v781_v47 }
 0x282   :  { %v5225_v50 = vpop.f32.mrf.mxu1 }
 0x283   :  { %5300 = vmatprep.mubr.msk.f32.mxu1 %vm680_vm3, %v782_v48  ;;  %v797_v53 = vadd.f32 %v5225_v50, %v4382_v42 }
 0x284   :  { %v791_v51 = vpop.f32.mrf.mxu1  ;;  %5301 = vmatmul.mubr.msk.f32.gmra.mxu1 %vm680_vm3, %v787_v49 }
 0x285   :  { %v792_v52 = vadd.f32 %v4382_v42, %v791_v51 }
 0x286   :  { %v5228_v54 = vpop.f32.mrf.mxu1 }
 0x287   :  { %5303 = vmatprep.mubr.msk.f32.mxu1 %vm680_vm3, %v792_v52  ;;  %v807_v57 = vadd.f32 %v5228_v54, %v4382_v42  ;;  %v4457_v54 = vld [vmem:[%s7346_s29 + $0x80] sm:$0xff] }
 0x288   :  { %v801_v55 = vpop.f32.mrf.mxu1  ;;  %5304 = vmatmul.mubr.msk.f32.gmra.mxu1 %vm680_vm3, %v797_v53 }
 0x289   :  { %v802_v56 = vadd.f32 %v4382_v42, %v801_v55 }
 0x28a   :  { %v5261_v58 = vpop.f32.mrf.mxu1 }
 0x28b   :  { %5306 = vmatprep.mubr.msk.f32.mxu1 %vm680_vm3, %v802_v56  ;;  %5313 = vmatprep.subr.mxu0 %v5261_v58 }
 0x28c   :  { %v1032_v59 = vpop.f32.mrf.mxu1  ;;  %5307 = vmatmul.mubr.msk.f32.gmra.mxu1 %vm680_vm3, %v807_v57  ;;  %5314 = vmatpush3.msra.mxu0 %v5261_v58 }
 0x28d   :  { %5315 = vmatprep.subr.mxu0 %v1032_v59 }
 0x28e   :  { %5316 = vmatpush3.msra.mxu0 %v1032_v59  ;;  %v4456_v59 = vld [vmem:[%s7346_s29 + $0x78] sm:$0xff] }
 0x28f   :  { %5317 = vmatprep.subr.mxu0 %v5250_v35 }
 0x290   :  { %5318 = vmatpush3.msra.mxu0 %v5250_v35  ;;  %v4415_v35 = vld [vmem:[%s7311_s17] ss:$0 sm:$0xff] }
 0x291   :  { %5319 = vmatprep.subr.mxu0 %v957_v36 }
 0x292   :  { %5320 = vmatpush3.msra.mxu0 %v957_v36 }
 0x293   :  { %5321 = vmatprep.subr.mxu0 %v5239_v33 }
 0x294   :  { %5322 = vmatpush3.msra.mxu0 %v5239_v33 }
 0x295   :  { %5323 = vmatprep.subr.mxu0 %v882_v34 }
 0x296   :  { %5324 = vmatpush3.msra.mxu0 %v882_v34 }
 0x297   :  { %5326 = vmatmul.mubr.msk.f32.vlgmr.msra.gmra.mxu0 %vm1245_vm4, %v6436_v60  ;;  %5337 = vmatprep.subr.mxu0 %v1413_v3 }
 0x298   :  { %5328 = vmatprep.mubr.msk.f32.mxu0 %vm1245_vm4, %v6441_v61  ;;  %5338 = vmatpush3.msra.mxu0 %v1413_v3 }
 0x299   :  { %5339 = vmatprep.subr.mxu0 %v1412_v4 }
 0x29a   :  { %5340 = vmatpush3.msra.mxu0 %v1412_v4 }
 0x29b   :  { %5329 = vmatmul.mubr.msk.f32.gmra.mxu0 %vm1245_vm4, %v6450_v62  ;;  %5341 = vmatprep.subr.mxu0 %v1411_v5 }
 0x29c   :  { %5331 = vmatprep.mubr.msk.f32.mxu0 %vm1245_vm4, %v6455_v63  ;;  %5342 = vmatpush3.msra.mxu0 %v1411_v5 }
 0x29d   :  { %5343 = vmatprep.subr.mxu0 %v1410_v6 }
 0x29e   :  { %5344 = vmatpush3.msra.mxu0 %v1410_v6 }
 0x29f   :  { %5332 = vmatmul.mubr.msk.f32.gmra.mxu0 %vm1245_vm4, %v6464_v0  ;;  %5345 = vmatprep.subr.mxu0 %v1409_v7 }
 0x2a0   :  { %5334 = vmatprep.mubr.msk.f32.mxu0 %vm1245_vm4, %v6469_v1  ;;  %5346 = vmatpush3.msra.mxu0 %v1409_v7 }
 0x2a1   :  { %5347 = vmatprep.subr.mxu0 %v1408_v8 }
 0x2a2   :  { %5348 = vmatpush3.msra.mxu0 %v1408_v8  ;;  %v4455_v8 = vld [vmem:[%s7346_s29 + $0x70] sm:$0xff] }
 0x2a3   :  { %5335 = vmatmul.mubr.msk.f32.gmra.mxu0 %vm1245_vm4, %v6478_v2  ;;  %5349 = vmatprep.subr.mxu0 %v1407_v9 }
 0x2a4   :  { %5350 = vmatpush3.msra.mxu0 %v1407_v9 }
 0x2a5   :  { %5351 = vmatprep.subr.mxu0 %v1406_v10 }
 0x2a6   :  { %5352 = vmatpush3.msra.mxu0 %v1406_v10 }
 0x2a7   :  { %5353 = vmatprep.subr.mxu0 %v1405_v13 }
 0x2a8   :  { %5354 = vmatpush3.msra.mxu0 %v1405_v13 }
 0x2a9   :  { %5355 = vmatprep.subr.mxu0 %v1404_v20 }
 0x2aa   :  { %5356 = vmatpush3.msra.mxu0 %v1404_v20 }
 0x2ab   :  { %5357 = vmatprep.subr.mxu0 %v1403_v21 }
 0x2ac   :  { %5358 = vmatpush3.msra.mxu0 %v1403_v21  ;;  %v4454_v21 = vld [vmem:[%s7346_s29 + $0x68] sm:$0xff] }
 0x2ad   :  { %5359 = vmatprep.subr.mxu0 %v1402_v22 }
 0x2ae   :  { %5360 = vmatpush3.msra.mxu0 %v1402_v22 }
 0x2af   :  { %5361 = vmatprep.subr.mxu0 %v1401_v23 }
 0x2b0   :  { %5362 = vmatpush3.msra.mxu0 %v1401_v23 }
 0x2b1   :  { %5363 = vmatprep.subr.mxu0 %v1400_v24 }
 0x2b2   :  { %5364 = vmatpush3.msra.mxu0 %v1400_v24 }
 0x2b3   :  { %5365 = vmatprep.subr.mxu0 %v1399_v25 }
 0x2b4   :  { %5366 = vmatpush3.msra.mxu0 %v1399_v25  ;;  %v4453_v25 = vld [vmem:[%s7346_s29 + $0x60] sm:$0xff] }
 0x2b5   :  { %5367 = vmatprep.subr.mxu0 %v1398_v26 }
 0x2b6   :  { %5368 = vmatpush3.msra.mxu0 %v1398_v26 }
 0x2b7   :  { %5419 = vmatprep.subr.mxu0 %v4458_v27 }
 0x340   :  { %v5299_v28 = vpop.f32.mrf.mxu1 }
 0x342   :  { %v1206_v29 = vpop.f32.mrf.mxu1 }
 0x344   :  { %v5302_v30 = vpop.f32.mrf.mxu1 }
 0x346   :  { %v1216_v31 = vpop.f32.mrf.mxu1 }
 0x348   :  { %v5305_v36 = vpop.f32.mrf.mxu1 }
 0x34a   :  { %v1226_v45 = vpop.f32.mrf.mxu1 }
 0x34c   :  { %v5308_v55 = vpop.f32.mrf.mxu1 }
 0x34e   :  { %v1236_v9 = vpop.f32.mrf.mxu1 }
 0x357   :  { %v5327_v33 = vpop.f32.mrf.mxu0 }
 0x358   :  { %v1342_v34 = vadd.f32 %v5327_v33, %v5299_v28 }
 0x359   :  { %v1336_v37 = vpop.f32.mrf.mxu0 }
 0x35a   :  { %v1337_v39 = vadd.f32 %v1336_v37, %v1206_v29  ;;  %v1383_v41 = vadd.f32 %v4415_v35, %v1342_v34  ;;  %v4451_v29 = vld [vmem:[%s7346_s29 + $0x50] sm:$0xff] }
 0x35b   :  { %v5330_v42 = vpop.f32.mrf.mxu0 }
 0x35c   :  { %v1382_v43 = vadd.f32 %v4415_v35, %v1337_v39  ;;  %v1352_v44 = vadd.f32 %v5330_v42, %v5302_v30  ;;  %v1391_v49 = vmax.f32 %v1383_v41, 0.0  ;;  %v4450_v30 = vld [vmem:[%s7346_s29 + $0x48] sm:$0xff]  ;;  %v4416_v41 = vld [vmem:[%s7313_s19] ss:$0 sm:$0xff] }
 0x35d   :  { %v1346_v46 = vpop.f32.mrf.mxu0 }
 0x35e   :  { %v1390_v47 = vmax.f32 %v1382_v43, 0.0  ;;  %v1347_v48 = vadd.f32 %v1346_v46, %v1216_v31  ;;  %v1385_v50 = vadd.f32 %v4415_v35, %v1352_v44  ;;  %v6579_v31 = vld [vmem:[%s7312_s10] sm:$0xff] }
 0x35f   :  { %v5333_v51 = vpop.f32.mrf.mxu0  ;;  %5397 = vmatprep.mubr.msk.f32.mxu1 %vm1245_vm4, %v6579_v31 }
 0x360   :  { %v1384_v52 = vadd.f32 %v4415_v35, %v1347_v48  ;;  %v1362_v53 = vadd.f32 %v5333_v51, %v5305_v36  ;;  %5369 = vmatprep.mubr.f32.mxu0 %v1390_v47  ;;  %v1393_v3 = vmax.f32 %v1385_v50, 0.0 }
 0x361   :  { %v1356_v56 = vpop.f32.mrf.mxu0  ;;  %5370 = vmatmul.mubr.f32.vlgmr.msra.gmra.mxu0 %v1391_v49 }
 0x362   :  { %v1392_v57 = vmax.f32 %v1384_v52, 0.0  ;;  %v1357_v58 = vadd.f32 %v1356_v56, %v1226_v45  ;;  %5420 = vmatpush3.msra.mxu0 %v4458_v27  ;;  %v1387_v4 = vadd.f32 %v4415_v35, %v1362_v53  ;;  %v4452_v27 = vld [vmem:[%s7346_s29 + $0x58] sm:$0xff] }
 0x363   :  { %5421 = vmatprep.subr.mxu0 %v4457_v54  ;;  %v5336_v5 = vpop.f32.mrf.mxu0 }
 0x364   :  { %v1386_v6 = vadd.f32 %v4415_v35, %v1357_v58  ;;  %v1372_v7 = vadd.f32 %v5336_v5, %v5308_v55  ;;  %5422 = vmatpush3.msra.mxu0 %v4457_v54  ;;  %5372 = vmatprep.mubr.f32.mxu0 %v1392_v57  ;;  %v1395_v22 = vmax.f32 %v1387_v4, 0.0  ;;  %v1622_v4 = vld [vmem:[%s7314_s20 + $0x38] sm:$0xff]  ;;  %v1621_v5 = vld [vmem:[%s7314_s20 + $0x30] sm:$0xff] }
 0x365   :  { %5423 = vmatprep.subr.mxu0 %v4456_v59  ;;  %v1366_v10 = vpop.f32.mrf.mxu0  ;;  %5373 = vmatmul.mubr.f32.gmra.mxu0 %v1393_v3  ;;  %v6589_v3 = vld [vmem:[%s7312_s10 + $0x8] sm:$0xff] }
 0x366   :  { %v1394_v13 = vmax.f32 %v1386_v6, 0.0  ;;  %v1367_v20 = vadd.f32 %v1366_v10, %v1236_v9  ;;  %5424 = vmatpush3.msra.mxu0 %v4456_v59  ;;  %v1389_v23 = vadd.f32 %v4415_v35, %v1372_v7  ;;  %v1620_v6 = vld [vmem:[%s7314_s20 + $0x28] sm:$0xff]  ;;  %v1619_v7 = vld [vmem:[%s7314_s20 + $0x20] sm:$0xff]  ;;  %v1617_v9 = vld [vmem:[%s7314_s20 + $0x10] sm:$0xff] }
 0x367   :  { %5425 = vmatprep.subr.mxu0 %v4455_v8  ;;  %v1616_v10 = vld [vmem:[%s7314_s20 + $0x8] sm:$0xff] }
 0x368   :  { %v1388_v24 = vadd.f32 %v4415_v35, %v1367_v20  ;;  %5426 = vmatpush3.msra.mxu0 %v4455_v8  ;;  %5375 = vmatprep.mubr.f32.mxu0 %v1394_v13  ;;  %v1397_v28 = vmax.f32 %v1389_v23, 0.0  ;;  %v1618_v8 = vld [vmem:[%s7314_s20 + $0x18] sm:$0xff]  ;;  %v1615_v13 = vld [vmem:[%s7314_s20] sm:$0xff] }
 0x369   :  { %5427 = vmatprep.subr.mxu0 %v4454_v21  ;;  %5376 = vmatmul.mubr.f32.gmra.mxu0 %v1395_v22  ;;  %v4480_v20 = vld [vmem:[%s7351_s30 + $0xb8] sm:$0xff]  ;;  %v5986_v22 = vmov 0   ;;  %v477_v23 = vld [vmem:[%s7315_s11] sm:$0xff] }
 0x36a   :  { %v1396_v26 = vmax.f32 %v1388_v24, 0.0  ;;  %5428 = vmatpush3.msra.mxu0 %v4454_v21  ;;  %v4425_v21 = vld [vmem:[%s7347_s6 + $0xf8] sm:$0xff]  ;;  %5959 = vset.pattern.permute.xlu0 %v5986_v22  ;;  %v478_v24 = vld [vmem:[%s7315_s11 + $0x8] sm:$0xff] }
 0x36b   :  { %5429 = vmatprep.subr.mxu0 %v4453_v25  ;;  %1709 = vperm.xlu0 %5959, %v477_v23  }
 0x36c   :  { %5430 = vmatpush3.msra.mxu0 %v4453_v25  ;;  %5378 = vmatprep.mubr.f32.mxu0 %v1396_v26 }
 0x36d   :  { %5431 = vmatprep.subr.mxu0 %v4452_v27  ;;  %5379 = vmatmul.mubr.f32.gmra.mxu0 %v1397_v28 }
 0x36e   :  { %5432 = vmatpush3.msra.mxu0 %v4452_v27  ;;  %5437 = vmatprep.mubr.msk.f32.mxu0 %vm523_vm2, %v6231_v11  ;;  %v6632_v27 = vld [vmem:[%s7307_s13 + $0x1] ss:$0 sm:$0xff] }
 0x36f   :  { %5433 = vmatprep.subr.mxu0 %v4451_v29  ;;  %1714 = vperm.xlu0 %5959, %v478_v24  }
 0x370   :  { %5434 = vmatpush3.msra.mxu0 %v4451_v29 }
 0x371   :  { %5435 = vmatprep.subr.mxu0 %v4450_v30 }
 0x372   :  { %5436 = vmatpush3.msra.mxu0 %v4450_v30 }
 0x373   :  { %5438 = vmatmul.mubr.msk.f32.vlgmr.msra.gmra.mxu0 %vm523_vm2, %v6233_v12  ;;  %5485 = vmatprep.subr.mxu0 %v4425_v21 }
 0x374   :  { %5440 = vmatprep.mubr.msk.f32.mxu0 %vm523_vm2, %v6243_v14  ;;  %5486 = vmatpush3.msra.mxu0 %v4425_v21  ;;  %v4675_v21 = vld [vmem:[%s7316_s21 + $0x2] ss:$0 sm:$0xff] }
 0x377   :  { %5441 = vmatmul.mubr.msk.f32.gmra.mxu0 %vm523_vm2, %v6245_v15 }
 0x378   :  { %5443 = vmatprep.mubr.msk.f32.mxu0 %vm523_vm2, %v6251_v16 }
 0x37b   :  { %5444 = vmatmul.mubr.msk.f32.gmra.mxu0 %vm523_vm2, %v6253_v17 }
 0x37c   :  { %5446 = vmatprep.mubr.msk.f32.mxu0 %vm523_vm2, %v6259_v18 }
 0x37f   :  { %5447 = vmatmul.mubr.msk.f32.gmra.mxu0 %vm523_vm2, %v6261_v19 }
 0x3e6   :  { %v1710_v22 = vpop.permute.xlu0 %1709 }
 0x421   :  { %v5371_v33 = vpop.f32.mrf.mxu0 }
 0x422   :  { %v1493_v54 = vadd.f32 %v5371_v33, %v4416_v41 }
 0x423   :  { %v1487_v34 = vpop.f32.mrf.mxu0 }
 0x424   :  { %v1488_v56 = vadd.f32 %v4416_v41, %v1487_v34  ;;  %v1527_v58 = vmax.f32 %v1493_v54, 0.0  ;;  %v4479_v34 = vld [vmem:[%s7351_s30 + $0xb0] sm:$0xff]  ;;  %v4429_v54 = vld [vmem:[%s7347_s6 + $0x118] sm:$0xff] }
 0x425   :  { %v5374_v35 = vpop.f32.mrf.mxu0 }
 0x426   :  { %v1503_v50 = vadd.f32 %v5374_v35, %v4416_v41  ;;  %v1526_v59 = vmax.f32 %v1488_v56, 0.0  ;;  %v4478_v35 = vld [vmem:[%s7351_s30 + $0xa8] sm:$0xff] }
 0x427   :  { %v1497_v36 = vpop.f32.mrf.mxu0 }
 0x428   :  { %v1498_v52 = vadd.f32 %v4416_v41, %v1497_v36  ;;  %v1529_v55 = vmax.f32 %v1503_v50, 0.0  ;;  %v4477_v36 = vld [vmem:[%s7351_s30 + $0xa0] sm:$0xff] }
 0x429   :  { %v5377_v37 = vpop.f32.mrf.mxu0 }
 0x42a   :  { %v1513_v45 = vadd.f32 %v5377_v37, %v4416_v41  ;;  %v1528_v57 = vmax.f32 %v1498_v52, 0.0  ;;  %v4469_v52 = vld [vmem:[%s7351_s30 + $0x60] sm:$0xff] }
 0x42b   :  { %v1507_v39 = vpop.f32.mrf.mxu0 }
 0x42c   :  { %v1508_v48 = vadd.f32 %v4416_v41, %v1507_v39  ;;  %v1531_v51 = vmax.f32 %v1513_v45, 0.0  ;;  %v4476_v39 = vld [vmem:[%s7351_s30 + $0x98] sm:$0xff] }
 0x42d   :  { %v5380_v42 = vpop.f32.mrf.mxu0 }
 0x42e   :  { %v1523_v43 = vadd.f32 %v5380_v42, %v4416_v41  ;;  %v1530_v53 = vmax.f32 %v1508_v48, 0.0 }
 0x42f   :  { %v1517_v44 = vpop.f32.mrf.mxu0 }
 0x430   :  { %v1533_v46 = vmax.f32 %v1523_v43, 0.0  ;;  %v1518_v47 = vadd.f32 %v4416_v41, %v1517_v44  ;;  %v4475_v41 = vld [vmem:[%s7351_s30 + $0x90] sm:$0xff]  ;;  %v4474_v43 = vld [vmem:[%s7351_s30 + $0x88] sm:$0xff]  ;;  %v4473_v44 = vld [vmem:[%s7351_s30 + $0x80] sm:$0xff] }
 0x432   :  { %v1532_v49 = vmax.f32 %v1518_v47, 0.0  ;;  %5381 = vmatprep.subr.mxu1 %v1533_v46  ;;  %v4471_v47 = vld [vmem:[%s7351_s30 + $0x70] sm:$0xff] }
 0x433   :  { %5382 = vmatpush3.msra.mxu1 %v1533_v46  ;;  %v5439_v25 = vpop.f32.mrf.mxu0  ;;  %v4472_v46 = vld [vmem:[%s7351_s30 + $0x78] sm:$0xff] }
 0x434   :  { %5383 = vmatprep.subr.mxu1 %v1532_v49  ;;  %v1846_v50 = vadd.f32 %v5439_v25, %v6632_v27  ;;  %v6698_v25 = vmul.f32 %v4675_v21, %v1710_v22 }
 0x435   :  { %5384 = vmatpush3.msra.mxu1 %v1532_v49  ;;  %v1840_v26 = vpop.f32.mrf.mxu0  ;;  %v4470_v49 = vld [vmem:[%s7351_s30 + $0x68] sm:$0xff] }
 0x436   :  { %5385 = vmatprep.subr.mxu1 %v1531_v51  ;;  %v1841_v28 = vadd.f32 %v6632_v27, %v1840_v26  ;;  %v1715_v26 = vpop.permute.xlu0 %1714 }
 0x437   :  { %5386 = vmatpush3.msra.mxu1 %v1531_v51  ;;  %v5442_v37 = vpop.f32.mrf.mxu0 }
 0x438   :  { %5387 = vmatprep.subr.mxu1 %v1530_v53  ;;  %v1879_v33 = vmax.f32 %v1841_v28, 0.0  ;;  %v1856_v56 = vadd.f32 %v5442_v37, %v6632_v27  ;;  %v6703_v28 = vmul.f32 %v4675_v21, %v1715_v26  ;;  %v4437_v37 = vld [vmem:[%s7347_s6 + $0x158] sm:$0xff]  ;;  %v4439_v21 = vld [vmem:[%s7347_s6 + $0x168] sm:$0xff] }
 0x439   :  { %5388 = vmatpush3.msra.mxu1 %v1530_v53  ;;  %v1850_v42 = vpop.f32.mrf.mxu0 }
 0x43a   :  { %5389 = vmatprep.subr.mxu1 %v1529_v55  ;;  %v1851_v51 = vadd.f32 %v6632_v27, %v1850_v42 }
 0x43b   :  { %5390 = vmatpush3.msra.mxu1 %v1529_v55  ;;  %v5445_v45 = vpop.f32.mrf.mxu0  ;;  %v1880_v55 = vmax.f32 %v1846_v50, 0.0  ;;  %v4435_v50 = vld [vmem:[%s7347_s6 + $0x148] sm:$0xff] }
 0x43c   :  { %5391 = vmatprep.subr.mxu1 %v1528_v57 }
 0x43d   :  { %5392 = vmatpush3.msra.mxu1 %v1528_v57  ;;  %v1860_v48 = vpop.f32.mrf.mxu0  ;;  %v1881_v57 = vmax.f32 %v1851_v51, 0.0  ;;  %v4430_v51 = vld [vmem:[%s7347_s6 + $0x120] sm:$0xff] }
 0x43e   :  { %5393 = vmatprep.subr.mxu1 %v1527_v58 }
 0x43f   :  { %5394 = vmatpush3.msra.mxu1 %v1527_v58  ;;  %v5448_v53 = vpop.f32.mrf.mxu0  ;;  %v1861_v58 = vadd.f32 %v6632_v27, %v1860_v48 }
 0x440   :  { %5395 = vmatprep.subr.mxu1 %v1526_v59 }
 0x441   :  { %5396 = vmatpush3.msra.mxu1 %v1526_v59  ;;  %v4428_v59 = vld [vmem:[%s7347_s6 + $0x110] sm:$0xff] }
 0x442   :  { %5398 = vmatmul.mubr.msk.f32.vlgmr.msra.gmra.mxu1 %vm1245_vm4, %v6589_v3  ;;  %5400 = vmatprep.subr.mxu1 %v1622_v4 }
 0x443   :  { %5401 = vmatpush3.msra.mxu1 %v1622_v4  ;;  %v1870_v4 = vpop.f32.mrf.mxu0 }
 0x444   :  { %5402 = vmatprep.subr.mxu1 %v1621_v5 }
 0x445   :  { %5403 = vmatpush3.msra.mxu1 %v1621_v5  ;;  %v1882_v5 = vmax.f32 %v1856_v56, 0.0  ;;  %v4446_v56 = vld [vmem:[%s7347_s6 + $0x1a0] sm:$0xff] }
 0x446   :  { %5404 = vmatprep.subr.mxu1 %v1620_v6 }
 0x447   :  { %5405 = vmatpush3.msra.mxu1 %v1620_v6  ;;  %v1866_v6 = vadd.f32 %v5445_v45, %v6632_v27 }
 0x448   :  { %5406 = vmatprep.subr.mxu1 %v1619_v7 }
 0x449   :  { %5407 = vmatpush3.msra.mxu1 %v1619_v7  ;;  %v1883_v7 = vmax.f32 %v1861_v58, 0.0 }
 0x44a   :  { %5408 = vmatprep.subr.mxu1 %v1618_v8 }
 0x44b   :  { %5409 = vmatpush3.msra.mxu1 %v1618_v8  ;;  %v1871_v8 = vadd.f32 %v6632_v27, %v1870_v4 }
 0x44c   :  { %5410 = vmatprep.subr.mxu1 %v1617_v9 }
 0x44d   :  { %5411 = vmatpush3.msra.mxu1 %v1617_v9  ;;  %v1884_v9 = vmax.f32 %v1866_v6, 0.0  ;;  %v4443_v6 = vld [vmem:[%s7347_s6 + $0x188] sm:$0xff] }
 0x44e   :  { %5412 = vmatprep.subr.mxu1 %v1616_v10 }
 0x44f   :  { %5413 = vmatpush3.msra.mxu1 %v1616_v10  ;;  %v1876_v10 = vadd.f32 %v5448_v53, %v6632_v27  ;;  %v4449_v53 = vld [vmem:[%s7347_s6 + $0x1b8] sm:$0xff] }
 0x450   :  { %5414 = vmatprep.subr.mxu1 %v1615_v13 }
 0x451   :  { %5415 = vmatpush3.msra.mxu1 %v1615_v13  ;;  %v1885_v13 = vmax.f32 %v1871_v8, 0.0  ;;  %v1886_v23 = vmax.f32 %v1876_v10, 0.0  ;;  %v4442_v8 = vld [vmem:[%s7347_s6 + $0x180] sm:$0xff]  ;;  %v4441_v10 = vld [vmem:[%s7347_s6 + $0x178] sm:$0xff] }
 0x452   :  { %5449 = vmatprep.subr.mxu1 %v4480_v20 }
 0x502   :  { %v5399_v29 = vpop.f32.mrf.mxu1 }
 0x504   :  { %v1606_v30 = vpop.f32.mrf.mxu1 }
 0x505   :  { %5416 = vmatprep.mubr.msk.f32.mxu1 %vm1245_vm4, %v1606_v30  ;;  %v4427_v30 = vld [vmem:[%s7347_s6 + $0x108] sm:$0xff] }
 0x506   :  { %5417 = vmatmul.mubr.msk.f32.vlgmr.msra.gmra.mxu1 %vm1245_vm4, %v5399_v29  ;;  %v4424_v29 = vld [vmem:[%s7347_s6 + $0xf0] sm:$0xff] }
 0x507   :  { %5450 = vmatpush3.msra.mxu1 %v4480_v20  ;;  %5473 = vmatprep.mubr.msk.f32.mxu1 %vm680_vm3, %v1879_v33  ;;  %v4548_v20 = vld [vmem:[%s7316_s21 + $0x1] ss:$0 sm:$0xff]  ;;  %v4423_v33 = vld [vmem:[%s7347_s6 + $0xe8] sm:$0xff] }
 0x508   :  { %5451 = vmatprep.subr.mxu1 %v4479_v34  ;;  %v6696_v24 = vmul.f32 %v4548_v20, %v1710_v22  ;;  %v6701_v27 = vmul.f32 %v4548_v20, %v1715_v26  ;;  %5487 = vmatprep.subr.mxu0 %v4424_v29 }
 0x509   :  { %5452 = vmatpush3.msra.mxu1 %v4479_v34  ;;  %5488 = vmatpush3.msra.mxu0 %v4424_v29  ;;  %v4426_v34 = vld [vmem:[%s7347_s6 + $0x100] sm:$0xff] }
 0x50a   :  { %5453 = vmatprep.subr.mxu1 %v4478_v35  ;;  %5489 = vmatprep.subr.mxu0 %v4423_v33 }
 0x50b   :  { %5454 = vmatpush3.msra.mxu1 %v4478_v35  ;;  %5490 = vmatpush3.msra.mxu0 %v4423_v33  ;;  %v4422_v35 = vld [vmem:[%s7347_s6 + $0xe0] sm:$0xff] }
 0x50c   :  { %5455 = vmatprep.subr.mxu1 %v4477_v36  ;;  %5491 = vmatprep.subr.mxu0 %v4422_v35 }
 0x50d   :  { %5456 = vmatpush3.msra.mxu1 %v4477_v36  ;;  %5492 = vmatpush3.msra.mxu0 %v4422_v35  ;;  %v4433_v36 = vld [vmem:[%s7347_s6 + $0x138] sm:$0xff] }
 0x50e   :  { %5457 = vmatprep.subr.mxu1 %v4476_v39  ;;  %5507 = vmatprep.subr.mxu0 %v4433_v36 }
 0x50f   :  { %5458 = vmatpush3.msra.mxu1 %v4476_v39  ;;  %v4421_v39 = vld [vmem:[%s7316_s21] ss:$0 sm:$0xff] }
 0x510   :  { %5459 = vmatprep.subr.mxu1 %v4475_v41  ;;  %v1724_v42 = vmul.f32 %v4421_v39, %v1715_v26  ;;  %v1723_v45 = vmul.f32 %v4421_v39, %v1710_v22  ;;  %v4438_v22 = vld [vmem:[%s7347_s6 + $0x160] sm:$0xff] }
 0x511   :  { %5460 = vmatpush3.msra.mxu1 %v4475_v41 }
 0x512   :  { %5461 = vmatprep.subr.mxu1 %v4474_v43 }
 0x513   :  { %5462 = vmatpush3.msra.mxu1 %v4474_v43 }
 0x514   :  { %5463 = vmatprep.subr.mxu1 %v4473_v44 }
 0x515   :  { %5464 = vmatpush3.msra.mxu1 %v4473_v44 }
 0x516   :  { %5465 = vmatprep.subr.mxu1 %v4472_v46 }
 0x517   :  { %5466 = vmatpush3.msra.mxu1 %v4472_v46 }
 0x518   :  { %5467 = vmatprep.subr.mxu1 %v4471_v47 }
 0x519   :  { %5468 = vmatpush3.msra.mxu1 %v4471_v47 }
 0x51a   :  { %5469 = vmatprep.subr.mxu1 %v4470_v49 }
 0x51b   :  { %5470 = vmatpush3.msra.mxu1 %v4470_v49  ;;  %v4432_v49 = vld [vmem:[%s7347_s6 + $0x130] sm:$0xff] }
 0x51c   :  { %5471 = vmatprep.subr.mxu1 %v4469_v52 }
 0x51d   :  { %5472 = vmatpush3.msra.mxu1 %v4469_v52  ;;  %v4434_v52 = vld [vmem:[%s7347_s6 + $0x140] sm:$0xff] }
 0x51e   :  { %5474 = vmatmul.mubr.msk.f32.vlgmr.msra.gmra.mxu1 %vm680_vm3, %v1880_v55  ;;  %5496 = vmatprep.subr.mxu1 %v4429_v54  ;;  %v4447_v55 = vld [vmem:[%s7347_s6 + $0x1a8] sm:$0xff] }
 0x51f   :  { %5476 = vmatprep.mubr.msk.f32.mxu1 %vm680_vm3, %v1881_v57  ;;  %5497 = vmatpush3.msra.mxu1 %v4429_v54  ;;  %v4448_v54 = vld [vmem:[%s7347_s6 + $0x1b0] sm:$0xff]  ;;  %v4445_v57 = vld [vmem:[%s7347_s6 + $0x198] sm:$0xff] }
 0x520   :  { %5498 = vmatprep.subr.mxu1 %v4428_v59 }
 0x521   :  { %5499 = vmatpush3.msra.mxu1 %v4428_v59  ;;  %v4482_v59 = vld [vmem:[%s7309_s15 + $0x1] ss:$0 sm:$0xff] }
 0x522   :  { %5477 = vmatmul.mubr.msk.f32.gmra.mxu1 %vm680_vm3, %v1882_v5  ;;  %5500 = vmatprep.subr.mxu1 %v4427_v30 }
 0x523   :  { %5479 = vmatprep.mubr.msk.f32.mxu1 %vm680_vm3, %v1883_v7  ;;  %5501 = vmatpush3.msra.mxu1 %v4427_v30 }
 0x524   :  { %5502 = vmatprep.subr.mxu1 %v4426_v34 }
 0x525   :  { %5503 = vmatpush3.msra.mxu1 %v4426_v34 }
 0x526   :  { %5480 = vmatmul.mubr.msk.f32.gmra.mxu1 %vm680_vm3, %v1884_v9  ;;  %5518 = vmatprep.subr.mxu1 %v4437_v37 }
 0x527   :  { %5482 = vmatprep.mubr.msk.f32.mxu1 %vm680_vm3, %v1885_v13  ;;  %v4440_v13 = vld [vmem:[%s7347_s6 + $0x170] sm:$0xff] }
 0x52a   :  { %5483 = vmatmul.mubr.msk.f32.gmra.mxu1 %vm680_vm3, %v1886_v23 }
 0x5c6   :  { %v5418_v41 = vpop.f32.mrf.mxu1 }
 0x5c7   :  { %v1705_v43 = vadd.f32 %v5418_v41, %v6318_v38  ;;  %v4436_v38 = vld [vmem:[%s7347_s6 + $0x150] sm:$0xff] }
 0x5c8   :  { %v1695_v44 = vpop.f32.mrf.mxu1 }
 0x5c9   :  { %v1704_v46 = vadd.f32 %v1695_v44, %v6320_v40  ;;  %v6733_v48 = vadd.f32 %v1724_v42, %v1705_v43  ;;  %v4431_v40 = vld [vmem:[%s7347_s6 + $0x128] sm:$0xff] }
 0x5cb   :  { %v6731_v47 = vadd.f32 %v1723_v45, %v1704_v46 }
 0x5cd   :  { %5493 = vmatprep.mubr.msk.f32.mxu0 %vm193_vm1, %v6731_v47  ;;  %5504 = vmatprep.mubr.msk.f32.mxu1 %vm193_vm1, %v6731_v47 }
 0x5ce   :  { %5494 = vmatmul.mubr.msk.f32.vlgmr.msra.gmra.mxu0 %vm193_vm1, %v6733_v48  ;;  %5505 = vmatmul.mubr.msk.f32.vlgmr.msra.gmra.mxu1 %vm193_vm1, %v6733_v48 }
 0x5cf   :  { %5508 = vmatpush3.msra.mxu0 %v4433_v36  ;;  %5519 = vmatpush3.msra.mxu1 %v4437_v37 }
 0x5d0   :  { %5509 = vmatprep.subr.mxu0 %v4432_v49  ;;  %5515 = vmatprep.mubr.msk.f32.mxu0 %vm193_vm1, %v6731_v47 }
 0x5d1   :  { %5520 = vmatprep.subr.mxu1 %v4436_v38  ;;  %5526 = vmatprep.mubr.msk.f32.mxu1 %vm193_vm1, %v6731_v47 }
 0x5d2   :  { %5510 = vmatpush3.msra.mxu0 %v4432_v49  ;;  %5521 = vmatpush3.msra.mxu1 %v4436_v38 }
 0x5d3   :  { %5511 = vmatprep.subr.mxu0 %v4431_v40  ;;  %5522 = vmatprep.subr.mxu1 %v4435_v50 }
 0x5d4   :  { %5512 = vmatpush3.msra.mxu0 %v4431_v40  ;;  %5523 = vmatpush3.msra.mxu1 %v4435_v50  ;;  %v4531_v40 = vld [vmem:[%s7310_s18 + $0xf0] sm:$0xff]  ;;  %v4530_v50 = vld [vmem:[%s7310_s18 + $0xe8] sm:$0xff] }
 0x5d5   :  { %5513 = vmatprep.subr.mxu0 %v4430_v51  ;;  %5524 = vmatprep.subr.mxu1 %v4434_v52 }
 0x5d6   :  { %5514 = vmatpush3.msra.mxu0 %v4430_v51  ;;  %5525 = vmatpush3.msra.mxu1 %v4434_v52  ;;  %v4529_v51 = vld [vmem:[%s7310_s18 + $0xe0] sm:$0xff]  ;;  %v4522_v52 = vld [vmem:[%s7310_s18 + $0xa8] sm:$0xff] }
 0x5d7   :  { %5516 = vmatmul.mubr.msk.f32.vlgmr.msra.gmra.mxu0 %vm193_vm1, %v6733_v48  ;;  %5527 = vmatmul.mubr.msk.f32.vlgmr.msra.gmra.mxu1 %vm193_vm1, %v6733_v48 }
 0x5d8   :  { %5529 = vmatprep.subr.mxu0 %v4449_v53  ;;  %5581 = vmatprep.mubr.msk.f32.mxu1 %vm1245_vm4, %v6418_v32  ;;  %v4444_v32 = vld [vmem:[%s7347_s6 + $0x190] sm:$0xff] }
 0x5d9   :  { %5530 = vmatpush3.msra.mxu0 %v4449_v53  ;;  %v4520_v53 = vld [vmem:[%s7310_s18 + $0x98] sm:$0xff] }
 0x5da   :  { %5531 = vmatprep.subr.mxu0 %v4448_v54 }
 0x5db   :  { %5532 = vmatpush3.msra.mxu0 %v4448_v54  ;;  %v4519_v54 = vld [vmem:[%s7310_s18 + $0x90] sm:$0xff] }
 0x5dc   :  { %5533 = vmatprep.subr.mxu0 %v4447_v55 }
 0x5dd   :  { %5534 = vmatpush3.msra.mxu0 %v4447_v55  ;;  %v4518_v55 = vld [vmem:[%s7310_s18 + $0x88] sm:$0xff] }
 0x5de   :  { %5535 = vmatprep.subr.mxu0 %v4446_v56  ;;  %v5475_v58 = vpop.f32.mrf.mxu1 }
 0x5df   :  { %5536 = vmatpush3.msra.mxu0 %v4446_v56  ;;  %v2004_v26 = vadd.f32 %v5475_v58, %v4482_v59  ;;  %v4517_v56 = vld [vmem:[%s7310_s18 + $0x80] sm:$0xff] }
 0x5e0   :  { %5537 = vmatprep.subr.mxu0 %v4445_v57  ;;  %v1998_v4 = vpop.f32.mrf.mxu1 }
 0x5e1   :  { %5538 = vmatpush3.msra.mxu0 %v4445_v57  ;;  %v1999_v5 = vadd.f32 %v4482_v59, %v1998_v4  ;;  %v4585_v57 = vld [vmem:[%s7346_s29 + $0xd0] sm:$0xff] }
 0x5e2   :  { %5539 = vmatprep.subr.mxu0 %v4444_v32  ;;  %v5478_v7 = vpop.f32.mrf.mxu1 }
 0x5e3   :  { %5540 = vmatpush3.msra.mxu0 %v4444_v32  ;;  %5553 = vmatprep.mubr.msk.f32.mxu0 %vm680_vm3, %v1999_v5  ;;  %v2014_v33 = vadd.f32 %v5478_v7, %v4482_v59  ;;  %v4516_v7 = vld [vmem:[%s7311_s17 + $0x1] ss:$0 sm:$0xff] }
 0x5e4   :  { %5541 = vmatprep.subr.mxu0 %v4443_v6  ;;  %v2008_v9 = vpop.f32.mrf.mxu1 }
 0x5e5   :  { %5542 = vmatpush3.msra.mxu0 %v4443_v6  ;;  %v2009_v29 = vadd.f32 %v4482_v59, %v2008_v9 }
 0x5e6   :  { %5543 = vmatprep.subr.mxu0 %v4442_v8  ;;  %v5481_v20 = vpop.f32.mrf.mxu1 }
 0x5e7   :  { %5544 = vmatpush3.msra.mxu0 %v4442_v8  ;;  %v2024_v36 = vadd.f32 %v5481_v20, %v4482_v59 }
 0x5e8   :  { %5545 = vmatprep.subr.mxu0 %v4441_v10  ;;  %v2018_v23 = vpop.f32.mrf.mxu1 }
 0x5e9   :  { %5546 = vmatpush3.msra.mxu0 %v4441_v10  ;;  %v2019_v34 = vadd.f32 %v4482_v59, %v2018_v23 }
 0x5ea   :  { %5547 = vmatprep.subr.mxu0 %v4440_v13  ;;  %v5484_v30 = vpop.f32.mrf.mxu1 }
 0x5eb   :  { %5548 = vmatpush3.msra.mxu0 %v4440_v13  ;;  %v2034_v39 = vadd.f32 %v5484_v30, %v4482_v59 }
 0x5ec   :  { %5549 = vmatprep.subr.mxu0 %v4439_v21  ;;  %v2028_v35 = vpop.f32.mrf.mxu1 }
 0x5ed   :  { %5550 = vmatpush3.msra.mxu0 %v4439_v21  ;;  %v2029_v37 = vadd.f32 %v4482_v59, %v2028_v35 }
 0x5ee   :  { %5551 = vmatprep.subr.mxu0 %v4438_v22 }
 0x5ef   :  { %5552 = vmatpush3.msra.mxu0 %v4438_v22 }
 0x5f0   :  { %5554 = vmatmul.mubr.msk.f32.vlgmr.msra.gmra.mxu0 %vm680_vm3, %v2004_v26 }
 0x5f1   :  { %5556 = vmatprep.mubr.msk.f32.mxu0 %vm680_vm3, %v2009_v29 }
 0x5f4   :  { %5557 = vmatmul.mubr.msk.f32.gmra.mxu0 %vm680_vm3, %v2014_v33 }
 0x5f5   :  { %5559 = vmatprep.mubr.msk.f32.mxu0 %vm680_vm3, %v2019_v34 }
 0x5f8   :  { %5560 = vmatmul.mubr.msk.f32.gmra.mxu0 %vm680_vm3, %v2024_v36 }
 0x5f9   :  { %5562 = vmatprep.mubr.msk.f32.mxu0 %vm680_vm3, %v2029_v37 }
 0x5fc   :  { %5563 = vmatmul.mubr.msk.f32.gmra.mxu0 %vm680_vm3, %v2034_v39  ;;  %v4584_v39 = vld [vmem:[%s7346_s29 + $0xc8] sm:$0xff] }
 0x5fd   :  { %5653 = vmatprep.mubr.msk.f32.mxu0 %vm1245_vm4, %v6579_v31  ;;  %v4532_v31 = vld [vmem:[%s7310_s18 + $0xf8] sm:$0xff] }
 0x68e   :  { %v5506_v41 = vpop.f32.mrf.mxu1  ;;  %v5495_v42 = vpop.f32.mrf.mxu0 }
 0x690   :  { %v2184_v43 = vpop.f32.mrf.mxu1  ;;  %v2109_v44 = vpop.f32.mrf.mxu0 }
 0x697   :  { %v5528_v45 = vpop.f32.mrf.mxu1  ;;  %v5517_v46 = vpop.f32.mrf.mxu0 }
 0x698   :  { %5565 = vmatprep.subr.mxu1 %v5528_v45 }
 0x699   :  { %v2334_v49 = vpop.f32.mrf.mxu1  ;;  %5566 = vmatpush3.msra.mxu1 %v5528_v45  ;;  %v2259_v38 = vpop.f32.mrf.mxu0  ;;  %v4583_v45 = vld [vmem:[%s7346_s29 + $0xc0] sm:$0xff] }
 0x69a   :  { %5567 = vmatprep.subr.mxu1 %v2334_v49 }
 0x69b   :  { %5568 = vmatpush3.msra.mxu1 %v2334_v49 }
 0x69c   :  { %5569 = vmatprep.subr.mxu1 %v5517_v46 }
 0x69d   :  { %5570 = vmatpush3.msra.mxu1 %v5517_v46 }
 0x69e   :  { %5571 = vmatprep.subr.mxu1 %v2259_v38 }
 0x69f   :  { %5572 = vmatpush3.msra.mxu1 %v2259_v38 }
 0x6a0   :  { %5573 = vmatprep.subr.mxu1 %v5506_v41 }
 0x6a1   :  { %5574 = vmatpush3.msra.mxu1 %v5506_v41 }
 0x6a2   :  { %5575 = vmatprep.subr.mxu1 %v2184_v43 }
 0x6a3   :  { %5576 = vmatpush3.msra.mxu1 %v2184_v43 }
 0x6a4   :  { %5577 = vmatprep.subr.mxu1 %v5495_v42 }
 0x6a5   :  { %5578 = vmatpush3.msra.mxu1 %v5495_v42 }
 0x6a6   :  { %5579 = vmatprep.subr.mxu1 %v2109_v44 }
 0x6a7   :  { %5580 = vmatpush3.msra.mxu1 %v2109_v44 }
 0x6a8   :  { %5582 = vmatmul.mubr.msk.f32.vlgmr.msra.gmra.mxu1 %vm1245_vm4, %v6436_v60  ;;  %5593 = vmatprep.subr.mxu1 %v4532_v31  ;;  %v4528_v60 = vld [vmem:[%s7310_s18 + $0xd8] sm:$0xff] }
 0x6a9   :  { %5584 = vmatprep.mubr.msk.f32.mxu1 %vm1245_vm4, %v6441_v61  ;;  %5594 = vmatpush3.msra.mxu1 %v4532_v31  ;;  %v4527_v61 = vld [vmem:[%s7310_s18 + $0xd0] sm:$0xff] }
 0x6aa   :  { %5595 = vmatprep.subr.mxu1 %v4531_v40 }
 0x6ab   :  { %5596 = vmatpush3.msra.mxu1 %v4531_v40 }
 0x6ac   :  { %5585 = vmatmul.mubr.msk.f32.gmra.mxu1 %vm1245_vm4, %v6450_v62  ;;  %5597 = vmatprep.subr.mxu1 %v4530_v50  ;;  %v4526_v62 = vld [vmem:[%s7310_s18 + $0xc8] sm:$0xff] }
 0x6ad   :  { %5587 = vmatprep.mubr.msk.f32.mxu1 %vm1245_vm4, %v6455_v63  ;;  %5598 = vmatpush3.msra.mxu1 %v4530_v50  ;;  %v4525_v63 = vld [vmem:[%s7310_s18 + $0xc0] sm:$0xff]  ;;  %v4582_v50 = vld [vmem:[%s7346_s29 + $0xb8] sm:$0xff] }
 0x6ae   :  { %5599 = vmatprep.subr.mxu1 %v4529_v51 }
 0x6af   :  { %5600 = vmatpush3.msra.mxu1 %v4529_v51 }
 0x6b0   :  { %5588 = vmatmul.mubr.msk.f32.gmra.mxu1 %vm1245_vm4, %v6464_v0  ;;  %5601 = vmatprep.subr.mxu1 %v4528_v60  ;;  %v4524_v0 = vld [vmem:[%s7310_s18 + $0xb8] sm:$0xff]  ;;  %v5555_v58 = vpop.f32.mrf.mxu0 }
 0x6b1   :  { %5590 = vmatprep.mubr.msk.f32.mxu1 %vm1245_vm4, %v6469_v1  ;;  %5602 = vmatpush3.msra.mxu1 %v4528_v60  ;;  %v4523_v1 = vld [vmem:[%s7310_s18 + $0xb0] sm:$0xff] }
 0x6b2   :  { %5603 = vmatprep.subr.mxu1 %v4527_v61  ;;  %v2433_v32 = vpop.f32.mrf.mxu0 }
 0x6b3   :  { %5604 = vmatpush3.msra.mxu1 %v4527_v61 }
 0x6b4   :  { %5591 = vmatmul.mubr.msk.f32.gmra.mxu1 %vm1245_vm4, %v6478_v2  ;;  %5605 = vmatprep.subr.mxu1 %v4526_v62  ;;  %v4521_v2 = vld [vmem:[%s7310_s18 + $0xa0] sm:$0xff]  ;;  %v5558_v59 = vpop.f32.mrf.mxu0 }
 0x6b5   :  { %5606 = vmatpush3.msra.mxu1 %v4526_v62 }
 0x6b6   :  { %5607 = vmatprep.subr.mxu1 %v4525_v63  ;;  %v2443_v4 = vpop.f32.mrf.mxu0 }
 0x6b7   :  { %5608 = vmatpush3.msra.mxu1 %v4525_v63  ;;  %v4581_v63 = vld [vmem:[%s7346_s29 + $0xb0] sm:$0xff] }
 0x6b8   :  { %5609 = vmatprep.subr.mxu1 %v4524_v0  ;;  %v5561_v8 = vpop.f32.mrf.mxu0 }
 0x6b9   :  { %5610 = vmatpush3.msra.mxu1 %v4524_v0 }
 0x6ba   :  { %5611 = vmatprep.subr.mxu1 %v4523_v1  ;;  %v2453_v23 = vpop.f32.mrf.mxu0 }
 0x6bb   :  { %5612 = vmatpush3.msra.mxu1 %v4523_v1 }
 0x6bc   :  { %5613 = vmatprep.subr.mxu1 %v4522_v52  ;;  %v5564_v41 = vpop.f32.mrf.mxu0 }
 0x6bd   :  { %5614 = vmatpush3.msra.mxu1 %v4522_v52 }
 0x6be   :  { %5615 = vmatprep.subr.mxu1 %v4521_v2  ;;  %v2463_v51 = vpop.f32.mrf.mxu0 }
 0x6bf   :  { %5616 = vmatpush3.msra.mxu1 %v4521_v2  ;;  %v4580_v2 = vld [vmem:[%s7346_s29 + $0xa8] sm:$0xff] }
 0x6c0   :  { %5617 = vmatprep.subr.mxu1 %v4520_v53 }
 0x6c1   :  { %5618 = vmatpush3.msra.mxu1 %v4520_v53 }
 0x6c2   :  { %5619 = vmatprep.subr.mxu1 %v4519_v54 }
 0x6c3   :  { %5620 = vmatpush3.msra.mxu1 %v4519_v54  ;;  %v4579_v54 = vld [vmem:[%s7346_s29 + $0xa0] sm:$0xff] }
 0x6c4   :  { %5621 = vmatprep.subr.mxu1 %v4518_v55 }
 0x6c5   :  { %5622 = vmatpush3.msra.mxu1 %v4518_v55 }
 0x6c6   :  { %5623 = vmatprep.subr.mxu1 %v4517_v56 }
 0x6c7   :  { %5624 = vmatpush3.msra.mxu1 %v4517_v56  ;;  %v4578_v56 = vld [vmem:[%s7346_s29 + $0x98] sm:$0xff] }
 0x6c8   :  { %5675 = vmatprep.subr.mxu1 %v4585_v57 }
 0x768   :  { %v5583_v5 = vpop.f32.mrf.mxu1 }
 0x769   :  { %v2544_v6 = vadd.f32 %v5583_v5, %v5555_v58 }
 0x76a   :  { %v2538_v9 = vpop.f32.mrf.mxu1 }
 0x76b   :  { %v2539_v10 = vadd.f32 %v2538_v9, %v2433_v32  ;;  %v2586_v13 = vadd.f32 %v4516_v7, %v2544_v6 }
 0x76c   :  { %v5586_v20 = vpop.f32.mrf.mxu1 }
 0x76d   :  { %v2585_v21 = vadd.f32 %v4516_v7, %v2539_v10  ;;  %v2554_v22 = vadd.f32 %v5586_v20, %v5558_v59  ;;  %v2594_v33 = vmax.f32 %v2586_v13, 0.0 }
 0x76e   :  { %v2548_v26 = vpop.f32.mrf.mxu1 }
 0x76f   :  { %v2593_v29 = vmax.f32 %v2585_v21, 0.0  ;;  %v2549_v30 = vadd.f32 %v2548_v26, %v2443_v4  ;;  %v2588_v34 = vadd.f32 %v4516_v7, %v2554_v22 }
 0x770   :  { %v5589_v35 = vpop.f32.mrf.mxu1 }
 0x771   :  { %v2587_v36 = vadd.f32 %v4516_v7, %v2549_v30  ;;  %v2564_v37 = vadd.f32 %v5589_v35, %v5561_v8  ;;  %5625 = vmatprep.mubr.f32.mxu1 %v2593_v29  ;;  %v2596_v46 = vmax.f32 %v2588_v34, 0.0  ;;  %v4544_v30 = vld [vmem:[%s7314_s20 + $0x78] sm:$0xff]  ;;  %v4542_v34 = vld [vmem:[%s7314_s20 + $0x68] sm:$0xff]  ;;  %v4541_v35 = vld [vmem:[%s7314_s20 + $0x60] sm:$0xff] }
 0x772   :  { %v2558_v42 = vpop.f32.mrf.mxu1  ;;  %5626 = vmatmul.mubr.f32.vlgmr.msra.gmra.mxu1 %v2594_v33  ;;  %v4543_v33 = vld [vmem:[%s7314_s20 + $0x70] sm:$0xff] }
 0x773   :  { %v2595_v43 = vmax.f32 %v2587_v36, 0.0  ;;  %v2559_v44 = vadd.f32 %v2558_v42, %v2453_v23  ;;  %5676 = vmatpush3.msra.mxu1 %v4585_v57  ;;  %v2590_v49 = vadd.f32 %v4516_v7, %v2564_v37  ;;  %v4577_v57 = vld [vmem:[%s7346_s29 + $0x90] sm:$0xff]  ;;  %v4540_v36 = vld [vmem:[%s7314_s20 + $0x58] sm:$0xff]  ;;  %v4538_v37 = vld [vmem:[%s7314_s20 + $0x48] sm:$0xff] }
 0x774   :  { %5677 = vmatprep.subr.mxu1 %v4584_v39  ;;  %v5592_v38 = vpop.f32.mrf.mxu1  ;;  %v4552_v42 = vld [vmem:[%s7347_s6 + $0x1d8] sm:$0xff] }
 0x775   :  { %v2589_v31 = vadd.f32 %v4516_v7, %v2559_v44  ;;  %v2574_v40 = vadd.f32 %v5592_v38, %v5564_v41  ;;  %5678 = vmatpush3.msra.mxu1 %v4584_v39  ;;  %5628 = vmatprep.mubr.f32.mxu1 %v2595_v43  ;;  %v2598_v0 = vmax.f32 %v2590_v49, 0.0  ;;  %v4537_v39 = vld [vmem:[%s7314_s20 + $0x40] sm:$0xff]  ;;  %v4607_v41 = vld [vmem:[%s7351_s30 + $0x118] sm:$0xff] }
 0x776   :  { %5679 = vmatprep.subr.mxu1 %v4583_v45  ;;  %v2568_v60 = vpop.f32.mrf.mxu1  ;;  %5629 = vmatmul.mubr.f32.gmra.mxu1 %v2596_v46 }
 0x777   :  { %v2597_v61 = vmax.f32 %v2589_v31, 0.0  ;;  %v2569_v62 = vadd.f32 %v2568_v60, %v2463_v51  ;;  %5680 = vmatpush3.msra.mxu1 %v4583_v45  ;;  %v2592_v1 = vadd.f32 %v4516_v7, %v2574_v40  ;;  %v6966_v45 = vld [vmem:[%s7307_s13 + $0x2] ss:$0 sm:$0xff]  ;;  %v4606_v40 = vld [vmem:[%s7351_s30 + $0x110] sm:$0xff] }
 0x778   :  { %5681 = vmatprep.subr.mxu1 %v4582_v50  ;;  %v4604_v51 = vld [vmem:[%s7351_s30 + $0x100] sm:$0xff] }
 0x779   :  { %v2591_v52 = vadd.f32 %v4516_v7, %v2569_v62  ;;  %5682 = vmatpush3.msra.mxu1 %v4582_v50  ;;  %5631 = vmatprep.mubr.f32.mxu1 %v2597_v61  ;;  %v2600_v55 = vmax.f32 %v2592_v1, 0.0  ;;  %v4605_v50 = vld [vmem:[%s7351_s30 + $0x108] sm:$0xff]  ;;  %v4603_v61 = vld [vmem:[%s7351_s30 + $0xf8] sm:$0xff]  ;;  %v4602_v62 = vld [vmem:[%s7351_s30 + $0xf0] sm:$0xff] }
 0x77a   :  { %5683 = vmatprep.subr.mxu1 %v4581_v63  ;;  %5632 = vmatmul.mubr.f32.gmra.mxu1 %v2598_v0  ;;  %v4601_v0 = vld [vmem:[%s7351_s30 + $0xe8] sm:$0xff]  ;;  %v4600_v1 = vld [vmem:[%s7351_s30 + $0xe0] sm:$0xff] }
 0x77b   :  { %v2599_v53 = vmax.f32 %v2591_v52, 0.0  ;;  %5684 = vmatpush3.msra.mxu1 %v4581_v63 }
 0x77c   :  { %5685 = vmatprep.subr.mxu1 %v4580_v2 }
 0x77d   :  { %5686 = vmatpush3.msra.mxu1 %v4580_v2  ;;  %5634 = vmatprep.mubr.f32.mxu1 %v2599_v53  ;;  %v4599_v2 = vld [vmem:[%s7351_s30 + $0xd8] sm:$0xff]  ;;  %v4598_v53 = vld [vmem:[%s7351_s30 + $0xd0] sm:$0xff] }
 0x77e   :  { %5687 = vmatprep.subr.mxu1 %v4579_v54  ;;  %5635 = vmatmul.mubr.f32.gmra.mxu1 %v2600_v55  ;;  %v4597_v55 = vld [vmem:[%s7351_s30 + $0xc8] sm:$0xff] }
 0x77f   :  { %5688 = vmatpush3.msra.mxu1 %v4579_v54  ;;  %5693 = vmatprep.mubr.msk.f32.mxu1 %vm523_vm2, %v6231_v11 }
 0x780   :  { %5689 = vmatprep.subr.mxu1 %v4578_v56 }
 0x781   :  { %5690 = vmatpush3.msra.mxu1 %v4578_v56 }
 0x782   :  { %5691 = vmatprep.subr.mxu1 %v4577_v57 }
 0x783   :  { %5692 = vmatpush3.msra.mxu1 %v4577_v57 }
 0x784   :  { %5694 = vmatmul.mubr.msk.f32.vlgmr.msra.gmra.mxu1 %vm523_vm2, %v6233_v12  ;;  %5741 = vmatprep.subr.mxu1 %v4552_v42 }
 0x785   :  { %5696 = vmatprep.mubr.msk.f32.mxu1 %vm523_vm2, %v6243_v14  ;;  %5742 = vmatpush3.msra.mxu1 %v4552_v42  ;;  %v5976_v42 = vld [vmem:[%s7308_s9] sm:$0xff] }
 0x788   :  { %5697 = vmatmul.mubr.msk.f32.gmra.mxu1 %vm523_vm2, %v6245_v15  ;;  %v4534_v15 = vld [vmem:[%s7313_s19 + $0x1] ss:$0 sm:$0xff] }
 0x789   :  { %5699 = vmatprep.mubr.msk.f32.mxu1 %vm523_vm2, %v6251_v16 }
 0x78c   :  { %5700 = vmatmul.mubr.msk.f32.gmra.mxu1 %vm523_vm2, %v6253_v17 }
 0x78d   :  { %5702 = vmatprep.mubr.msk.f32.mxu1 %vm523_vm2, %v6259_v18 }
 0x790   :  { %5703 = vmatmul.mubr.msk.f32.gmra.mxu1 %vm523_vm2, %v6261_v19 }
 0x832   :  { %v5627_v11 = vpop.f32.mrf.mxu1 }
 0x833   :  { %v2698_v20 = vadd.f32 %v5627_v11, %v4534_v15  ;;  %v4596_v11 = vld [vmem:[%s7351_s30 + $0xc0] sm:$0xff] }
 0x834   :  { %v2692_v12 = vpop.f32.mrf.mxu1 }
 0x835   :  { %v2693_v22 = vadd.f32 %v4534_v15, %v2692_v12  ;;  %v2732_v26 = vmax.f32 %v2698_v20, 0.0  ;;  %v4550_v20 = vld [vmem:[%s7347_s6 + $0x1c8] sm:$0xff] }
 0x836   :  { %v5630_v58 = vpop.f32.mrf.mxu1 }
 0x837   :  { %v2708_v19 = vadd.f32 %v5630_v58, %v4534_v15  ;;  %v2731_v29 = vmax.f32 %v2693_v22, 0.0  ;;  %v4556_v58 = vld [vmem:[%s7347_s6 + $0x1f8] sm:$0xff]  ;;  %v4549_v22 = vld [vmem:[%s7347_s6 + $0x1c0] sm:$0xff] }
 0x838   :  { %v2702_v32 = vpop.f32.mrf.mxu1 }
 0x839   :  { %v2703_v10 = vadd.f32 %v4534_v15, %v2702_v32  ;;  %v2734_v21 = vmax.f32 %v2708_v19, 0.0 }
 0x83a   :  { %v5633_v14 = vpop.f32.mrf.mxu1 }
 0x83b   :  { %v2718_v17 = vadd.f32 %v5633_v14, %v4534_v15  ;;  %v2733_v23 = vmax.f32 %v2703_v10, 0.0  ;;  %v4551_v10 = vld [vmem:[%s7347_s6 + $0x1d0] sm:$0xff] }
 0x83c   :  { %v2712_v59 = vpop.f32.mrf.mxu1  ;;  %5743 = vmatprep.subr.mxu1 %v4551_v10 }
 0x83d   :  { %v2713_v18 = vadd.f32 %v4534_v15, %v2712_v59  ;;  %v2736_v9 = vmax.f32 %v2718_v17, 0.0  ;;  %5744 = vmatpush3.msra.mxu1 %v4551_v10  ;;  %v4657_v10 = vld [vmem:[%s7310_s18 + $0x168] sm:$0xff] }
 0x83e   :  { %v5636_v16 = vpop.f32.mrf.mxu1  ;;  %5745 = vmatprep.subr.mxu1 %v4550_v20 }
 0x83f   :  { %v2728_v4 = vadd.f32 %v5636_v16, %v4534_v15  ;;  %v2735_v13 = vmax.f32 %v2713_v18, 0.0  ;;  %v4555_v16 = vld [vmem:[%s7347_s6 + $0x1f0] sm:$0xff]  ;;  %5746 = vmatpush3.msra.mxu1 %v4550_v20  ;;  %v5980_v20 = vld [vmem:[%s7308_s9 + $0x18] sm:$0xff] }
 0x840   :  { %v2722_v5 = vpop.f32.mrf.mxu1  ;;  %5747 = vmatprep.subr.mxu1 %v4549_v22 }
 0x841   :  { %v2738_v6 = vmax.f32 %v2728_v4, 0.0  ;;  %v2723_v7 = vadd.f32 %v4534_v15, %v2722_v5  ;;  %5748 = vmatpush3.msra.mxu1 %v4549_v22  ;;  %v4655_v22 = vld [vmem:[%s7310_s18 + $0x158] sm:$0xff] }
 0x843   :  { %v2737_v8 = vmax.f32 %v2723_v7, 0.0  ;;  %5637 = vmatprep.subr.mxu0 %v2738_v6 }
 0x844   :  { %5638 = vmatpush3.msra.mxu0 %v2738_v6  ;;  %v5695_v43 = vpop.f32.mrf.mxu1 }
 0x845   :  { %5639 = vmatprep.subr.mxu0 %v2737_v8  ;;  %v3037_v56 = vadd.f32 %v5695_v43, %v6966_v45  ;;  %v4574_v43 = vld [vmem:[%s7347_s6 + $0x288] sm:$0xff] }
 0x846   :  { %5640 = vmatpush3.msra.mxu0 %v2737_v8  ;;  %v3031_v44 = vpop.f32.mrf.mxu1 }
 0x847   :  { %5641 = vmatprep.subr.mxu0 %v2736_v9  ;;  %v3032_v46 = vadd.f32 %v6966_v45, %v3031_v44  ;;  %v3071_v32 = vmax.f32 %v3037_v56, 0.0  ;;  %v4573_v44 = vld [vmem:[%s7347_s6 + $0x280] sm:$0xff] }
 0x848   :  { %5642 = vmatpush3.msra.mxu0 %v2736_v9  ;;  %v5698_v60 = vpop.f32.mrf.mxu1 }
 0x849   :  { %5643 = vmatprep.subr.mxu0 %v2735_v13  ;;  %v3070_v31 = vmax.f32 %v3032_v46, 0.0  ;;  %v3047_v14 = vadd.f32 %v5698_v60, %v6966_v45  ;;  %v4569_v60 = vld [vmem:[%s7347_s6 + $0x260] sm:$0xff] }
 0x84a   :  { %5644 = vmatpush3.msra.mxu0 %v2735_v13  ;;  %v3041_v63 = vpop.f32.mrf.mxu1  ;;  %v4554_v13 = vld [vmem:[%s7347_s6 + $0x1e8] sm:$0xff] }
 0x84b   :  { %5645 = vmatprep.subr.mxu0 %v2734_v21  ;;  %v3042_v57 = vadd.f32 %v6966_v45, %v3041_v63  ;;  %v3073_v5 = vmax.f32 %v3047_v14, 0.0  ;;  %v4567_v63 = vld [vmem:[%s7347_s6 + $0x250] sm:$0xff]  ;;  %v5977_v14 = vld [vmem:[%s7312_s10] sm:$0xff] }
 0x84c   :  { %5646 = vmatpush3.msra.mxu0 %v2734_v21  ;;  %v5701_v52 = vpop.f32.mrf.mxu1  ;;  %v4553_v21 = vld [vmem:[%s7347_s6 + $0x1e0] sm:$0xff] }
 0x84d   :  { %5647 = vmatprep.subr.mxu0 %v2733_v23  ;;  %v3072_v59 = vmax.f32 %v3042_v57, 0.0  ;;  %v3057_v17 = vadd.f32 %v5701_v52, %v6966_v45  ;;  %v4565_v52 = vld [vmem:[%s7347_s6 + $0x240] sm:$0xff] }
 0x84e   :  { %5648 = vmatpush3.msra.mxu0 %v2733_v23  ;;  %v3051_v54 = vpop.f32.mrf.mxu1  ;;  %v4560_v23 = vld [vmem:[%s7347_s6 + $0x218] sm:$0xff] }
 0x84f   :  { %5649 = vmatprep.subr.mxu0 %v2732_v26  ;;  %v3052_v15 = vadd.f32 %v6966_v45, %v3051_v54  ;;  %v3075_v18 = vmax.f32 %v3057_v17, 0.0  ;;  %5763 = vmatprep.subr.mxu1 %v4560_v23 }
 0x850   :  { %5650 = vmatpush3.msra.mxu0 %v2732_v26  ;;  %v5704_v12 = vpop.f32.mrf.mxu1  ;;  %v4564_v26 = vld [vmem:[%s7347_s6 + $0x238] sm:$0xff] }
 0x851   :  { %5651 = vmatprep.subr.mxu0 %v2731_v29  ;;  %v3074_v6 = vmax.f32 %v3052_v15, 0.0  ;;  %v3067_v8 = vadd.f32 %v5704_v12, %v6966_v45 }
 0x852   :  { %5652 = vmatpush3.msra.mxu0 %v2731_v29  ;;  %v3061_v4 = vpop.f32.mrf.mxu1 }
 0x853   :  { %5654 = vmatmul.mubr.msk.f32.vlgmr.msra.gmra.mxu0 %vm1245_vm4, %v6589_v3  ;;  %5656 = vmatprep.subr.mxu0 %v4544_v30  ;;  %v4539_v3 = vld [vmem:[%s7314_s20 + $0x50] sm:$0xff]  ;;  %v3062_v7 = vadd.f32 %v6966_v45, %v3061_v4  ;;  %v3077_v9 = vmax.f32 %v3067_v8, 0.0  ;;  %v4572_v45 = vld [vmem:[%s7347_s6 + $0x278] sm:$0xff] }
 0x854   :  { %5657 = vmatpush3.msra.mxu0 %v4544_v30  ;;  %v4658_v8 = vld [vmem:[%s7310_s18 + $0x170] sm:$0xff] }
 0x855   :  { %5658 = vmatprep.subr.mxu0 %v4543_v33  ;;  %v3076_v19 = vmax.f32 %v3062_v7, 0.0 }
 0x856   :  { %5659 = vmatpush3.msra.mxu0 %v4543_v33 }
 0x857   :  { %5660 = vmatprep.subr.mxu0 %v4542_v34 }
 0x858   :  { %5661 = vmatpush3.msra.mxu0 %v4542_v34 }
 0x859   :  { %5662 = vmatprep.subr.mxu0 %v4541_v35 }
 0x85a   :  { %5663 = vmatpush3.msra.mxu0 %v4541_v35 }
 0x85b   :  { %5664 = vmatprep.subr.mxu0 %v4540_v36 }
 0x85c   :  { %5665 = vmatpush3.msra.mxu0 %v4540_v36 }
 0x85d   :  { %5666 = vmatprep.subr.mxu0 %v4539_v3 }
 0x85e   :  { %5667 = vmatpush3.msra.mxu0 %v4539_v3  ;;  %v4559_v3 = vld [vmem:[%s7347_s6 + $0x210] sm:$0xff] }
 0x85f   :  { %5668 = vmatprep.subr.mxu0 %v4538_v37 }
 0x860   :  { %5669 = vmatpush3.msra.mxu0 %v4538_v37  ;;  %v4561_v37 = vld [vmem:[%s7347_s6 + $0x220] sm:$0xff] }
 0x861   :  { %5670 = vmatprep.subr.mxu0 %v4537_v39 }
 0x862   :  { %5671 = vmatpush3.msra.mxu0 %v4537_v39  ;;  %v4576_v39 = vld [vmem:[%s7347_s6 + $0x298] sm:$0xff] }
 0x863   :  { %5705 = vmatprep.subr.mxu0 %v4607_v41 }
 0x913   :  { %v5655_v49 = vpop.f32.mrf.mxu0 }
 0x915   :  { %v2805_v38 = vpop.f32.mrf.mxu0 }
 0x916   :  { %5672 = vmatprep.mubr.msk.f32.mxu0 %vm1245_vm4, %v2805_v38  ;;  %v4609_v38 = vld [vmem:[%s7309_s15 + $0x2] ss:$0 sm:$0xff] }
 0x917   :  { %5673 = vmatmul.mubr.msk.f32.vlgmr.msra.gmra.mxu0 %vm1245_vm4, %v5655_v49  ;;  %v4571_v49 = vld [vmem:[%s7347_s6 + $0x270] sm:$0xff] }
 0x918   :  { %5706 = vmatpush3.msra.mxu0 %v4607_v41  ;;  %5729 = vmatprep.mubr.msk.f32.mxu0 %vm680_vm3, %v3070_v31  ;;  %v4575_v41 = vld [vmem:[%s7347_s6 + $0x290] sm:$0xff] }
 0x919   :  { %5707 = vmatprep.subr.mxu0 %v4606_v40 }
 0x91a   :  { %5708 = vmatpush3.msra.mxu0 %v4606_v40 }
 0x91b   :  { %5709 = vmatprep.subr.mxu0 %v4605_v50 }
 0x91c   :  { %5710 = vmatpush3.msra.mxu0 %v4605_v50  ;;  %v4570_v50 = vld [vmem:[%s7347_s6 + $0x268] sm:$0xff] }
 0x91d   :  { %5711 = vmatprep.subr.mxu0 %v4604_v51 }
 0x91e   :  { %5712 = vmatpush3.msra.mxu0 %v4604_v51 }
 0x91f   :  { %5713 = vmatprep.subr.mxu0 %v4603_v61 }
 0x920   :  { %5714 = vmatpush3.msra.mxu0 %v4603_v61 }
 0x921   :  { %5715 = vmatprep.subr.mxu0 %v4602_v62 }
 0x922   :  { %5716 = vmatpush3.msra.mxu0 %v4602_v62  ;;  %v4568_v62 = vld [vmem:[%s7347_s6 + $0x258] sm:$0xff] }
 0x923   :  { %5717 = vmatprep.subr.mxu0 %v4601_v0 }
 0x924   :  { %5718 = vmatpush3.msra.mxu0 %v4601_v0 }
 0x925   :  { %5719 = vmatprep.subr.mxu0 %v4600_v1 }
 0x926   :  { %5720 = vmatpush3.msra.mxu0 %v4600_v1  ;;  %v4566_v1 = vld [vmem:[%s7347_s6 + $0x248] sm:$0xff] }
 0x927   :  { %5721 = vmatprep.subr.mxu0 %v4599_v2 }
 0x928   :  { %5722 = vmatpush3.msra.mxu0 %v4599_v2 }
 0x929   :  { %5723 = vmatprep.subr.mxu0 %v4598_v53 }
 0x92a   :  { %5724 = vmatpush3.msra.mxu0 %v4598_v53 }
 0x92b   :  { %5725 = vmatprep.subr.mxu0 %v4597_v55 }
 0x92c   :  { %5726 = vmatpush3.msra.mxu0 %v4597_v55 }
 0x92d   :  { %5727 = vmatprep.subr.mxu0 %v4596_v11 }
 0x92e   :  { %5728 = vmatpush3.msra.mxu0 %v4596_v11 }
 0x92f   :  { %5730 = vmatmul.mubr.msk.f32.vlgmr.msra.gmra.mxu0 %vm680_vm3, %v3071_v32  ;;  %5752 = vmatprep.subr.mxu0 %v4556_v58 }
 0x930   :  { %5732 = vmatprep.mubr.msk.f32.mxu0 %vm680_vm3, %v3072_v59  ;;  %5753 = vmatpush3.msra.mxu0 %v4556_v58 }
 0x931   :  { %5754 = vmatprep.subr.mxu0 %v4555_v16 }
 0x932   :  { %5755 = vmatpush3.msra.mxu0 %v4555_v16 }
 0x933   :  { %5733 = vmatmul.mubr.msk.f32.gmra.mxu0 %vm680_vm3, %v3073_v5  ;;  %5756 = vmatprep.subr.mxu0 %v4554_v13 }
 0x934   :  { %5735 = vmatprep.mubr.msk.f32.mxu0 %vm680_vm3, %v3074_v6  ;;  %5757 = vmatpush3.msra.mxu0 %v4554_v13  ;;  %v4656_v13 = vld [vmem:[%s7310_s18 + $0x160] sm:$0xff] }
 0x935   :  { %5758 = vmatprep.subr.mxu0 %v4553_v21 }
 0x936   :  { %5759 = vmatpush3.msra.mxu0 %v4553_v21  ;;  %v5981_v21 = vld [vmem:[%s7308_s9 + $0x20] sm:$0xff] }
 0x937   :  { %5736 = vmatmul.mubr.msk.f32.gmra.mxu0 %vm680_vm3, %v3075_v18  ;;  %5774 = vmatprep.subr.mxu0 %v4564_v26  ;;  %v4659_v18 = vld [vmem:[%s7310_s18 + $0x178] sm:$0xff] }
 0x938   :  { %5738 = vmatprep.mubr.msk.f32.mxu0 %vm680_vm3, %v3076_v19  ;;  %v5978_v19 = vld [vmem:[%s7308_s9 + $0x8] sm:$0xff] }
 0x93b   :  { %5739 = vmatmul.mubr.msk.f32.gmra.mxu0 %vm680_vm3, %v3077_v9  ;;  %v5979_v9 = vld [vmem:[%s7308_s9 + $0x10] sm:$0xff] }
 0x9d7   :  { %v5674_v29 = vpop.f32.mrf.mxu0 }
 0x9d8   :  { %v2905_v30 = vadd.f32 %v5674_v29, %v6733_v48  ;;  %v4557_v48 = vld [vmem:[%s7347_s6 + $0x200] sm:$0xff]  ;;  %v5983_v29 = vld [vmem:[%s7308_s9 + $0x30] sm:$0xff] }
 0x9d9   :  { %v2895_v33 = vpop.f32.mrf.mxu0 }
 0x9da   :  { %v2904_v34 = vadd.f32 %v2895_v33, %v6731_v47  ;;  %v7052_v36 = vadd.f32 %v6701_v27, %v2905_v30  ;;  %v4558_v27 = vld [vmem:[%s7347_s6 + $0x208] sm:$0xff]  ;;  %v4652_v33 = vld [vmem:[%s7310_s18 + $0x140] sm:$0xff] }
 0x9db   :  { %v4562_v47 = vld [vmem:[%s7347_s6 + $0x228] sm:$0xff] }
 0x9dc   :  { %v7049_v35 = vadd.f32 %v6696_v24, %v2904_v34  ;;  %v4563_v24 = vld [vmem:[%s7347_s6 + $0x230] sm:$0xff]  ;;  %v4653_v30 = vld [vmem:[%s7310_s18 + $0x148] sm:$0xff]  ;;  %v5984_v34 = vld [vmem:[%s7308_s9 + $0x38] sm:$0xff] }
 0x9de   :  { %5749 = vmatprep.mubr.msk.f32.mxu1 %vm193_vm1, %v7049_v35  ;;  %5760 = vmatprep.mubr.msk.f32.mxu0 %vm193_vm1, %v7049_v35 }
 0x9df   :  { %5750 = vmatmul.mubr.msk.f32.vlgmr.msra.gmra.mxu1 %vm193_vm1, %v7052_v36  ;;  %5761 = vmatmul.mubr.msk.f32.vlgmr.msra.gmra.mxu0 %vm193_vm1, %v7052_v36 }
 0x9e0   :  { %5764 = vmatpush3.msra.mxu1 %v4560_v23  ;;  %5775 = vmatpush3.msra.mxu0 %v4564_v26  ;;  %v4654_v23 = vld [vmem:[%s7310_s18 + $0x150] sm:$0xff]  ;;  %v5982_v26 = vld [vmem:[%s7308_s9 + $0x28] sm:$0xff] }
 0x9e1   :  { %5765 = vmatprep.subr.mxu1 %v4559_v3  ;;  %5771 = vmatprep.mubr.msk.f32.mxu1 %vm193_vm1, %v7049_v35 }
 0x9e2   :  { %5776 = vmatprep.subr.mxu0 %v4563_v24  ;;  %5782 = vmatprep.mubr.msk.f32.mxu0 %vm193_vm1, %v7049_v35 }
 0x9e3   :  { %5766 = vmatpush3.msra.mxu1 %v4559_v3  ;;  %5777 = vmatpush3.msra.mxu0 %v4563_v24  ;;  %v4651_v3 = vld [vmem:[%s7310_s18 + $0x138] sm:$0xff]  ;;  %v4650_v24 = vld [vmem:[%s7310_s18 + $0x130] sm:$0xff] }
 0x9e4   :  { %5767 = vmatprep.subr.mxu1 %v4558_v27  ;;  %5778 = vmatprep.subr.mxu0 %v4562_v47 }
 0x9e5   :  { %5768 = vmatpush3.msra.mxu1 %v4558_v27  ;;  %5779 = vmatpush3.msra.mxu0 %v4562_v47  ;;  %v4649_v27 = vld [vmem:[%s7310_s18 + $0x128] sm:$0xff]  ;;  %v4648_v47 = vld [vmem:[%s7310_s18 + $0x120] sm:$0xff] }
 0x9e6   :  { %5769 = vmatprep.subr.mxu1 %v4557_v48  ;;  %5780 = vmatprep.subr.mxu0 %v4561_v37 }
 0x9e7   :  { %5770 = vmatpush3.msra.mxu1 %v4557_v48  ;;  %5781 = vmatpush3.msra.mxu0 %v4561_v37  ;;  %v4647_v48 = vld [vmem:[%s7310_s18 + $0x118] sm:$0xff]  ;;  %v4646_v37 = vld [vmem:[%s7310_s18 + $0x110] sm:$0xff] }
 0x9e8   :  { %5772 = vmatmul.mubr.msk.f32.vlgmr.msra.gmra.mxu1 %vm193_vm1, %v7052_v36  ;;  %5783 = vmatmul.mubr.msk.f32.vlgmr.msra.gmra.mxu0 %vm193_vm1, %v7052_v36 }
 0x9e9   :  { %5785 = vmatprep.subr.mxu1 %v4576_v39  ;;  %5837 = vmatprep.mubr.msk.f32.mxu0 %vm1245_vm4, %v5976_v42 }
 0x9ea   :  { %5786 = vmatpush3.msra.mxu1 %v4576_v39  ;;  %v4645_v39 = vld [vmem:[%s7310_s18 + $0x108] sm:$0xff] }
 0x9eb   :  { %5787 = vmatprep.subr.mxu1 %v4575_v41 }
 0x9ec   :  { %5788 = vmatpush3.msra.mxu1 %v4575_v41  ;;  %v4644_v41 = vld [vmem:[%s7310_s18 + $0x100] sm:$0xff] }
 0x9ed   :  { %5789 = vmatprep.subr.mxu1 %v4574_v43 }
 0x9ee   :  { %5790 = vmatpush3.msra.mxu1 %v4574_v43 }
 0x9ef   :  { %5791 = vmatprep.subr.mxu1 %v4573_v44  ;;  %v5731_v46 = vpop.f32.mrf.mxu0 }
 0x9f0   :  { %5792 = vmatpush3.msra.mxu1 %v4573_v44  ;;  %v3195_v53 = vadd.f32 %v5731_v46, %v4609_v38 }
 0x9f1   :  { %5793 = vmatprep.subr.mxu1 %v4572_v45  ;;  %v3189_v31 = vpop.f32.mrf.mxu0 }
 0x9f2   :  { %5794 = vmatpush3.msra.mxu1 %v4572_v45  ;;  %v3190_v40 = vadd.f32 %v4609_v38, %v3189_v31 }
 0x9f3   :  { %5795 = vmatprep.subr.mxu1 %v4571_v49  ;;  %v5734_v51 = vpop.f32.mrf.mxu0 }
 0x9f4   :  { %5796 = vmatpush3.msra.mxu1 %v4571_v49  ;;  %5809 = vmatprep.mubr.msk.f32.mxu1 %vm680_vm3, %v3190_v40  ;;  %v3205_v56 = vadd.f32 %v5734_v51, %v4609_v38 }
 0x9f5   :  { %5797 = vmatprep.subr.mxu1 %v4570_v50  ;;  %v3199_v61 = vpop.f32.mrf.mxu0 }
 0x9f6   :  { %5798 = vmatpush3.msra.mxu1 %v4570_v50  ;;  %v3200_v54 = vadd.f32 %v4609_v38, %v3199_v61 }
 0x9f7   :  { %5799 = vmatprep.subr.mxu1 %v4569_v60  ;;  %v5737_v0 = vpop.f32.mrf.mxu0 }
 0x9f8   :  { %5800 = vmatpush3.msra.mxu1 %v4569_v60  ;;  %v3215_v12 = vadd.f32 %v5737_v0, %v4609_v38 }
 0x9f9   :  { %5801 = vmatprep.subr.mxu1 %v4568_v62  ;;  %v3209_v2 = vpop.f32.mrf.mxu0 }
 0x9fa   :  { %5802 = vmatpush3.msra.mxu1 %v4568_v62  ;;  %v3210_v57 = vadd.f32 %v4609_v38, %v3209_v2 }
 0x9fb   :  { %5803 = vmatprep.subr.mxu1 %v4567_v63  ;;  %v5740_v55 = vpop.f32.mrf.mxu0 }
 0x9fc   :  { %5804 = vmatpush3.msra.mxu1 %v4567_v63  ;;  %v3225_v32 = vadd.f32 %v5740_v55, %v4609_v38 }
 0x9fd   :  { %5805 = vmatprep.subr.mxu1 %v4566_v1  ;;  %v3219_v11 = vpop.f32.mrf.mxu0 }
 0x9fe   :  { %5806 = vmatpush3.msra.mxu1 %v4566_v1  ;;  %v3220_v58 = vadd.f32 %v4609_v38, %v3219_v11  ;;  %v4643_v38 = vld [vmem:[%s7311_s17 + $0x2] ss:$0 sm:$0xff] }
 0x9ff   :  { %5807 = vmatprep.subr.mxu1 %v4565_v52 }
 0xa00   :  { %5808 = vmatpush3.msra.mxu1 %v4565_v52 }
 0xa01   :  { %5810 = vmatmul.mubr.msk.f32.vlgmr.msra.gmra.mxu1 %vm680_vm3, %v3195_v53 }
 0xa02   :  { %5812 = vmatprep.mubr.msk.f32.mxu1 %vm680_vm3, %v3200_v54 }
 0xa05   :  { %5813 = vmatmul.mubr.msk.f32.gmra.mxu1 %vm680_vm3, %v3205_v56 }
 0xa06   :  { %5815 = vmatprep.mubr.msk.f32.mxu1 %vm680_vm3, %v3210_v57 }
 0xa09   :  { %5816 = vmatmul.mubr.msk.f32.gmra.mxu1 %vm680_vm3, %v3215_v12 }
 0xa0a   :  { %5818 = vmatprep.mubr.msk.f32.mxu1 %vm680_vm3, %v3220_v58 }
 0xa0d   :  { %5819 = vmatmul.mubr.msk.f32.gmra.mxu1 %vm680_vm3, %v3225_v32 }
 0xa0e   :  { %5909 = vmatprep.mubr.msk.f32.mxu1 %vm1245_vm4, %v5977_v14 }
 0xa9f   :  { %v5762_v59 = vpop.f32.mrf.mxu0  ;;  %v5751_v15 = vpop.f32.mrf.mxu1 }
 0xaa1   :  { %v3375_v16 = vpop.f32.mrf.mxu0  ;;  %v3300_v4 = vpop.f32.mrf.mxu1 }
 0xaa8   :  { %v5784_v5 = vpop.f32.mrf.mxu0  ;;  %v5773_v17 = vpop.f32.mrf.mxu1 }
 0xaa9   :  { %5821 = vmatprep.subr.mxu0 %v5784_v5 }
 0xaaa   :  { %v3525_v6 = vpop.f32.mrf.mxu0  ;;  %5822 = vmatpush3.msra.mxu0 %v5784_v5  ;;  %v3450_v7 = vpop.f32.mrf.mxu1 }
 0xaab   :  { %5823 = vmatprep.subr.mxu0 %v3525_v6 }
 0xaac   :  { %5824 = vmatpush3.msra.mxu0 %v3525_v6 }
 0xaad   :  { %5825 = vmatprep.subr.mxu0 %v5773_v17 }
 0xaae   :  { %5826 = vmatpush3.msra.mxu0 %v5773_v17 }
 0xaaf   :  { %5827 = vmatprep.subr.mxu0 %v3450_v7 }
 0xab0   :  { %5828 = vmatpush3.msra.mxu0 %v3450_v7 }
 0xab1   :  { %5829 = vmatprep.subr.mxu0 %v5762_v59 }
 0xab2   :  { %5830 = vmatpush3.msra.mxu0 %v5762_v59 }
 0xab3   :  { %5831 = vmatprep.subr.mxu0 %v3375_v16 }
 0xab4   :  { %5832 = vmatpush3.msra.mxu0 %v3375_v16 }
 0xab5   :  { %5833 = vmatprep.subr.mxu0 %v5751_v15 }
 0xab6   :  { %5834 = vmatpush3.msra.mxu0 %v5751_v15 }
 0xab7   :  { %5835 = vmatprep.subr.mxu0 %v3300_v4 }
 0xab8   :  { %5836 = vmatpush3.msra.mxu0 %v3300_v4 }
 0xab9   :  { %5838 = vmatmul.mubr.msk.f32.vlgmr.msra.gmra.mxu0 %vm1245_vm4, %v5978_v19  ;;  %5849 = vmatprep.subr.mxu0 %v4659_v18 }
 0xaba   :  { %5840 = vmatprep.mubr.msk.f32.mxu0 %vm1245_vm4, %v5979_v9  ;;  %5850 = vmatpush3.msra.mxu0 %v4659_v18 }
 0xabb   :  { %5851 = vmatprep.subr.mxu0 %v4658_v8 }
 0xabc   :  { %5852 = vmatpush3.msra.mxu0 %v4658_v8 }
 0xabd   :  { %5841 = vmatmul.mubr.msk.f32.gmra.mxu0 %vm1245_vm4, %v5980_v20  ;;  %5853 = vmatprep.subr.mxu0 %v4657_v10 }
 0xabe   :  { %5843 = vmatprep.mubr.msk.f32.mxu0 %vm1245_vm4, %v5981_v21  ;;  %5854 = vmatpush3.msra.mxu0 %v4657_v10 }
 0xabf   :  { %5855 = vmatprep.subr.mxu0 %v4656_v13 }
 0xac0   :  { %5856 = vmatpush3.msra.mxu0 %v4656_v13 }
 0xac1   :  { %5844 = vmatmul.mubr.msk.f32.gmra.mxu0 %vm1245_vm4, %v5982_v26  ;;  %5857 = vmatprep.subr.mxu0 %v4655_v22  ;;  %v5811_v42 = vpop.f32.mrf.mxu1  ;;  %v4661_v26 = vld [vmem:[%s7313_s19 + $0x2] ss:$0 sm:$0xff] }
 0xac2   :  { %5846 = vmatprep.mubr.msk.f32.mxu0 %vm1245_vm4, %v5983_v29  ;;  %5858 = vmatpush3.msra.mxu0 %v4655_v22 }
 0xac3   :  { %5859 = vmatprep.subr.mxu0 %v4654_v23  ;;  %v3624_v43 = vpop.f32.mrf.mxu1 }
 0xac4   :  { %5860 = vmatpush3.msra.mxu0 %v4654_v23 }
 0xac5   :  { %5847 = vmatmul.mubr.msk.f32.gmra.mxu0 %vm1245_vm4, %v5984_v34  ;;  %5861 = vmatprep.subr.mxu0 %v4653_v30  ;;  %v5814_v44 = vpop.f32.mrf.mxu1 }
 0xac6   :  { %5862 = vmatpush3.msra.mxu0 %v4653_v30 }
 0xac7   :  { %5863 = vmatprep.subr.mxu0 %v4652_v33  ;;  %v3634_v45 = vpop.f32.mrf.mxu1 }
 0xac8   :  { %5864 = vmatpush3.msra.mxu0 %v4652_v33 }
 0xac9   :  { %5865 = vmatprep.subr.mxu0 %v4651_v3  ;;  %v5817_v31 = vpop.f32.mrf.mxu1 }
 0xaca   :  { %5866 = vmatpush3.msra.mxu0 %v4651_v3 }
 0xacb   :  { %5867 = vmatprep.subr.mxu0 %v4650_v24  ;;  %v3644_v63 = vpop.f32.mrf.mxu1 }
 0xacc   :  { %5868 = vmatpush3.msra.mxu0 %v4650_v24 }
 0xacd   :  { %5869 = vmatprep.subr.mxu0 %v4649_v27  ;;  %v5820_v57 = vpop.f32.mrf.mxu1 }
 0xace   :  { %5870 = vmatpush3.msra.mxu0 %v4649_v27 }
 0xacf   :  { %5871 = vmatprep.subr.mxu0 %v4648_v47  ;;  %v3654_v4 = vpop.f32.mrf.mxu1 }
 0xad0   :  { %5872 = vmatpush3.msra.mxu0 %v4648_v47 }
 0xad1   :  { %5873 = vmatprep.subr.mxu0 %v4647_v48 }
 0xad2   :  { %5874 = vmatpush3.msra.mxu0 %v4647_v48 }
 0xad3   :  { %5875 = vmatprep.subr.mxu0 %v4646_v37 }
 0xad4   :  { %5876 = vmatpush3.msra.mxu0 %v4646_v37 }
 0xad5   :  { %5877 = vmatprep.subr.mxu0 %v4645_v39 }
 0xad6   :  { %5878 = vmatpush3.msra.mxu0 %v4645_v39 }
 0xad7   :  { %5879 = vmatprep.subr.mxu0 %v4644_v41 }
 0xad8   :  { %5880 = vmatpush3.msra.mxu0 %v4644_v41 }
 0xb79   :  { %v5839_v46 = vpop.f32.mrf.mxu0 }
 0xb7a   :  { %v3735_v49 = vadd.f32 %v5839_v46, %v5811_v42 }
 0xb7b   :  { %v3729_v40 = vpop.f32.mrf.mxu0 }
 0xb7c   :  { %v3730_v50 = vadd.f32 %v3729_v40, %v3624_v43  ;;  %v3777_v51 = vadd.f32 %v4643_v38, %v3735_v49  ;;  %v5985_v40 = vld [vmem:[%s7312_s10 + $0x8] sm:$0xff] }
 0xb7d   :  { %v5842_v60 = vpop.f32.mrf.mxu0 }
 0xb7e   :  { %v3776_v61 = vadd.f32 %v4643_v38, %v3730_v50  ;;  %v3745_v62 = vadd.f32 %v5842_v60, %v5814_v44  ;;  %v3785_v2 = vmax.f32 %v3777_v51, 0.0  ;;  %v4669_v50 = vld [vmem:[%s7314_s20 + $0xa8] sm:$0xff]  ;;  %v4668_v51 = vld [vmem:[%s7314_s20 + $0xa0] sm:$0xff]  ;;  %v4667_v60 = vld [vmem:[%s7314_s20 + $0x98] sm:$0xff] }
 0xb7f   :  { %v3739_v0 = vpop.f32.mrf.mxu0 }
 0xb80   :  { %v3784_v1 = vmax.f32 %v3776_v61, 0.0  ;;  %v3740_v52 = vadd.f32 %v3739_v0, %v3634_v45  ;;  %v3779_v53 = vadd.f32 %v4643_v38, %v3745_v62  ;;  %v4666_v61 = vld [vmem:[%s7314_s20 + $0x90] sm:$0xff]  ;;  %v4665_v62 = vld [vmem:[%s7314_s20 + $0x88] sm:$0xff] }
 0xb81   :  { %v5845_v54 = vpop.f32.mrf.mxu0 }
 0xb82   :  { %v3778_v55 = vadd.f32 %v4643_v38, %v3740_v52  ;;  %v3755_v56 = vadd.f32 %v5845_v54, %v5817_v31  ;;  %5881 = vmatprep.mubr.f32.mxu0 %v3784_v1  ;;  %v3787_v32 = vmax.f32 %v3779_v53, 0.0  ;;  %v4670_v31 = vld [vmem:[%s7314_s20 + $0xb0] sm:$0xff]  ;;  %v5987_v52 = vmov 0.0  }
 0xb83   :  { %v3749_v11 = vpop.f32.mrf.mxu0  ;;  %5882 = vmatmul.mubr.f32.vlgmr.msra.gmra.mxu0 %v3785_v2  ;;  %5949 = vmatprep.subr.mxu0 %v5987_v52 }
 0xb84   :  { %v3786_v12 = vmax.f32 %v3778_v55, 0.0  ;;  %v3750_v58 = vadd.f32 %v3749_v11, %v3644_v63  ;;  %v3781_v14 = vadd.f32 %v4643_v38, %v3755_v56  ;;  %v4664_v63 = vld [vmem:[%s7314_s20 + $0x80] sm:$0xff] }
 0xb85   :  { %v5848_v59 = vpop.f32.mrf.mxu0  ;;  %v4109_v11 = vld [vmem:[%s7317_s22] sm:$0x3] }
 0xb86   :  { %v3780_v15 = vadd.f32 %v4643_v38, %v3750_v58  ;;  %v3765_v16 = vadd.f32 %v5848_v59, %v5820_v57  ;;  %5884 = vmatprep.mubr.f32.mxu0 %v3786_v12  ;;  %v3789_v7 = vmax.f32 %v3781_v14, 0.0  ;;  %v4187_v12 = vld [vmem:[%s7318_s23 + $0x18] sm:$0xff]  ;;  %v4269_v58 = vld [vmem:[%s7319_s25] sm:$0xff]  ;;  %v32_v59 = vstv %s7320_s26 }
 0xb87   :  { %v3759_v5 = vpop.f32.mrf.mxu0  ;;  %5885 = vmatmul.mubr.f32.gmra.mxu0 %v3787_v32  ;;  %33 = vst [vmem:[#allocation2] sm:$0x1] %v32_v59 }
 0xb88   :  { %v3788_v17 = vmax.f32 %v3780_v15, 0.0  ;;  %v3760_v6 = vadd.f32 %v3759_v5, %v3654_v4  ;;  %v3783_v18 = vadd.f32 %v4643_v38, %v3765_v16  ;;  %v4677_v15 = vld [vmem:[%s7321_s24] ss:$0 sm:$0xff] }
 0xb8a   :  { %v3782_v8 = vadd.f32 %v4643_v38, %v3760_v6  ;;  %5887 = vmatprep.mubr.f32.mxu0 %v3788_v17  ;;  %v3791_v9 = vmax.f32 %v3783_v18, 0.0  ;;  %v4671_v38 = vld [vmem:[%s7314_s20 + $0xb8] sm:$0xff] }
 0xb8b   :  { %5888 = vmatmul.mubr.f32.gmra.mxu0 %v3789_v7 }
 0xb8c   :  { %v3790_v19 = vmax.f32 %v3782_v8, 0.0 }
 0xb8e   :  { %5890 = vmatprep.mubr.f32.mxu0 %v3790_v19  ;;  %v4679_v6 = vld [vmem:[#allocation2] ss:$0 sm:$0xff] }
 0xb8f   :  { %5891 = vmatmul.mubr.f32.gmra.mxu0 %v3791_v9 }
 0xb90   :  { %5953 = vmatprep.mubr.msk.f32.mxu0 %vm5988_vm5, %v5987_v52 }
 0xc43   :  { %v5883_v10 = vpop.f32.mrf.mxu0 }
 0xc44   :  { %v3889_v42 = vadd.f32 %v5883_v10, %v4661_v26 }
 0xc45   :  { %v3883_v13 = vpop.f32.mrf.mxu0 }
 0xc46   :  { %v3884_v44 = vadd.f32 %v4661_v26, %v3883_v13  ;;  %v3923_v46 = vmax.f32 %v3889_v42, 0.0 }
 0xc47   :  { %v5886_v20 = vpop.f32.mrf.mxu0 }
 0xc48   :  { %v3899_v48 = vadd.f32 %v5886_v20, %v4661_v26  ;;  %v3922_v49 = vmax.f32 %v3884_v44, 0.0 }
 0xc49   :  { %v3893_v21 = vpop.f32.mrf.mxu0 }
 0xc4a   :  { %v3894_v39 = vadd.f32 %v4661_v26, %v3893_v21  ;;  %v3925_v43 = vmax.f32 %v3899_v48, 0.0 }
 0xc4b   :  { %v5889_v22 = vpop.f32.mrf.mxu0 }
 0xc4c   :  { %v3909_v34 = vadd.f32 %v5889_v22, %v4661_v26  ;;  %v3924_v45 = vmax.f32 %v3894_v39, 0.0 }
 0xc4d   :  { %v3903_v23 = vpop.f32.mrf.mxu0 }
 0xc4e   :  { %v3904_v27 = vadd.f32 %v4661_v26, %v3903_v23  ;;  %v3927_v37 = vmax.f32 %v3909_v34, 0.0 }
 0xc4f   :  { %v5892_v29 = vpop.f32.mrf.mxu0 }
 0xc50   :  { %v3919_v30 = vadd.f32 %v5892_v29, %v4661_v26  ;;  %v3926_v41 = vmax.f32 %v3904_v27, 0.0 }
 0xc51   :  { %v3913_v33 = vpop.f32.mrf.mxu0 }
 0xc52   :  { %v3929_v3 = vmax.f32 %v3919_v30, 0.0  ;;  %v3914_v24 = vadd.f32 %v4661_v26, %v3913_v33 }
 0xc54   :  { %v3928_v47 = vmax.f32 %v3914_v24, 0.0  ;;  %5893 = vmatprep.subr.mxu1 %v3929_v3 }
 0xc55   :  { %5894 = vmatpush3.msra.mxu1 %v3929_v3 }
 0xc56   :  { %5895 = vmatprep.subr.mxu1 %v3928_v47 }
 0xc57   :  { %5896 = vmatpush3.msra.mxu1 %v3928_v47 }
 0xc58   :  { %5897 = vmatprep.subr.mxu1 %v3927_v37 }
 0xc59   :  { %5898 = vmatpush3.msra.mxu1 %v3927_v37 }
 0xc5a   :  { %5899 = vmatprep.subr.mxu1 %v3926_v41 }
 0xc5b   :  { %5900 = vmatpush3.msra.mxu1 %v3926_v41 }
 0xc5c   :  { %5901 = vmatprep.subr.mxu1 %v3925_v43 }
 0xc5d   :  { %5902 = vmatpush3.msra.mxu1 %v3925_v43 }
 0xc5e   :  { %5903 = vmatprep.subr.mxu1 %v3924_v45 }
 0xc5f   :  { %5904 = vmatpush3.msra.mxu1 %v3924_v45 }
 0xc60   :  { %5905 = vmatprep.subr.mxu1 %v3923_v46 }
 0xc61   :  { %5906 = vmatpush3.msra.mxu1 %v3923_v46 }
 0xc62   :  { %5907 = vmatprep.subr.mxu1 %v3922_v49 }
 0xc63   :  { %5908 = vmatpush3.msra.mxu1 %v3922_v49 }
 0xc64   :  { %5910 = vmatmul.mubr.msk.f32.vlgmr.msra.gmra.mxu1 %vm1245_vm4, %v5985_v40  ;;  %5912 = vmatprep.subr.mxu1 %v4671_v38 }
 0xc65   :  { %5913 = vmatpush3.msra.mxu1 %v4671_v38 }
 0xc66   :  { %5914 = vmatprep.subr.mxu1 %v4670_v31 }
 0xc67   :  { %5915 = vmatpush3.msra.mxu1 %v4670_v31 }
 0xc68   :  { %5916 = vmatprep.subr.mxu1 %v4669_v50 }
 0xc69   :  { %5917 = vmatpush3.msra.mxu1 %v4669_v50 }
 0xc6a   :  { %5918 = vmatprep.subr.mxu1 %v4668_v51 }
 0xc6b   :  { %5919 = vmatpush3.msra.mxu1 %v4668_v51 }
 0xc6c   :  { %5920 = vmatprep.subr.mxu1 %v4667_v60 }
 0xc6d   :  { %5921 = vmatpush3.msra.mxu1 %v4667_v60 }
 0xc6e   :  { %5922 = vmatprep.subr.mxu1 %v4666_v61 }
 0xc6f   :  { %5923 = vmatpush3.msra.mxu1 %v4666_v61 }
 0xc70   :  { %5924 = vmatprep.subr.mxu1 %v4665_v62 }
 0xc71   :  { %5925 = vmatpush3.msra.mxu1 %v4665_v62 }
 0xc72   :  { %5926 = vmatprep.subr.mxu1 %v4664_v63 }
 0xc73   :  { %5927 = vmatpush3.msra.mxu1 %v4664_v63 }
 0xc74   :  { %5931 = vmatprep.subr.mxu1 %v5987_v52 }
 0xd24   :  { %v5911_v0 = vpop.f32.mrf.mxu1 }
 0xd26   :  { %v3996_v1 = vpop.f32.mrf.mxu1 }
 0xd27   :  { %5928 = vmatprep.mubr.msk.f32.mxu1 %vm1245_vm4, %v3996_v1 }
 0xd28   :  { %5929 = vmatmul.mubr.msk.f32.vlgmr.msra.gmra.mxu1 %vm1245_vm4, %v5911_v0 }
 0xd29   :  { %5935 = vmatprep.mubr.msk.f32.mxu1 %vm5988_vm5, %v5987_v52 }
 0xde8   :  { %v5930_v2 = vpop.f32.mrf.mxu1 }
 0xde9   :  { %v4096_v53 = vadd.f32 %v5930_v2, %v7052_v36  ;;  %v4270_v36 = vld [vmem:[%s7319_s25 + $0x8] sm:$0xff] }
 0xdea   :  { %v4086_v54 = vpop.f32.mrf.mxu1  ;;  %5950 = vmatpush3.msra.mxu0 %v4270_v36 }
 0xdeb   :  { %v4108_v55 = vadd.f32 %v6703_v28, %v4096_v53  ;;  %v4095_v56 = vadd.f32 %v4086_v54, %v7049_v35  ;;  %v4186_v28 = vld [vmem:[%s7318_s23 + $0x10] sm:$0xff]  ;;  %v4184_v35 = vld [vmem:[%s7318_s23] sm:$0xff]  ;;  %5951 = vmatprep.subr.mxu0 %v5987_v52 }
 0xdec   :  { %5952 = vmatpush3.msra.mxu0 %v4269_v58 }
 0xded   :  { %v4107_v57 = vadd.f32 %v6698_v25, %v4095_v56  ;;  %5932 = vmatpush3.msra.mxu1 %v4108_v55  ;;  %v4185_v25 = vld [vmem:[%s7318_s23 + $0x8] sm:$0xff] }
 0xdee   :  { %5933 = vmatprep.subr.mxu1 %v5987_v52 }
 0xdef   :  { %5934 = vmatpush3.msra.mxu1 %v4107_v57 }
 0xdf0   :  { %5936 = vmatmul.mubr.msk.f32.vlgmr.msra.gmra.mxu1 %vm4110_vm6, %v4109_v11  ;;  %5938 = vmatprep.subr.mxu1 %v5987_v52 }
 0xdf1   :  { %5939 = vmatpush3.msra.mxu1 %v4187_v12  ;;  %5946 = vmatprep.mubr.msk.f32.mxu1 %vm5988_vm5, %v5987_v52 }
 0xdf2   :  { %5940 = vmatprep.subr.mxu1 %v5987_v52 }
 0xdf3   :  { %5941 = vmatpush3.msra.mxu1 %v4186_v28 }
 0xdf4   :  { %5942 = vmatprep.subr.mxu1 %v5987_v52 }
 0xdf5   :  { %5943 = vmatpush3.msra.mxu1 %v4185_v25 }
 0xdf6   :  { %5944 = vmatprep.subr.mxu1 %v5987_v52 }
 0xdf7   :  { %5945 = vmatpush3.msra.mxu1 %v4184_v35 }
 0xeb0   :  { %v4180_v32 = vpop.f32.mrf.mxu1 }
 0xeb1   :  { %5947 = vmatmul.mubr.msk.f32.vlgmr.msra.gmra.mxu1 %vm193_vm1, %v4180_v32 }
 0xeb2   :  { %v5937_v14 = vpop.f32.mrf.mxu1 }
 0xf71   :  { %v4264_v16 = vpop.f32.mrf.mxu1 }
 0xf72   :  { %v4265_v4 = vadd.f32 %v4677_v15, %v4264_v16 }
 0xf73   :  { %v5948_v5 = vpop.f32.mrf.mxu1 }
 0xf74   :  { %v4268_v17 = vmax.f32 %v4265_v4, 0.0 }
 0xf76   :  { %5954 = vmatmul.mubr.msk.f32.vlgmr.msra.gmra.mxu0 %vm4110_vm6, %v4268_v17 }
0x1036   :  { %v4347_v7 = vpop.f32.mrf.mxu0 }
0x1037   :  { %v4348_v18 = vadd.f32 %v4679_v6, %v4347_v7 }
0x1038   :  { %v5955_v8 = vpop.f32.mrf.mxu0 }
0x1039   :  { %4352 = vst.msk [vmem:[%s7322_s27] sm:$0x3] %vm4351_vm7, %v4348_v18 }

</bundles_post_ra>
